<compile_context>
chip_gen: v6e
topology: v6e:2x2x1
jax: 0.10.0
libtpu: 0.0.40
codegen_flags: <defaults>
</compile_context>

<pallas_src>
import functools
import math

import jax
import jax.numpy as jnp
from jax.experimental import pallas as pl
from jax.experimental.pallas import tpu as pltpu


_BN_EPS = 1e-5


def _batchnorm(x, w, b, eps=_BN_EPS):
    # PyTorch BatchNorm1d on (1, C, L): per-channel (= per token row) batch
    # stats over the embedding axis, biased variance.  Variance is clamped at
    # zero to guard against cancellation in the one-pass E[x^2]-E[x]^2 form.
    inv_n = 1.0 / x.shape[1]
    mean = jnp.sum(x, axis=1, keepdims=True) * inv_n
    var = jnp.sum(x * x, axis=1, keepdims=True) * inv_n - mean * mean
    var = jnp.maximum(var, 0.0)
    return (x - mean) * jax.lax.rsqrt(var + eps) * w + b


def _qkv_project(z, wq_ref, bq_ref, wkT_ref, bk_ref, wv_ref, bv_ref):
    # Reference MHA Conv1d(kernel=1) projections.  Q/V are produced directly
    # in the (E, N) layout their reshape scramble expects (qc = WQ @ z.T), so
    # the only in-kernel transpose is the single shared z.T.
    zT = z.T                                                          # (E, N)
    qc = jnp.dot(wq_ref[...], zT, preferred_element_type=jnp.float32) + bq_ref[...]
    vc = jnp.dot(wv_ref[...], zT, preferred_element_type=jnp.float32) + bv_ref[...]
    knt = jnp.dot(z, wkT_ref[...], preferred_element_type=jnp.float32) + bk_ref[...]
    return qc, knt, vc


def _attention_ff(z, q_ref, k_ref, v_ref, zall_ref, wzT_ref, bz_ref,
                  bnw_ref, bnb_ref, ffT_ref, ffb_ref,
                  *, inv_scale, num_heads, len_head):
    # Fused: BN1, all-heads softmax attention, single WZ projection, residual,
    # BN2 (same shared BatchNorm1d parameters), feed-forward, residual.
    bnw = bnw_ref[...]
    bnb = bnb_ref[...]
    bn1 = _batchnorm(z, bnw, bnb)

    # Per-head attention; heads are independent (disjoint scratch slices), so
    # there is no serial accumulation chain across heads.
    for h in range(num_heads):                      # static unroll, tiny tiles
        qh = q_ref[h]                                                 # (N, lh)
        kh = k_ref[h]                                                 # (N, lh)
        vh = v_ref[h]                                                 # (N, lh)
        s = jnp.dot(qh, kh.T, preferred_element_type=jnp.float32) * inv_scale
        s = s - jnp.max(s, axis=-1, keepdims=True)
        p = jnp.exp(s)
        p = p * pl.reciprocal(jnp.sum(p, axis=-1, keepdims=True), approx=True)
        zall_ref[:, h * len_head:(h + 1) * len_head] = jnp.dot(
            p, vh, preferred_element_type=jnp.float32)                # (N, lh)

    # One lane-dense (N,E)@(E,E) output projection instead of 8 K=4 matmuls.
    mha = jnp.dot(zall_ref[...], wzT_ref[...],
                  preferred_element_type=jnp.float32) + bz_ref[...]
    skip = mha + bn1
    bn2 = _batchnorm(skip, bnw, bnb)
    ff = jnp.dot(bn2, ffT_ref[...], preferred_element_type=jnp.float32) \
        + ffb_ref[...]
    return ff + skip


# ----------------------------- Pallas kernels ------------------------------

def _embed_qkv_kernel(xp_ref, wct_ref, add_ref,
                      wq_ref, bq_ref, wkT_ref, bk_ref, wv_ref, bv_ref,
                      z_ref, qc_ref, knt_ref, vc_ref):
    # Patch-embedding Conv2d (kernel = stride = patch) as one matmul.  The
    # cls-token row is produced by a zero input row plus the precomputed
    # additive matrix (cls + pos on row 0, conv_b + pos elsewhere), so the
    # whole (N, E) result is written with a single aligned store.
    z = jnp.dot(xp_ref[...], wct_ref[...],
                preferred_element_type=jnp.float32) + add_ref[...]
    z_ref[...] = z
    qc, knt, vc = _qkv_project(z, wq_ref, bq_ref, wkT_ref, bk_ref,
                               wv_ref, bv_ref)
    qc_ref[...] = qc
    knt_ref[...] = knt
    vc_ref[...] = vc


def _encoder_qkv_kernel(z_ref, q_ref, k_ref, v_ref,
                        wzT_ref, bz_ref, bnw_ref, bnb_ref, ffT_ref, ffb_ref,
                        wq_ref, bq_ref, wkT_ref, bk_ref, wv_ref, bv_ref,
                        zo_ref, qc_ref, knt_ref, vc_ref, zall_ref,
                        *, inv_scale, num_heads, len_head):
    z_next = _attention_ff(z_ref[...], q_ref, k_ref, v_ref, zall_ref,
                           wzT_ref, bz_ref, bnw_ref, bnb_ref, ffT_ref, ffb_ref,
                           inv_scale=inv_scale, num_heads=num_heads,
                           len_head=len_head)
    zo_ref[...] = z_next
    qc, knt, vc = _qkv_project(z_next, wq_ref, bq_ref, wkT_ref, bk_ref,
                               wv_ref, bv_ref)
    qc_ref[...] = qc
    knt_ref[...] = knt
    vc_ref[...] = vc


def _encoder_head_kernel(z_ref, q_ref, k_ref, v_ref,
                         wzT_ref, bz_ref, bnw_ref, bnb_ref, ffT_ref, ffb_ref,
                         whT_ref, o_ref, zall_ref,
                         *, inv_scale, num_heads, len_head):
    z_next = _attention_ff(z_ref[...], q_ref, k_ref, v_ref, zall_ref,
                           wzT_ref, bz_ref, bnw_ref, bnb_ref, ffT_ref, ffb_ref,
                           inv_scale=inv_scale, num_heads=num_heads,
                           len_head=len_head)
    # Classification head (Linear, no bias) on the cls token (row 0).
    o_ref[...] = jnp.dot(z_next[0:1, :], whT_ref[...],
                         preferred_element_type=jnp.float32)


# ------------------------------- forward pass -------------------------------

def vit_forward(x, params, cfg):
    p_sz = cfg["patch_size"]
    e = cfg["len_embedding"]
    h = cfg["num_heads"]
    lh = e // h
    _, c, hr, wr = x.shape
    hp, wp = hr // p_sz, wr // p_sz
    n_tok = hp * wp + 1
    inv_scale = 1.0 / float(lh)

    # im2col of the (single) image: patches row-major over (ph, pw), features
    # ordered (channel, kh, kw) to match the conv weight layout; a zero row is
    # prepended so the embed matmul emits the full (n_tok, E) tile (the cls
    # row comes entirely from the precomputed additive matrix).
    xp = (x[0]
          .reshape(c, hp, p_sz, wp, p_sz)
          .transpose(1, 3, 0, 2, 4)
          .reshape(hp * wp, c * p_sz * p_sz))
    xp_full = jnp.concatenate(
        [jnp.zeros((1, c * p_sz * p_sz), jnp.float32), xp], axis=0)

    encs = params["encoders"]
    e0 = encs[0]
    z, qc, knt, vc = pl.pallas_call(
        _embed_qkv_kernel,
        out_shape=(jax.ShapeDtypeStruct((n_tok, e), jnp.float32),
                   jax.ShapeDtypeStruct((e, n_tok), jnp.float32),
                   jax.ShapeDtypeStruct((n_tok, e), jnp.float32),
                   jax.ShapeDtypeStruct((e, n_tok), jnp.float32)),
    )(xp_full, params["conv_wT"], params["embed_add"],
      e0["wq_w"], e0["wq_b_col"], e0["wk_wT"], e0["wk_b_row"],
      e0["wv_w"], e0["wv_b_col"])

    kern_mid = functools.partial(_encoder_qkv_kernel, inv_scale=inv_scale,
                                 num_heads=h, len_head=lh)
    kern_last = functools.partial(_encoder_head_kernel, inv_scale=inv_scale,
                                  num_heads=h, len_head=lh)

    n_enc = len(encs)
    logits = None
    for i in range(n_enc):
        enc = encs[i]
        # Faithful reference scrambles: row-major (zero-copy) reshapes of the
        # contiguous projection outputs.  They mix tokens, so they cannot be
        # folded into weights; keeping them here (instead of an in-kernel
        # relayout) is what forces a kernel boundary per encoder.
        q = qc.reshape(h, n_tok, lh)
        k = knt.reshape(h, n_tok, lh)
        v = vc.reshape(h, n_tok, lh)
        if i + 1 < n_enc:
            nxt = encs[i + 1]
            z, qc, knt, vc = pl.pallas_call(
                kern_mid,
                out_shape=(jax.ShapeDtypeStruct((n_tok, e), jnp.float32),
                           jax.ShapeDtypeStruct((e, n_tok), jnp.float32),
                           jax.ShapeDtypeStruct((n_tok, e), jnp.float32),
                           jax.ShapeDtypeStruct((e, n_tok), jnp.float32)),
                scratch_shapes=[pltpu.VMEM((n_tok, e), jnp.float32)],
            )(z, q, k, v,
              enc["wz_wT"], enc["wz_b"], enc["bn_w"], enc["bn_b"],
              enc["ff_wT"], enc["ff_b"],
              nxt["wq_w"], nxt["wq_b_col"], nxt["wk_wT"], nxt["wk_b_row"],
              nxt["wv_w"], nxt["wv_b_col"])
        else:
            logits = pl.pallas_call(
                kern_last,
                out_shape=jax.ShapeDtypeStruct((1, cfg["num_classes"]),
                                               jnp.float32),
                scratch_shapes=[pltpu.VMEM((n_tok, e), jnp.float32)],
            )(z, q, k, v,
              enc["wz_wT"], enc["wz_b"], enc["bn_w"], enc["bn_b"],
              enc["ff_wT"], enc["ff_b"], params["head_wT"])
    return logits


# ------------------------------ parameter init ------------------------------

def _xavier_uniform(key, shape, fan_in, fan_out):
    limit = math.sqrt(6.0 / (fan_in + fan_out))
    return jax.random.uniform(key, shape, jnp.float32, -limit, limit)


def init_params(key, cfg):
    # Weights are stored directly in the layouts the fused kernels consume
    # (W for the (E,N)-layout Q/V projections, W.T for row-oriented matmuls,
    # (E,1)/(1,E) biases, and the fused embed additive matrix).
    e = cfg["len_embedding"]
    c = cfg["input_channel"]
    p_sz = cfg["patch_size"]
    n_cls = cfg["num_classes"]
    n_tok = (cfg["input_res"] // p_sz) ** 2 + 1

    keys = jax.random.split(key, 4 + cfg["num_encoders"])
    conv_w = _xavier_uniform(keys[0], (e, c, p_sz, p_sz),
                             c * p_sz * p_sz, e * p_sz * p_sz)
    conv_b = jnp.zeros((e,), jnp.float32)
    cls_token = jax.random.uniform(keys[1], (1, e), jnp.float32, 0.0, 1.0)
    pos_emb = jax.random.normal(keys[2], (n_tok, e), jnp.float32)
    head_w = 0.01 * jax.random.normal(keys[3], (n_cls, e), jnp.float32)

    # Fused additive term of the embedding kernel: row 0 = cls + pos[0],
    # rows 1.. = conv bias + pos[1:].
    embed_add = jnp.concatenate(
        [cls_token + pos_emb[0:1], conv_b[None, :] + pos_emb[1:]], axis=0)

    params = {
        "conv_wT": conv_w.reshape(e, c * p_sz * p_sz).T,        # (C*P*P, E)
        "embed_add": embed_add,                                 # (n_tok, E)
        "head_wT": head_w.T,                                    # (E, classes)
        "encoders": [],
    }
    for i in range(cfg["num_encoders"]):
        ek = jax.random.split(keys[4 + i], 5)
        wq = _xavier_uniform(ek[1], (e, e), e, e)
        wk = _xavier_uniform(ek[2], (e, e), e, e)
        wv = _xavier_uniform(ek[3], (e, e), e, e)
        wz = _xavier_uniform(ek[4], (e, e), e, e)
        ff = 0.01 * jax.random.normal(ek[0], (e, e), jnp.float32)
        params["encoders"].append({
            "bn_w": jnp.ones((n_tok, 1), jnp.float32),
            "bn_b": jnp.zeros((n_tok, 1), jnp.float32),
            "wq_w": wq, "wq_b_col": jnp.zeros((e, 1), jnp.float32),
            "wk_wT": wk.T, "wk_b_row": jnp.zeros((1, e), jnp.float32),
            "wv_w": wv, "wv_b_col": jnp.zeros((e, 1), jnp.float32),
            "wz_wT": wz.T, "wz_b": jnp.zeros((1, e), jnp.float32),
            "ff_wT": ff.T, "ff_b": jnp.zeros((1, e), jnp.float32),
        })
    return params
    # TODO(synk): BatchNorm1d running_mean/running_var buffer updates (a
    # training-time side effect) are not modeled; forward uses batch stats.


# ----------------------------------- main -----------------------------------

if __name__ == "__main__":
    # Small configuration consistent with the reference forward (batch must
    # be 1 because of its cat/squeeze handling).
    cfg = dict(num_encoders=2, len_embedding=32, num_heads=8, patch_size=4,
               input_res=16, num_classes=10, input_channel=3)
    key = jax.random.PRNGKey(0)
    kp, kx = jax.random.split(key)
    params = init_params(kp, cfg)
    x = jax.random.normal(
        kx, (1, cfg["input_channel"], cfg["input_res"], cfg["input_res"]),
        jnp.float32)

    fwd = jax.jit(functools.partial(vit_forward, cfg=cfg))
    y = fwd(x, params)
    y = jax.block_until_ready(y)
    assert y.shape == (1, cfg["num_classes"])
    assert bool(jnp.all(jnp.isfinite(y)))
    print("KERNEL_OK")
</pallas_src>

<mosaic_0001>
module attributes {stable_mosaic.version = 11 : i64} {
  func.func @_embed_qkv_kernel(%arg0: memref<17x48xf32, #tpu.memory_space<vmem>>, %arg1: memref<48x32xf32, #tpu.memory_space<vmem>>, %arg2: memref<17x32xf32, #tpu.memory_space<vmem>>, %arg3: memref<32x32xf32, #tpu.memory_space<vmem>>, %arg4: memref<32x1xf32, #tpu.memory_space<vmem>>, %arg5: memref<32x32xf32, #tpu.memory_space<vmem>>, %arg6: memref<1x32xf32, #tpu.memory_space<vmem>>, %arg7: memref<32x32xf32, #tpu.memory_space<vmem>>, %arg8: memref<32x1xf32, #tpu.memory_space<vmem>>, %arg9: memref<17x32xf32, #tpu.memory_space<vmem>>, %arg10: memref<32x17xf32, #tpu.memory_space<vmem>>, %arg11: memref<17x32xf32, #tpu.memory_space<vmem>>, %arg12: memref<32x17xf32, #tpu.memory_space<vmem>>) attributes {dimension_semantics = [], scalar_prefetch = 0 : i64, scratch_operands = 0 : i64, tpu.core_type = #tpu.core_type<tc>} {
    %c0 = arith.constant 0 : index
    %c0_0 = arith.constant 0 : index
    %0 = vector.load %arg0[%c0, %c0_0] : memref<17x48xf32, #tpu.memory_space<vmem>>, vector<17x48xf32>
    %c0_1 = arith.constant 0 : index
    %c0_2 = arith.constant 0 : index
    %1 = vector.load %arg1[%c0_1, %c0_2] : memref<48x32xf32, #tpu.memory_space<vmem>>, vector<48x32xf32>
    %cst = arith.constant dense<0.000000e+00> : vector<17x32xf32>
    %2 = tpu.matmul %0, %1, %cst {dimension_numbers = #tpu.dot_dimension_numbers<[1], [0], [0], [1], [0, 0, 1, 1], [], []>} : vector<17x48xf32>, vector<48x32xf32>, vector<17x32xf32> -> vector<17x32xf32>
    %c0_3 = arith.constant 0 : index
    %c0_4 = arith.constant 0 : index
    %3 = vector.load %arg2[%c0_3, %c0_4] : memref<17x32xf32, #tpu.memory_space<vmem>>, vector<17x32xf32>
    %4 = arith.addf %2, %3 : vector<17x32xf32>
    %c0_5 = arith.constant 0 : index
    %c0_6 = arith.constant 0 : index
    %5 = vector.load %arg9[%c0_5, %c0_6] : memref<17x32xf32, #tpu.memory_space<vmem>>, vector<17x32xf32>
    tpu.vector_store %arg9[%c0_5, %c0_6], %4 {strides = array<i32>} : memref<17x32xf32, #tpu.memory_space<vmem>>, vector<17x32xf32>,
    %6 = tpu.transpose %4, [1, 0] : vector<17x32xf32> -> vector<32x17xf32>
    %c0_7 = arith.constant 0 : index
    %c0_8 = arith.constant 0 : index
    %7 = vector.load %arg3[%c0_7, %c0_8] : memref<32x32xf32, #tpu.memory_space<vmem>>, vector<32x32xf32>
    %cst_9 = arith.constant dense<0.000000e+00> : vector<32x17xf32>
    %8 = tpu.matmul %7, %6, %cst_9 {dimension_numbers = #tpu.dot_dimension_numbers<[1], [0], [0], [1], [0, 0, 1, 1], [], []>} : vector<32x32xf32>, vector<32x17xf32>, vector<32x17xf32> -> vector<32x17xf32>
    %c0_10 = arith.constant 0 : index
    %c0_11 = arith.constant 0 : index
    %9 = vector.load %arg4[%c0_10, %c0_11] : memref<32x1xf32, #tpu.memory_space<vmem>>, vector<32x1xf32>
    %10 = vector.broadcast %9 : vector<32x1xf32> to vector<32x17xf32>
    %11 = arith.addf %8, %10 : vector<32x17xf32>
    %c0_12 = arith.constant 0 : index
    %c0_13 = arith.constant 0 : index
    %12 = vector.load %arg7[%c0_12, %c0_13] : memref<32x32xf32, #tpu.memory_space<vmem>>, vector<32x32xf32>
    %cst_14 = arith.constant dense<0.000000e+00> : vector<32x17xf32>
    %13 = tpu.matmul %12, %6, %cst_14 {dimension_numbers = #tpu.dot_dimension_numbers<[1], [0], [0], [1], [0, 0, 1, 1], [], []>} : vector<32x32xf32>, vector<32x17xf32>, vector<32x17xf32> -> vector<32x17xf32>
    %c0_15 = arith.constant 0 : index
    %c0_16 = arith.constant 0 : index
    %14 = vector.load %arg8[%c0_15, %c0_16] : memref<32x1xf32, #tpu.memory_space<vmem>>, vector<32x1xf32>
    %15 = vector.broadcast %14 : vector<32x1xf32> to vector<32x17xf32>
    %16 = arith.addf %13, %15 : vector<32x17xf32>
    %c0_17 = arith.constant 0 : index
    %c0_18 = arith.constant 0 : index
    %17 = vector.load %arg5[%c0_17, %c0_18] : memref<32x32xf32, #tpu.memory_space<vmem>>, vector<32x32xf32>
    %cst_19 = arith.constant dense<0.000000e+00> : vector<17x32xf32>
    %18 = tpu.matmul %4, %17, %cst_19 {dimension_numbers = #tpu.dot_dimension_numbers<[1], [0], [0], [1], [0, 0, 1, 1], [], []>} : vector<17x32xf32>, vector<32x32xf32>, vector<17x32xf32> -> vector<17x32xf32>
    %c0_20 = arith.constant 0 : index
    %c0_21 = arith.constant 0 : index
    %19 = vector.load %arg6[%c0_20, %c0_21] : memref<1x32xf32, #tpu.memory_space<vmem>>, vector<1x32xf32>
    %20 = vector.broadcast %19 : vector<1x32xf32> to vector<17x32xf32>
    %21 = arith.addf %18, %20 : vector<17x32xf32>
    %c0_22 = arith.constant 0 : index
    %c0_23 = arith.constant 0 : index
    %22 = vector.load %arg10[%c0_22, %c0_23] : memref<32x17xf32, #tpu.memory_space<vmem>>, vector<32x17xf32>
    tpu.vector_store %arg10[%c0_22, %c0_23], %11 {strides = array<i32>} : memref<32x17xf32, #tpu.memory_space<vmem>>, vector<32x17xf32>,
    %c0_24 = arith.constant 0 : index
    %c0_25 = arith.constant 0 : index
    %23 = vector.load %arg11[%c0_24, %c0_25] : memref<17x32xf32, #tpu.memory_space<vmem>>, vector<17x32xf32>
    tpu.vector_store %arg11[%c0_24, %c0_25], %21 {strides = array<i32>} : memref<17x32xf32, #tpu.memory_space<vmem>>, vector<17x32xf32>,
    %c0_26 = arith.constant 0 : index
    %c0_27 = arith.constant 0 : index
    %24 = vector.load %arg12[%c0_26, %c0_27] : memref<32x17xf32, #tpu.memory_space<vmem>>, vector<32x17xf32>
    tpu.vector_store %arg12[%c0_26, %c0_27], %16 {strides = array<i32>} : memref<32x17xf32, #tpu.memory_space<vmem>>, vector<32x17xf32>,
    return
  }
}

module attributes {stable_mosaic.version = 11 : i64} {
  func.func @_encoder_qkv_kernel(%arg0: memref<17x32xf32, #tpu.memory_space<vmem>>, %arg1: memref<8x17x4xf32, #tpu.memory_space<vmem>>, %arg2: memref<8x17x4xf32, #tpu.memory_space<vmem>>, %arg3: memref<8x17x4xf32, #tpu.memory_space<vmem>>, %arg4: memref<32x32xf32, #tpu.memory_space<vmem>>, %arg5: memref<1x32xf32, #tpu.memory_space<vmem>>, %arg6: memref<17x1xf32, #tpu.memory_space<vmem>>, %arg7: memref<17x1xf32, #tpu.memory_space<vmem>>, %arg8: memref<32x32xf32, #tpu.memory_space<vmem>>, %arg9: memref<1x32xf32, #tpu.memory_space<vmem>>, %arg10: memref<32x32xf32, #tpu.memory_space<vmem>>, %arg11: memref<32x1xf32, #tpu.memory_space<vmem>>, %arg12: memref<32x32xf32, #tpu.memory_space<vmem>>, %arg13: memref<1x32xf32, #tpu.memory_space<vmem>>, %arg14: memref<32x32xf32, #tpu.memory_space<vmem>>, %arg15: memref<32x1xf32, #tpu.memory_space<vmem>>, %arg16: memref<17x32xf32, #tpu.memory_space<vmem>>, %arg17: memref<32x17xf32, #tpu.memory_space<vmem>>, %arg18: memref<17x32xf32, #tpu.memory_space<vmem>>, %arg19: memref<32x17xf32, #tpu.memory_space<vmem>>, %arg20: memref<17x32xf32, #tpu.memory_space<vmem>>) attributes {dimension_semantics = [], scalar_prefetch = 0 : i64, scratch_operands = 1 : i64, tpu.core_type = #tpu.core_type<tc>} {
    %c0 = arith.constant 0 : index
    %c0_0 = arith.constant 0 : index
    %0 = vector.load %arg0[%c0, %c0_0] : memref<17x32xf32, #tpu.memory_space<vmem>>, vector<17x32xf32>
    %c0_1 = arith.constant 0 : index
    %c0_2 = arith.constant 0 : index
    %1 = vector.load %arg6[%c0_1, %c0_2] : memref<17x1xf32, #tpu.memory_space<vmem>>, vector<17x1xf32>
    %c0_3 = arith.constant 0 : index
    %c0_4 = arith.constant 0 : index
    %2 = vector.load %arg7[%c0_3, %c0_4] : memref<17x1xf32, #tpu.memory_space<vmem>>, vector<17x1xf32>
    %cst = arith.constant dense<0.000000e+00> : vector<17xf32>
    %3 = vector.multi_reduction <add>, %0, %cst [1] : vector<17x32xf32> to vector<17xf32>
    %4 = vector.shape_cast %3 : vector<17xf32> to vector<17x1xf32>
    %cst_5 = arith.constant 3.125000e-02 : f32
    %5 = vector.broadcast %cst_5 : f32 to vector<17x1xf32>
    %6 = arith.mulf %4, %5 : vector<17x1xf32>
    %7 = arith.mulf %0, %0 : vector<17x32xf32>
    %cst_6 = arith.constant dense<0.000000e+00> : vector<17xf32>
    %8 = vector.multi_reduction <add>, %7, %cst_6 [1] : vector<17x32xf32> to vector<17xf32>
    %9 = vector.shape_cast %8 : vector<17xf32> to vector<17x1xf32>
    %cst_7 = arith.constant 3.125000e-02 : f32
    %10 = vector.broadcast %cst_7 : f32 to vector<17x1xf32>
    %11 = arith.mulf %9, %10 : vector<17x1xf32>
    %12 = arith.mulf %6, %6 : vector<17x1xf32>
    %13 = arith.subf %11, %12 : vector<17x1xf32>
    %cst_8 = arith.constant 0.000000e+00 : f32
    %14 = vector.broadcast %cst_8 : f32 to vector<17x1xf32>
    %15 = arith.maximumf %13, %14 : vector<17x1xf32>
    %16 = vector.broadcast %6 : vector<17x1xf32> to vector<17x32xf32>
    %17 = arith.subf %0, %16 : vector<17x32xf32>
    %cst_9 = arith.constant 9.99999974E-6 : f32
    %18 = vector.broadcast %cst_9 : f32 to vector<17x1xf32>
    %19 = arith.addf %15, %18 : vector<17x1xf32>
    %20 = math.rsqrt %19 : vector<17x1xf32>
    %21 = vector.broadcast %20 : vector<17x1xf32> to vector<17x32xf32>
    %22 = arith.mulf %17, %21 : vector<17x32xf32>
    %23 = vector.broadcast %1 : vector<17x1xf32> to vector<17x32xf32>
    %24 = arith.mulf %22, %23 : vector<17x32xf32>
    %25 = vector.broadcast %2 : vector<17x1xf32> to vector<17x32xf32>
    %26 = arith.addf %24, %25 : vector<17x32xf32>
    %c0_10 = arith.constant 0 : index
    %c0_11 = arith.constant 0 : index
    %c0_12 = arith.constant 0 : index
    %27 = vector.load %arg1[%c0_10, %c0_11, %c0_12] : memref<8x17x4xf32, #tpu.memory_space<vmem>>, vector<1x17x4xf32>
    %28 = vector.shape_cast %27 : vector<1x17x4xf32> to vector<17x4xf32>
    %c0_13 = arith.constant 0 : index
    %c0_14 = arith.constant 0 : index
    %c0_15 = arith.constant 0 : index
    %29 = vector.load %arg2[%c0_13, %c0_14, %c0_15] : memref<8x17x4xf32, #tpu.memory_space<vmem>>, vector<1x17x4xf32>
    %30 = vector.shape_cast %29 : vector<1x17x4xf32> to vector<17x4xf32>
    %c0_16 = arith.constant 0 : index
    %c0_17 = arith.constant 0 : index
    %c0_18 = arith.constant 0 : index
    %31 = vector.load %arg3[%c0_16, %c0_17, %c0_18] : memref<8x17x4xf32, #tpu.memory_space<vmem>>, vector<1x17x4xf32>
    %32 = vector.shape_cast %31 : vector<1x17x4xf32> to vector<17x4xf32>
    %33 = tpu.transpose %30, [1, 0] : vector<17x4xf32> -> vector<4x17xf32>
    %cst_19 = arith.constant dense<0.000000e+00> : vector<17x17xf32>
    %34 = tpu.matmul %28, %33, %cst_19 {dimension_numbers = #tpu.dot_dimension_numbers<[1], [0], [0], [1], [0, 0, 1, 1], [], []>} : vector<17x4xf32>, vector<4x17xf32>, vector<17x17xf32> -> vector<17x17xf32>
    %cst_20 = arith.constant 2.500000e-01 : f32
    %35 = vector.broadcast %cst_20 : f32 to vector<17x17xf32>
    %36 = arith.mulf %34, %35 : vector<17x17xf32>
    %cst_21 = arith.constant dense<0xFF800000> : vector<17xf32>
    %37 = vector.multi_reduction <maximumf>, %36, %cst_21 [1] : vector<17x17xf32> to vector<17xf32>
    %38 = vector.shape_cast %37 : vector<17xf32> to vector<17x1xf32>
    %39 = vector.broadcast %38 : vector<17x1xf32> to vector<17x17xf32>
    %40 = arith.subf %36, %39 : vector<17x17xf32>
    %41 = math.exp %40 : vector<17x17xf32>
    %cst_22 = arith.constant dense<0.000000e+00> : vector<17xf32>
    %42 = vector.multi_reduction <add>, %41, %cst_22 [1] : vector<17x17xf32> to vector<17xf32>
    %43 = vector.shape_cast %42 : vector<17xf32> to vector<17x1xf32>
    %44 = tpu.reciprocal %43 {approx = true} : vector<17x1xf32> -> vector<17x1xf32>
    %45 = vector.broadcast %44 : vector<17x1xf32> to vector<17x17xf32>
    %46 = arith.mulf %41, %45 : vector<17x17xf32>
    %cst_23 = arith.constant dense<0.000000e+00> : vector<17x4xf32>
    %47 = tpu.matmul %46, %32, %cst_23 {dimension_numbers = #tpu.dot_dimension_numbers<[1], [0], [0], [1], [0, 0, 1, 1], [], []>} : vector<17x17xf32>, vector<17x4xf32>, vector<17x4xf32> -> vector<17x4xf32>
    %c0_24 = arith.constant 0 : index
    %c0_25 = arith.constant 0 : index
    %48 = vector.load %arg20[%c0_24, %c0_25] : memref<17x32xf32, #tpu.memory_space<vmem>>, vector<17x4xf32>
    tpu.vector_store %arg20[%c0_24, %c0_25], %47 {strides = array<i32>} : memref<17x32xf32, #tpu.memory_space<vmem>>, vector<17x4xf32>,
    %c1 = arith.constant 1 : index
    %c0_26 = arith.constant 0 : index
    %c0_27 = arith.constant 0 : index
    %49 = vector.load %arg1[%c1, %c0_26, %c0_27] : memref<8x17x4xf32, #tpu.memory_space<vmem>>, vector<1x17x4xf32>
    %50 = vector.shape_cast %49 : vector<1x17x4xf32> to vector<17x4xf32>
    %c1_28 = arith.constant 1 : index
    %c0_29 = arith.constant 0 : index
    %c0_30 = arith.constant 0 : index
    %51 = vector.load %arg2[%c1_28, %c0_29, %c0_30] : memref<8x17x4xf32, #tpu.memory_space<vmem>>, vector<1x17x4xf32>
    %52 = vector.shape_cast %51 : vector<1x17x4xf32> to vector<17x4xf32>
    %c1_31 = arith.constant 1 : index
    %c0_32 = arith.constant 0 : index
    %c0_33 = arith.constant 0 : index
    %53 = vector.load %arg3[%c1_31, %c0_32, %c0_33] : memref<8x17x4xf32, #tpu.memory_space<vmem>>, vector<1x17x4xf32>
    %54 = vector.shape_cast %53 : vector<1x17x4xf32> to vector<17x4xf32>
    %55 = tpu.transpose %52, [1, 0] : vector<17x4xf32> -> vector<4x17xf32>
    %cst_34 = arith.constant dense<0.000000e+00> : vector<17x17xf32>
    %56 = tpu.matmul %50, %55, %cst_34 {dimension_numbers = #tpu.dot_dimension_numbers<[1], [0], [0], [1], [0, 0, 1, 1], [], []>} : vector<17x4xf32>, vector<4x17xf32>, vector<17x17xf32> -> vector<17x17xf32>
    %cst_35 = arith.constant 2.500000e-01 : f32
    %57 = vector.broadcast %cst_35 : f32 to vector<17x17xf32>
    %58 = arith.mulf %56, %57 : vector<17x17xf32>
    %cst_36 = arith.constant dense<0xFF800000> : vector<17xf32>
    %59 = vector.multi_reduction <maximumf>, %58, %cst_36 [1] : vector<17x17xf32> to vector<17xf32>
    %60 = vector.shape_cast %59 : vector<17xf32> to vector<17x1xf32>
    %61 = vector.broadcast %60 : vector<17x1xf32> to vector<17x17xf32>
    %62 = arith.subf %58, %61 : vector<17x17xf32>
    %63 = math.exp %62 : vector<17x17xf32>
    %cst_37 = arith.constant dense<0.000000e+00> : vector<17xf32>
    %64 = vector.multi_reduction <add>, %63, %cst_37 [1] : vector<17x17xf32> to vector<17xf32>
    %65 = vector.shape_cast %64 : vector<17xf32> to vector<17x1xf32>
    %66 = tpu.reciprocal %65 {approx = true} : vector<17x1xf32> -> vector<17x1xf32>
    %67 = vector.broadcast %66 : vector<17x1xf32> to vector<17x17xf32>
    %68 = arith.mulf %63, %67 : vector<17x17xf32>
    %cst_38 = arith.constant dense<0.000000e+00> : vector<17x4xf32>
    %69 = tpu.matmul %68, %54, %cst_38 {dimension_numbers = #tpu.dot_dimension_numbers<[1], [0], [0], [1], [0, 0, 1, 1], [], []>} : vector<17x17xf32>, vector<17x4xf32>, vector<17x4xf32> -> vector<17x4xf32>
    %c0_39 = arith.constant 0 : index
    %c4 = arith.constant 4 : index
    %70 = vector.load %arg20[%c0_39, %c4] : memref<17x32xf32, #tpu.memory_space<vmem>>, vector<17x4xf32>
    tpu.vector_store %arg20[%c0_39, %c4], %69 {strides = array<i32>} : memref<17x32xf32, #tpu.memory_space<vmem>>, vector<17x4xf32>,
    %c2 = arith.constant 2 : index
    %c0_40 = arith.constant 0 : index
    %c0_41 = arith.constant 0 : index
    %71 = vector.load %arg1[%c2, %c0_40, %c0_41] : memref<8x17x4xf32, #tpu.memory_space<vmem>>, vector<1x17x4xf32>
    %72 = vector.shape_cast %71 : vector<1x17x4xf32> to vector<17x4xf32>
    %c2_42 = arith.constant 2 : index
    %c0_43 = arith.constant 0 : index
    %c0_44 = arith.constant 0 : index
    %73 = vector.load %arg2[%c2_42, %c0_43, %c0_44] : memref<8x17x4xf32, #tpu.memory_space<vmem>>, vector<1x17x4xf32>
    %74 = vector.shape_cast %73 : vector<1x17x4xf32> to vector<17x4xf32>
    %c2_45 = arith.constant 2 : index
    %c0_46 = arith.constant 0 : index
    %c0_47 = arith.constant 0 : index
    %75 = vector.load %arg3[%c2_45, %c0_46, %c0_47] : memref<8x17x4xf32, #tpu.memory_space<vmem>>, vector<1x17x4xf32>
    %76 = vector.shape_cast %75 : vector<1x17x4xf32> to vector<17x4xf32>
    %77 = tpu.transpose %74, [1, 0] : vector<17x4xf32> -> vector<4x17xf32>
    %cst_48 = arith.constant dense<0.000000e+00> : vector<17x17xf32>
    %78 = tpu.matmul %72, %77, %cst_48 {dimension_numbers = #tpu.dot_dimension_numbers<[1], [0], [0], [1], [0, 0, 1, 1], [], []>} : vector<17x4xf32>, vector<4x17xf32>, vector<17x17xf32> -> vector<17x17xf32>
    %cst_49 = arith.constant 2.500000e-01 : f32
    %79 = vector.broadcast %cst_49 : f32 to vector<17x17xf32>
    %80 = arith.mulf %78, %79 : vector<17x17xf32>
    %cst_50 = arith.constant dense<0xFF800000> : vector<17xf32>
    %81 = vector.multi_reduction <maximumf>, %80, %cst_50 [1] : vector<17x17xf32> to vector<17xf32>
    %82 = vector.shape_cast %81 : vector<17xf32> to vector<17x1xf32>
    %83 = vector.broadcast %82 : vector<17x1xf32> to vector<17x17xf32>
    %84 = arith.subf %80, %83 : vector<17x17xf32>
    %85 = math.exp %84 : vector<17x17xf32>
    %cst_51 = arith.constant dense<0.000000e+00> : vector<17xf32>
    %86 = vector.multi_reduction <add>, %85, %cst_51 [1] : vector<17x17xf32> to vector<17xf32>
    %87 = vector.shape_cast %86 : vector<17xf32> to vector<17x1xf32>
    %88 = tpu.reciprocal %87 {approx = true} : vector<17x1xf32> -> vector<17x1xf32>
    %89 = vector.broadcast %88 : vector<17x1xf32> to vector<17x17xf32>
    %90 = arith.mulf %85, %89 : vector<17x17xf32>
    %cst_52 = arith.constant dense<0.000000e+00> : vector<17x4xf32>
    %91 = tpu.matmul %90, %76, %cst_52 {dimension_numbers = #tpu.dot_dimension_numbers<[1], [0], [0], [1], [0, 0, 1, 1], [], []>} : vector<17x17xf32>, vector<17x4xf32>, vector<17x4xf32> -> vector<17x4xf32>
    %c0_53 = arith.constant 0 : index
    %c8 = arith.constant 8 : index
    %92 = vector.load %arg20[%c0_53, %c8] : memref<17x32xf32, #tpu.memory_space<vmem>>, vector<17x4xf32>
    tpu.vector_store %arg20[%c0_53, %c8], %91 {strides = array<i32>} : memref<17x32xf32, #tpu.memory_space<vmem>>, vector<17x4xf32>,
    %c3 = arith.constant 3 : index
    %c0_54 = arith.constant 0 : index
    %c0_55 = arith.constant 0 : index
    %93 = vector.load %arg1[%c3, %c0_54, %c0_55] : memref<8x17x4xf32, #tpu.memory_space<vmem>>, vector<1x17x4xf32>
    %94 = vector.shape_cast %93 : vector<1x17x4xf32> to vector<17x4xf32>
    %c3_56 = arith.constant 3 : index
    %c0_57 = arith.constant 0 : index
    %c0_58 = arith.constant 0 : index
    %95 = vector.load %arg2[%c3_56, %c0_57, %c0_58] : memref<8x17x4xf32, #tpu.memory_space<vmem>>, vector<1x17x4xf32>
    %96 = vector.shape_cast %95 : vector<1x17x4xf32> to vector<17x4xf32>
    %c3_59 = arith.constant 3 : index
    %c0_60 = arith.constant 0 : index
    %c0_61 = arith.constant 0 : index
    %97 = vector.load %arg3[%c3_59, %c0_60, %c0_61] : memref<8x17x4xf32, #tpu.memory_space<vmem>>, vector<1x17x4xf32>
    %98 = vector.shape_cast %97 : vector<1x17x4xf32> to vector<17x4xf32>
    %99 = tpu.transpose %96, [1, 0] : vector<17x4xf32> -> vector<4x17xf32>
    %cst_62 = arith.constant dense<0.000000e+00> : vector<17x17xf32>
    %100 = tpu.matmul %94, %99, %cst_62 {dimension_numbers = #tpu.dot_dimension_numbers<[1], [0], [0], [1], [0, 0, 1, 1], [], []>} : vector<17x4xf32>, vector<4x17xf32>, vector<17x17xf32> -> vector<17x17xf32>
    %cst_63 = arith.constant 2.500000e-01 : f32
    %101 = vector.broadcast %cst_63 : f32 to vector<17x17xf32>
    %102 = arith.mulf %100, %101 : vector<17x17xf32>
    %cst_64 = arith.constant dense<0xFF800000> : vector<17xf32>
    %103 = vector.multi_reduction <maximumf>, %102, %cst_64 [1] : vector<17x17xf32> to vector<17xf32>
    %104 = vector.shape_cast %103 : vector<17xf32> to vector<17x1xf32>
    %105 = vector.broadcast %104 : vector<17x1xf32> to vector<17x17xf32>
    %106 = arith.subf %102, %105 : vector<17x17xf32>
    %107 = math.exp %106 : vector<17x17xf32>
    %cst_65 = arith.constant dense<0.000000e+00> : vector<17xf32>
    %108 = vector.multi_reduction <add>, %107, %cst_65 [1] : vector<17x17xf32> to vector<17xf32>
    %109 = vector.shape_cast %108 : vector<17xf32> to vector<17x1xf32>
    %110 = tpu.reciprocal %109 {approx = true} : vector<17x1xf32> -> vector<17x1xf32>
    %111 = vector.broadcast %110 : vector<17x1xf32> to vector<17x17xf32>
    %112 = arith.mulf %107, %111 : vector<17x17xf32>
    %cst_66 = arith.constant dense<0.000000e+00> : vector<17x4xf32>
    %113 = tpu.matmul %112, %98, %cst_66 {dimension_numbers = #tpu.dot_dimension_numbers<[1], [0], [0], [1], [0, 0, 1, 1], [], []>} : vector<17x17xf32>, vector<17x4xf32>, vector<17x4xf32> -> vector<17x4xf32>
    %c0_67 = arith.constant 0 : index
    %c12 = arith.constant 12 : index
    %114 = vector.load %arg20[%c0_67, %c12] : memref<17x32xf32, #tpu.memory_space<vmem>>, vector<17x4xf32>
    tpu.vector_store %arg20[%c0_67, %c12], %113 {strides = array<i32>} : memref<17x32xf32, #tpu.memory_space<vmem>>, vector<17x4xf32>,
    %c4_68 = arith.constant 4 : index
    %c0_69 = arith.constant 0 : index
    %c0_70 = arith.constant 0 : index
    %115 = vector.load %arg1[%c4_68, %c0_69, %c0_70] : memref<8x17x4xf32, #tpu.memory_space<vmem>>, vector<1x17x4xf32>
    %116 = vector.shape_cast %115 : vector<1x17x4xf32> to vector<17x4xf32>
    %c4_71 = arith.constant 4 : index
    %c0_72 = arith.constant 0 : index
    %c0_73 = arith.constant 0 : index
    %117 = vector.load %arg2[%c4_71, %c0_72, %c0_73] : memref<8x17x4xf32, #tpu.memory_space<vmem>>, vector<1x17x4xf32>
    %118 = vector.shape_cast %117 : vector<1x17x4xf32> to vector<17x4xf32>
    %c4_74 = arith.constant 4 : index
    %c0_75 = arith.constant 0 : index
    %c0_76 = arith.constant 0 : index
    %119 = vector.load %arg3[%c4_74, %c0_75, %c0_76] : memref<8x17x4xf32, #tpu.memory_space<vmem>>, vector<1x17x4xf32>
    %120 = vector.shape_cast %119 : vector<1x17x4xf32> to vector<17x4xf32>
    %121 = tpu.transpose %118, [1, 0] : vector<17x4xf32> -> vector<4x17xf32>
    %cst_77 = arith.constant dense<0.000000e+00> : vector<17x17xf32>
    %122 = tpu.matmul %116, %121, %cst_77 {dimension_numbers = #tpu.dot_dimension_numbers<[1], [0], [0], [1], [0, 0, 1, 1], [], []>} : vector<17x4xf32>, vector<4x17xf32>, vector<17x17xf32> -> vector<17x17xf32>
    %cst_78 = arith.constant 2.500000e-01 : f32
    %123 = vector.broadcast %cst_78 : f32 to vector<17x17xf32>
    %124 = arith.mulf %122, %123 : vector<17x17xf32>
    %cst_79 = arith.constant dense<0xFF800000> : vector<17xf32>
    %125 = vector.multi_reduction <maximumf>, %124, %cst_79 [1] : vector<17x17xf32> to vector<17xf32>
    %126 = vector.shape_cast %125 : vector<17xf32> to vector<17x1xf32>
    %127 = vector.broadcast %126 : vector<17x1xf32> to vector<17x17xf32>
    %128 = arith.subf %124, %127 : vector<17x17xf32>
    %129 = math.exp %128 : vector<17x17xf32>
    %cst_80 = arith.constant dense<0.000000e+00> : vector<17xf32>
    %130 = vector.multi_reduction <add>, %129, %cst_80 [1] : vector<17x17xf32> to vector<17xf32>
    %131 = vector.shape_cast %130 : vector<17xf32> to vector<17x1xf32>
    %132 = tpu.reciprocal %131 {approx = true} : vector<17x1xf32> -> vector<17x1xf32>
    %133 = vector.broadcast %132 : vector<17x1xf32> to vector<17x17xf32>
    %134 = arith.mulf %129, %133 : vector<17x17xf32>
    %cst_81 = arith.constant dense<0.000000e+00> : vector<17x4xf32>
    %135 = tpu.matmul %134, %120, %cst_81 {dimension_numbers = #tpu.dot_dimension_numbers<[1], [0], [0], [1], [0, 0, 1, 1], [], []>} : vector<17x17xf32>, vector<17x4xf32>, vector<17x4xf32> -> vector<17x4xf32>
    %c0_82 = arith.constant 0 : index
    %c16 = arith.constant 16 : index
    %136 = vector.load %arg20[%c0_82, %c16] : memref<17x32xf32, #tpu.memory_space<vmem>>, vector<17x4xf32>
    tpu.vector_store %arg20[%c0_82, %c16], %135 {strides = array<i32>} : memref<17x32xf32, #tpu.memory_space<vmem>>, vector<17x4xf32>,
    %c5 = arith.constant 5 : index
    %c0_83 = arith.constant 0 : index
    %c0_84 = arith.constant 0 : index
    %137 = vector.load %arg1[%c5, %c0_83, %c0_84] : memref<8x17x4xf32, #tpu.memory_space<vmem>>, vector<1x17x4xf32>
    %138 = vector.shape_cast %137 : vector<1x17x4xf32> to vector<17x4xf32>
    %c5_85 = arith.constant 5 : index
    %c0_86 = arith.constant 0 : index
    %c0_87 = arith.constant 0 : index
    %139 = vector.load %arg2[%c5_85, %c0_86, %c0_87] : memref<8x17x4xf32, #tpu.memory_space<vmem>>, vector<1x17x4xf32>
    %140 = vector.shape_cast %139 : vector<1x17x4xf32> to vector<17x4xf32>
    %c5_88 = arith.constant 5 : index
    %c0_89 = arith.constant 0 : index
    %c0_90 = arith.constant 0 : index
    %141 = vector.load %arg3[%c5_88, %c0_89, %c0_90] : memref<8x17x4xf32, #tpu.memory_space<vmem>>, vector<1x17x4xf32>
    %142 = vector.shape_cast %141 : vector<1x17x4xf32> to vector<17x4xf32>
    %143 = tpu.transpose %140, [1, 0] : vector<17x4xf32> -> vector<4x17xf32>
    %cst_91 = arith.constant dense<0.000000e+00> : vector<17x17xf32>
    %144 = tpu.matmul %138, %143, %cst_91 {dimension_numbers = #tpu.dot_dimension_numbers<[1], [0], [0], [1], [0, 0, 1, 1], [], []>} : vector<17x4xf32>, vector<4x17xf32>, vector<17x17xf32> -> vector<17x17xf32>
    %cst_92 = arith.constant 2.500000e-01 : f32
    %145 = vector.broadcast %cst_92 : f32 to vector<17x17xf32>
    %146 = arith.mulf %144, %145 : vector<17x17xf32>
    %cst_93 = arith.constant dense<0xFF800000> : vector<17xf32>
    %147 = vector.multi_reduction <maximumf>, %146, %cst_93 [1] : vector<17x17xf32> to vector<17xf32>
    %148 = vector.shape_cast %147 : vector<17xf32> to vector<17x1xf32>
    %149 = vector.broadcast %148 : vector<17x1xf32> to vector<17x17xf32>
    %150 = arith.subf %146, %149 : vector<17x17xf32>
    %151 = math.exp %150 : vector<17x17xf32>
    %cst_94 = arith.constant dense<0.000000e+00> : vector<17xf32>
    %152 = vector.multi_reduction <add>, %151, %cst_94 [1] : vector<17x17xf32> to vector<17xf32>
    %153 = vector.shape_cast %152 : vector<17xf32> to vector<17x1xf32>
    %154 = tpu.reciprocal %153 {approx = true} : vector<17x1xf32> -> vector<17x1xf32>
    %155 = vector.broadcast %154 : vector<17x1xf32> to vector<17x17xf32>
    %156 = arith.mulf %151, %155 : vector<17x17xf32>
    %cst_95 = arith.constant dense<0.000000e+00> : vector<17x4xf32>
    %157 = tpu.matmul %156, %142, %cst_95 {dimension_numbers = #tpu.dot_dimension_numbers<[1], [0], [0], [1], [0, 0, 1, 1], [], []>} : vector<17x17xf32>, vector<17x4xf32>, vector<17x4xf32> -> vector<17x4xf32>
    %c0_96 = arith.constant 0 : index
    %c20 = arith.constant 20 : index
    %158 = vector.load %arg20[%c0_96, %c20] : memref<17x32xf32, #tpu.memory_space<vmem>>, vector<17x4xf32>
    tpu.vector_store %arg20[%c0_96, %c20], %157 {strides = array<i32>} : memref<17x32xf32, #tpu.memory_space<vmem>>, vector<17x4xf32>,
    %c6 = arith.constant 6 : index
    %c0_97 = arith.constant 0 : index
    %c0_98 = arith.constant 0 : index
    %159 = vector.load %arg1[%c6, %c0_97, %c0_98] : memref<8x17x4xf32, #tpu.memory_space<vmem>>, vector<1x17x4xf32>
    %160 = vector.shape_cast %159 : vector<1x17x4xf32> to vector<17x4xf32>
    %c6_99 = arith.constant 6 : index
    %c0_100 = arith.constant 0 : index
    %c0_101 = arith.constant 0 : index
    %161 = vector.load %arg2[%c6_99, %c0_100, %c0_101] : memref<8x17x4xf32, #tpu.memory_space<vmem>>, vector<1x17x4xf32>
    %162 = vector.shape_cast %161 : vector<1x17x4xf32> to vector<17x4xf32>
    %c6_102 = arith.constant 6 : index
    %c0_103 = arith.constant 0 : index
    %c0_104 = arith.constant 0 : index
    %163 = vector.load %arg3[%c6_102, %c0_103, %c0_104] : memref<8x17x4xf32, #tpu.memory_space<vmem>>, vector<1x17x4xf32>
    %164 = vector.shape_cast %163 : vector<1x17x4xf32> to vector<17x4xf32>
    %165 = tpu.transpose %162, [1, 0] : vector<17x4xf32> -> vector<4x17xf32>
    %cst_105 = arith.constant dense<0.000000e+00> : vector<17x17xf32>
    %166 = tpu.matmul %160, %165, %cst_105 {dimension_numbers = #tpu.dot_dimension_numbers<[1], [0], [0], [1], [0, 0, 1, 1], [], []>} : vector<17x4xf32>, vector<4x17xf32>, vector<17x17xf32> -> vector<17x17xf32>
    %cst_106 = arith.constant 2.500000e-01 : f32
    %167 = vector.broadcast %cst_106 : f32 to vector<17x17xf32>
    %168 = arith.mulf %166, %167 : vector<17x17xf32>
    %cst_107 = arith.constant dense<0xFF800000> : vector<17xf32>
    %169 = vector.multi_reduction <maximumf>, %168, %cst_107 [1] : vector<17x17xf32> to vector<17xf32>
    %170 = vector.shape_cast %169 : vector<17xf32> to vector<17x1xf32>
    %171 = vector.broadcast %170 : vector<17x1xf32> to vector<17x17xf32>
    %172 = arith.subf %168, %171 : vector<17x17xf32>
    %173 = math.exp %172 : vector<17x17xf32>
    %cst_108 = arith.constant dense<0.000000e+00> : vector<17xf32>
    %174 = vector.multi_reduction <add>, %173, %cst_108 [1] : vector<17x17xf32> to vector<17xf32>
    %175 = vector.shape_cast %174 : vector<17xf32> to vector<17x1xf32>
    %176 = tpu.reciprocal %175 {approx = true} : vector<17x1xf32> -> vector<17x1xf32>
    %177 = vector.broadcast %176 : vector<17x1xf32> to vector<17x17xf32>
    %178 = arith.mulf %173, %177 : vector<17x17xf32>
    %cst_109 = arith.constant dense<0.000000e+00> : vector<17x4xf32>
    %179 = tpu.matmul %178, %164, %cst_109 {dimension_numbers = #tpu.dot_dimension_numbers<[1], [0], [0], [1], [0, 0, 1, 1], [], []>} : vector<17x17xf32>, vector<17x4xf32>, vector<17x4xf32> -> vector<17x4xf32>
    %c0_110 = arith.constant 0 : index
    %c24 = arith.constant 24 : index
    %180 = vector.load %arg20[%c0_110, %c24] : memref<17x32xf32, #tpu.memory_space<vmem>>, vector<17x4xf32>
    tpu.vector_store %arg20[%c0_110, %c24], %179 {strides = array<i32>} : memref<17x32xf32, #tpu.memory_space<vmem>>, vector<17x4xf32>,
    %c7 = arith.constant 7 : index
    %c0_111 = arith.constant 0 : index
    %c0_112 = arith.constant 0 : index
    %181 = vector.load %arg1[%c7, %c0_111, %c0_112] : memref<8x17x4xf32, #tpu.memory_space<vmem>>, vector<1x17x4xf32>
    %182 = vector.shape_cast %181 : vector<1x17x4xf32> to vector<17x4xf32>
    %c7_113 = arith.constant 7 : index
    %c0_114 = arith.constant 0 : index
    %c0_115 = arith.constant 0 : index
    %183 = vector.load %arg2[%c7_113, %c0_114, %c0_115] : memref<8x17x4xf32, #tpu.memory_space<vmem>>, vector<1x17x4xf32>
    %184 = vector.shape_cast %183 : vector<1x17x4xf32> to vector<17x4xf32>
    %c7_116 = arith.constant 7 : index
    %c0_117 = arith.constant 0 : index
    %c0_118 = arith.constant 0 : index
    %185 = vector.load %arg3[%c7_116, %c0_117, %c0_118] : memref<8x17x4xf32, #tpu.memory_space<vmem>>, vector<1x17x4xf32>
    %186 = vector.shape_cast %185 : vector<1x17x4xf32> to vector<17x4xf32>
    %187 = tpu.transpose %184, [1, 0] : vector<17x4xf32> -> vector<4x17xf32>
    %cst_119 = arith.constant dense<0.000000e+00> : vector<17x17xf32>
    %188 = tpu.matmul %182, %187, %cst_119 {dimension_numbers = #tpu.dot_dimension_numbers<[1], [0], [0], [1], [0, 0, 1, 1], [], []>} : vector<17x4xf32>, vector<4x17xf32>, vector<17x17xf32> -> vector<17x17xf32>
    %cst_120 = arith.constant 2.500000e-01 : f32
    %189 = vector.broadcast %cst_120 : f32 to vector<17x17xf32>
    %190 = arith.mulf %188, %189 : vector<17x17xf32>
    %cst_121 = arith.constant dense<0xFF800000> : vector<17xf32>
    %191 = vector.multi_reduction <maximumf>, %190, %cst_121 [1] : vector<17x17xf32> to vector<17xf32>
    %192 = vector.shape_cast %191 : vector<17xf32> to vector<17x1xf32>
    %193 = vector.broadcast %192 : vector<17x1xf32> to vector<17x17xf32>
    %194 = arith.subf %190, %193 : vector<17x17xf32>
    %195 = math.exp %194 : vector<17x17xf32>
    %cst_122 = arith.constant dense<0.000000e+00> : vector<17xf32>
    %196 = vector.multi_reduction <add>, %195, %cst_122 [1] : vector<17x17xf32> to vector<17xf32>
    %197 = vector.shape_cast %196 : vector<17xf32> to vector<17x1xf32>
    %198 = tpu.reciprocal %197 {approx = true} : vector<17x1xf32> -> vector<17x1xf32>
    %199 = vector.broadcast %198 : vector<17x1xf32> to vector<17x17xf32>
    %200 = arith.mulf %195, %199 : vector<17x17xf32>
    %cst_123 = arith.constant dense<0.000000e+00> : vector<17x4xf32>
    %201 = tpu.matmul %200, %186, %cst_123 {dimension_numbers = #tpu.dot_dimension_numbers<[1], [0], [0], [1], [0, 0, 1, 1], [], []>} : vector<17x17xf32>, vector<17x4xf32>, vector<17x4xf32> -> vector<17x4xf32>
    %c0_124 = arith.constant 0 : index
    %c28 = arith.constant 28 : index
    %202 = vector.load %arg20[%c0_124, %c28] : memref<17x32xf32, #tpu.memory_space<vmem>>, vector<17x4xf32>
    tpu.vector_store %arg20[%c0_124, %c28], %201 {strides = array<i32>} : memref<17x32xf32, #tpu.memory_space<vmem>>, vector<17x4xf32>,
    %c0_125 = arith.constant 0 : index
    %c0_126 = arith.constant 0 : index
    %203 = vector.load %arg20[%c0_125, %c0_126] : memref<17x32xf32, #tpu.memory_space<vmem>>, vector<17x32xf32>
    %c0_127 = arith.constant 0 : index
    %c0_128 = arith.constant 0 : index
    %204 = vector.load %arg4[%c0_127, %c0_128] : memref<32x32xf32, #tpu.memory_space<vmem>>, vector<32x32xf32>
    %cst_129 = arith.constant dense<0.000000e+00> : vector<17x32xf32>
    %205 = tpu.matmul %203, %204, %cst_129 {dimension_numbers = #tpu.dot_dimension_numbers<[1], [0], [0], [1], [0, 0, 1, 1], [], []>} : vector<17x32xf32>, vector<32x32xf32>, vector<17x32xf32> -> vector<17x32xf32>
    %c0_130 = arith.constant 0 : index
    %c0_131 = arith.constant 0 : index
    %206 = vector.load %arg5[%c0_130, %c0_131] : memref<1x32xf32, #tpu.memory_space<vmem>>, vector<1x32xf32>
    %207 = vector.broadcast %206 : vector<1x32xf32> to vector<17x32xf32>
    %208 = arith.addf %205, %207 : vector<17x32xf32>
    %209 = arith.addf %208, %26 : vector<17x32xf32>
    %cst_132 = arith.constant dense<0.000000e+00> : vector<17xf32>
    %210 = vector.multi_reduction <add>, %209, %cst_132 [1] : vector<17x32xf32> to vector<17xf32>
    %211 = vector.shape_cast %210 : vector<17xf32> to vector<17x1xf32>
    %cst_133 = arith.constant 3.125000e-02 : f32
    %212 = vector.broadcast %cst_133 : f32 to vector<17x1xf32>
    %213 = arith.mulf %211, %212 : vector<17x1xf32>
    %214 = arith.mulf %209, %209 : vector<17x32xf32>
    %cst_134 = arith.constant dense<0.000000e+00> : vector<17xf32>
    %215 = vector.multi_reduction <add>, %214, %cst_134 [1] : vector<17x32xf32> to vector<17xf32>
    %216 = vector.shape_cast %215 : vector<17xf32> to vector<17x1xf32>
    %cst_135 = arith.constant 3.125000e-02 : f32
    %217 = vector.broadcast %cst_135 : f32 to vector<17x1xf32>
    %218 = arith.mulf %216, %217 : vector<17x1xf32>
    %219 = arith.mulf %213, %213 : vector<17x1xf32>
    %220 = arith.subf %218, %219 : vector<17x1xf32>
    %cst_136 = arith.constant 0.000000e+00 : f32
    %221 = vector.broadcast %cst_136 : f32 to vector<17x1xf32>
    %222 = arith.maximumf %220, %221 : vector<17x1xf32>
    %223 = vector.broadcast %213 : vector<17x1xf32> to vector<17x32xf32>
    %224 = arith.subf %209, %223 : vector<17x32xf32>
    %cst_137 = arith.constant 9.99999974E-6 : f32
    %225 = vector.broadcast %cst_137 : f32 to vector<17x1xf32>
    %226 = arith.addf %222, %225 : vector<17x1xf32>
    %227 = math.rsqrt %226 : vector<17x1xf32>
    %228 = vector.broadcast %227 : vector<17x1xf32> to vector<17x32xf32>
    %229 = arith.mulf %224, %228 : vector<17x32xf32>
    %230 = vector.broadcast %1 : vector<17x1xf32> to vector<17x32xf32>
    %231 = arith.mulf %229, %230 : vector<17x32xf32>
    %232 = vector.broadcast %2 : vector<17x1xf32> to vector<17x32xf32>
    %233 = arith.addf %231, %232 : vector<17x32xf32>
    %c0_138 = arith.constant 0 : index
    %c0_139 = arith.constant 0 : index
    %234 = vector.load %arg8[%c0_138, %c0_139] : memref<32x32xf32, #tpu.memory_space<vmem>>, vector<32x32xf32>
    %cst_140 = arith.constant dense<0.000000e+00> : vector<17x32xf32>
    %235 = tpu.matmul %233, %234, %cst_140 {dimension_numbers = #tpu.dot_dimension_numbers<[1], [0], [0], [1], [0, 0, 1, 1], [], []>} : vector<17x32xf32>, vector<32x32xf32>, vector<17x32xf32> -> vector<17x32xf32>
    %c0_141 = arith.constant 0 : index
    %c0_142 = arith.constant 0 : index
    %236 = vector.load %arg9[%c0_141, %c0_142] : memref<1x32xf32, #tpu.memory_space<vmem>>, vector<1x32xf32>
    %237 = vector.broadcast %236 : vector<1x32xf32> to vector<17x32xf32>
    %238 = arith.addf %235, %237 : vector<17x32xf32>
    %239 = arith.addf %238, %209 : vector<17x32xf32>
    %c0_143 = arith.constant 0 : index
    %c0_144 = arith.constant 0 : index
    %240 = vector.load %arg16[%c0_143, %c0_144] : memref<17x32xf32, #tpu.memory_space<vmem>>, vector<17x32xf32>
    tpu.vector_store %arg16[%c0_143, %c0_144], %239 {strides = array<i32>} : memref<17x32xf32, #tpu.memory_space<vmem>>, vector<17x32xf32>,
    %241 = tpu.transpose %239, [1, 0] : vector<17x32xf32> -> vector<32x17xf32>
    %c0_145 = arith.constant 0 : index
    %c0_146 = arith.constant 0 : index
    %242 = vector.load %arg10[%c0_145, %c0_146] : memref<32x32xf32, #tpu.memory_space<vmem>>, vector<32x32xf32>
    %cst_147 = arith.constant dense<0.000000e+00> : vector<32x17xf32>
    %243 = tpu.matmul %242, %241, %cst_147 {dimension_numbers = #tpu.dot_dimension_numbers<[1], [0], [0], [1], [0, 0, 1, 1], [], []>} : vector<32x32xf32>, vector<32x17xf32>, vector<32x17xf32> -> vector<32x17xf32>
    %c0_148 = arith.constant 0 : index
    %c0_149 = arith.constant 0 : index
    %244 = vector.load %arg11[%c0_148, %c0_149] : memref<32x1xf32, #tpu.memory_space<vmem>>, vector<32x1xf32>
    %245 = vector.broadcast %244 : vector<32x1xf32> to vector<32x17xf32>
    %246 = arith.addf %243, %245 : vector<32x17xf32>
    %c0_150 = arith.constant 0 : index
    %c0_151 = arith.constant 0 : index
    %247 = vector.load %arg14[%c0_150, %c0_151] : memref<32x32xf32, #tpu.memory_space<vmem>>, vector<32x32xf32>
    %cst_152 = arith.constant dense<0.000000e+00> : vector<32x17xf32>
    %248 = tpu.matmul %247, %241, %cst_152 {dimension_numbers = #tpu.dot_dimension_numbers<[1], [0], [0], [1], [0, 0, 1, 1], [], []>} : vector<32x32xf32>, vector<32x17xf32>, vector<32x17xf32> -> vector<32x17xf32>
    %c0_153 = arith.constant 0 : index
    %c0_154 = arith.constant 0 : index
    %249 = vector.load %arg15[%c0_153, %c0_154] : memref<32x1xf32, #tpu.memory_space<vmem>>, vector<32x1xf32>
    %250 = vector.broadcast %249 : vector<32x1xf32> to vector<32x17xf32>
    %251 = arith.addf %248, %250 : vector<32x17xf32>
    %c0_155 = arith.constant 0 : index
    %c0_156 = arith.constant 0 : index
    %252 = vector.load %arg12[%c0_155, %c0_156] : memref<32x32xf32, #tpu.memory_space<vmem>>, vector<32x32xf32>
    %cst_157 = arith.constant dense<0.000000e+00> : vector<17x32xf32>
    %253 = tpu.matmul %239, %252, %cst_157 {dimension_numbers = #tpu.dot_dimension_numbers<[1], [0], [0], [1], [0, 0, 1, 1], [], []>} : vector<17x32xf32>, vector<32x32xf32>, vector<17x32xf32> -> vector<17x32xf32>
    %c0_158 = arith.constant 0 : index
    %c0_159 = arith.constant 0 : index
    %254 = vector.load %arg13[%c0_158, %c0_159] : memref<1x32xf32, #tpu.memory_space<vmem>>, vector<1x32xf32>
    %255 = vector.broadcast %254 : vector<1x32xf32> to vector<17x32xf32>
    %256 = arith.addf %253, %255 : vector<17x32xf32>
    %c0_160 = arith.constant 0 : index
    %c0_161 = arith.constant 0 : index
    %257 = vector.load %arg17[%c0_160, %c0_161] : memref<32x17xf32, #tpu.memory_space<vmem>>, vector<32x17xf32>
    tpu.vector_store %arg17[%c0_160, %c0_161], %246 {strides = array<i32>} : memref<32x17xf32, #tpu.memory_space<vmem>>, vector<32x17xf32>,
    %c0_162 = arith.constant 0 : index
    %c0_163 = arith.constant 0 : index
    %258 = vector.load %arg18[%c0_162, %c0_163] : memref<17x32xf32, #tpu.memory_space<vmem>>, vector<17x32xf32>
    tpu.vector_store %arg18[%c0_162, %c0_163], %256 {strides = array<i32>} : memref<17x32xf32, #tpu.memory_space<vmem>>, vector<17x32xf32>,
    %c0_164 = arith.constant 0 : index
    %c0_165 = arith.constant 0 : index
    %259 = vector.load %arg19[%c0_164, %c0_165] : memref<32x17xf32, #tpu.memory_space<vmem>>, vector<32x17xf32>
    tpu.vector_store %arg19[%c0_164, %c0_165], %251 {strides = array<i32>} : memref<32x17xf32, #tpu.memory_space<vmem>>, vector<32x17xf32>,
    return
  }
}

module attributes {stable_mosaic.version = 11 : i64} {
  func.func @_encoder_head_kernel(%arg0: memref<17x32xf32, #tpu.memory_space<vmem>>, %arg1: memref<8x17x4xf32, #tpu.memory_space<vmem>>, %arg2: memref<8x17x4xf32, #tpu.memory_space<vmem>>, %arg3: memref<8x17x4xf32, #tpu.memory_space<vmem>>, %arg4: memref<32x32xf32, #tpu.memory_space<vmem>>, %arg5: memref<1x32xf32, #tpu.memory_space<vmem>>, %arg6: memref<17x1xf32, #tpu.memory_space<vmem>>, %arg7: memref<17x1xf32, #tpu.memory_space<vmem>>, %arg8: memref<32x32xf32, #tpu.memory_space<vmem>>, %arg9: memref<1x32xf32, #tpu.memory_space<vmem>>, %arg10: memref<32x10xf32, #tpu.memory_space<vmem>>, %arg11: memref<1x10xf32, #tpu.memory_space<vmem>>, %arg12: memref<17x32xf32, #tpu.memory_space<vmem>>) attributes {dimension_semantics = [], scalar_prefetch = 0 : i64, scratch_operands = 1 : i64, tpu.core_type = #tpu.core_type<tc>} {
    %c0 = arith.constant 0 : index
    %c0_0 = arith.constant 0 : index
    %0 = vector.load %arg0[%c0, %c0_0] : memref<17x32xf32, #tpu.memory_space<vmem>>, vector<17x32xf32>
    %c0_1 = arith.constant 0 : index
    %c0_2 = arith.constant 0 : index
    %1 = vector.load %arg6[%c0_1, %c0_2] : memref<17x1xf32, #tpu.memory_space<vmem>>, vector<17x1xf32>
    %c0_3 = arith.constant 0 : index
    %c0_4 = arith.constant 0 : index
    %2 = vector.load %arg7[%c0_3, %c0_4] : memref<17x1xf32, #tpu.memory_space<vmem>>, vector<17x1xf32>
    %cst = arith.constant dense<0.000000e+00> : vector<17xf32>
    %3 = vector.multi_reduction <add>, %0, %cst [1] : vector<17x32xf32> to vector<17xf32>
    %4 = vector.shape_cast %3 : vector<17xf32> to vector<17x1xf32>
    %cst_5 = arith.constant 3.125000e-02 : f32
    %5 = vector.broadcast %cst_5 : f32 to vector<17x1xf32>
    %6 = arith.mulf %4, %5 : vector<17x1xf32>
    %7 = arith.mulf %0, %0 : vector<17x32xf32>
    %cst_6 = arith.constant dense<0.000000e+00> : vector<17xf32>
    %8 = vector.multi_reduction <add>, %7, %cst_6 [1] : vector<17x32xf32> to vector<17xf32>
    %9 = vector.shape_cast %8 : vector<17xf32> to vector<17x1xf32>
    %cst_7 = arith.constant 3.125000e-02 : f32
    %10 = vector.broadcast %cst_7 : f32 to vector<17x1xf32>
    %11 = arith.mulf %9, %10 : vector<17x1xf32>
    %12 = arith.mulf %6, %6 : vector<17x1xf32>
    %13 = arith.subf %11, %12 : vector<17x1xf32>
    %cst_8 = arith.constant 0.000000e+00 : f32
    %14 = vector.broadcast %cst_8 : f32 to vector<17x1xf32>
    %15 = arith.maximumf %13, %14 : vector<17x1xf32>
    %16 = vector.broadcast %6 : vector<17x1xf32> to vector<17x32xf32>
    %17 = arith.subf %0, %16 : vector<17x32xf32>
    %cst_9 = arith.constant 9.99999974E-6 : f32
    %18 = vector.broadcast %cst_9 : f32 to vector<17x1xf32>
    %19 = arith.addf %15, %18 : vector<17x1xf32>
    %20 = math.rsqrt %19 : vector<17x1xf32>
    %21 = vector.broadcast %20 : vector<17x1xf32> to vector<17x32xf32>
    %22 = arith.mulf %17, %21 : vector<17x32xf32>
    %23 = vector.broadcast %1 : vector<17x1xf32> to vector<17x32xf32>
    %24 = arith.mulf %22, %23 : vector<17x32xf32>
    %25 = vector.broadcast %2 : vector<17x1xf32> to vector<17x32xf32>
    %26 = arith.addf %24, %25 : vector<17x32xf32>
    %c0_10 = arith.constant 0 : index
    %c0_11 = arith.constant 0 : index
    %c0_12 = arith.constant 0 : index
    %27 = vector.load %arg1[%c0_10, %c0_11, %c0_12] : memref<8x17x4xf32, #tpu.memory_space<vmem>>, vector<1x17x4xf32>
    %28 = vector.shape_cast %27 : vector<1x17x4xf32> to vector<17x4xf32>
    %c0_13 = arith.constant 0 : index
    %c0_14 = arith.constant 0 : index
    %c0_15 = arith.constant 0 : index
    %29 = vector.load %arg2[%c0_13, %c0_14, %c0_15] : memref<8x17x4xf32, #tpu.memory_space<vmem>>, vector<1x17x4xf32>
    %30 = vector.shape_cast %29 : vector<1x17x4xf32> to vector<17x4xf32>
    %c0_16 = arith.constant 0 : index
    %c0_17 = arith.constant 0 : index
    %c0_18 = arith.constant 0 : index
    %31 = vector.load %arg3[%c0_16, %c0_17, %c0_18] : memref<8x17x4xf32, #tpu.memory_space<vmem>>, vector<1x17x4xf32>
    %32 = vector.shape_cast %31 : vector<1x17x4xf32> to vector<17x4xf32>
    %33 = tpu.transpose %30, [1, 0] : vector<17x4xf32> -> vector<4x17xf32>
    %cst_19 = arith.constant dense<0.000000e+00> : vector<17x17xf32>
    %34 = tpu.matmul %28, %33, %cst_19 {dimension_numbers = #tpu.dot_dimension_numbers<[1], [0], [0], [1], [0, 0, 1, 1], [], []>} : vector<17x4xf32>, vector<4x17xf32>, vector<17x17xf32> -> vector<17x17xf32>
    %cst_20 = arith.constant 2.500000e-01 : f32
    %35 = vector.broadcast %cst_20 : f32 to vector<17x17xf32>
    %36 = arith.mulf %34, %35 : vector<17x17xf32>
    %cst_21 = arith.constant dense<0xFF800000> : vector<17xf32>
    %37 = vector.multi_reduction <maximumf>, %36, %cst_21 [1] : vector<17x17xf32> to vector<17xf32>
    %38 = vector.shape_cast %37 : vector<17xf32> to vector<17x1xf32>
    %39 = vector.broadcast %38 : vector<17x1xf32> to vector<17x17xf32>
    %40 = arith.subf %36, %39 : vector<17x17xf32>
    %41 = math.exp %40 : vector<17x17xf32>
    %cst_22 = arith.constant dense<0.000000e+00> : vector<17xf32>
    %42 = vector.multi_reduction <add>, %41, %cst_22 [1] : vector<17x17xf32> to vector<17xf32>
    %43 = vector.shape_cast %42 : vector<17xf32> to vector<17x1xf32>
    %44 = tpu.reciprocal %43 {approx = true} : vector<17x1xf32> -> vector<17x1xf32>
    %45 = vector.broadcast %44 : vector<17x1xf32> to vector<17x17xf32>
    %46 = arith.mulf %41, %45 : vector<17x17xf32>
    %cst_23 = arith.constant dense<0.000000e+00> : vector<17x4xf32>
    %47 = tpu.matmul %46, %32, %cst_23 {dimension_numbers = #tpu.dot_dimension_numbers<[1], [0], [0], [1], [0, 0, 1, 1], [], []>} : vector<17x17xf32>, vector<17x4xf32>, vector<17x4xf32> -> vector<17x4xf32>
    %c0_24 = arith.constant 0 : index
    %c0_25 = arith.constant 0 : index
    %48 = vector.load %arg12[%c0_24, %c0_25] : memref<17x32xf32, #tpu.memory_space<vmem>>, vector<17x4xf32>
    tpu.vector_store %arg12[%c0_24, %c0_25], %47 {strides = array<i32>} : memref<17x32xf32, #tpu.memory_space<vmem>>, vector<17x4xf32>,
    %c1 = arith.constant 1 : index
    %c0_26 = arith.constant 0 : index
    %c0_27 = arith.constant 0 : index
    %49 = vector.load %arg1[%c1, %c0_26, %c0_27] : memref<8x17x4xf32, #tpu.memory_space<vmem>>, vector<1x17x4xf32>
    %50 = vector.shape_cast %49 : vector<1x17x4xf32> to vector<17x4xf32>
    %c1_28 = arith.constant 1 : index
    %c0_29 = arith.constant 0 : index
    %c0_30 = arith.constant 0 : index
    %51 = vector.load %arg2[%c1_28, %c0_29, %c0_30] : memref<8x17x4xf32, #tpu.memory_space<vmem>>, vector<1x17x4xf32>
    %52 = vector.shape_cast %51 : vector<1x17x4xf32> to vector<17x4xf32>
    %c1_31 = arith.constant 1 : index
    %c0_32 = arith.constant 0 : index
    %c0_33 = arith.constant 0 : index
    %53 = vector.load %arg3[%c1_31, %c0_32, %c0_33] : memref<8x17x4xf32, #tpu.memory_space<vmem>>, vector<1x17x4xf32>
    %54 = vector.shape_cast %53 : vector<1x17x4xf32> to vector<17x4xf32>
    %55 = tpu.transpose %52, [1, 0] : vector<17x4xf32> -> vector<4x17xf32>
    %cst_34 = arith.constant dense<0.000000e+00> : vector<17x17xf32>
    %56 = tpu.matmul %50, %55, %cst_34 {dimension_numbers = #tpu.dot_dimension_numbers<[1], [0], [0], [1], [0, 0, 1, 1], [], []>} : vector<17x4xf32>, vector<4x17xf32>, vector<17x17xf32> -> vector<17x17xf32>
    %cst_35 = arith.constant 2.500000e-01 : f32
    %57 = vector.broadcast %cst_35 : f32 to vector<17x17xf32>
    %58 = arith.mulf %56, %57 : vector<17x17xf32>
    %cst_36 = arith.constant dense<0xFF800000> : vector<17xf32>
    %59 = vector.multi_reduction <maximumf>, %58, %cst_36 [1] : vector<17x17xf32> to vector<17xf32>
    %60 = vector.shape_cast %59 : vector<17xf32> to vector<17x1xf32>
    %61 = vector.broadcast %60 : vector<17x1xf32> to vector<17x17xf32>
    %62 = arith.subf %58, %61 : vector<17x17xf32>
    %63 = math.exp %62 : vector<17x17xf32>
    %cst_37 = arith.constant dense<0.000000e+00> : vector<17xf32>
    %64 = vector.multi_reduction <add>, %63, %cst_37 [1] : vector<17x17xf32> to vector<17xf32>
    %65 = vector.shape_cast %64 : vector<17xf32> to vector<17x1xf32>
    %66 = tpu.reciprocal %65 {approx = true} : vector<17x1xf32> -> vector<17x1xf32>
    %67 = vector.broadcast %66 : vector<17x1xf32> to vector<17x17xf32>
    %68 = arith.mulf %63, %67 : vector<17x17xf32>
    %cst_38 = arith.constant dense<0.000000e+00> : vector<17x4xf32>
    %69 = tpu.matmul %68, %54, %cst_38 {dimension_numbers = #tpu.dot_dimension_numbers<[1], [0], [0], [1], [0, 0, 1, 1], [], []>} : vector<17x17xf32>, vector<17x4xf32>, vector<17x4xf32> -> vector<17x4xf32>
    %c0_39 = arith.constant 0 : index
    %c4 = arith.constant 4 : index
    %70 = vector.load %arg12[%c0_39, %c4] : memref<17x32xf32, #tpu.memory_space<vmem>>, vector<17x4xf32>
    tpu.vector_store %arg12[%c0_39, %c4], %69 {strides = array<i32>} : memref<17x32xf32, #tpu.memory_space<vmem>>, vector<17x4xf32>,
    %c2 = arith.constant 2 : index
    %c0_40 = arith.constant 0 : index
    %c0_41 = arith.constant 0 : index
    %71 = vector.load %arg1[%c2, %c0_40, %c0_41] : memref<8x17x4xf32, #tpu.memory_space<vmem>>, vector<1x17x4xf32>
    %72 = vector.shape_cast %71 : vector<1x17x4xf32> to vector<17x4xf32>
    %c2_42 = arith.constant 2 : index
    %c0_43 = arith.constant 0 : index
    %c0_44 = arith.constant 0 : index
    %73 = vector.load %arg2[%c2_42, %c0_43, %c0_44] : memref<8x17x4xf32, #tpu.memory_space<vmem>>, vector<1x17x4xf32>
    %74 = vector.shape_cast %73 : vector<1x17x4xf32> to vector<17x4xf32>
    %c2_45 = arith.constant 2 : index
    %c0_46 = arith.constant 0 : index
    %c0_47 = arith.constant 0 : index
    %75 = vector.load %arg3[%c2_45, %c0_46, %c0_47] : memref<8x17x4xf32, #tpu.memory_space<vmem>>, vector<1x17x4xf32>
    %76 = vector.shape_cast %75 : vector<1x17x4xf32> to vector<17x4xf32>
    %77 = tpu.transpose %74, [1, 0] : vector<17x4xf32> -> vector<4x17xf32>
    %cst_48 = arith.constant dense<0.000000e+00> : vector<17x17xf32>
    %78 = tpu.matmul %72, %77, %cst_48 {dimension_numbers = #tpu.dot_dimension_numbers<[1], [0], [0], [1], [0, 0, 1, 1], [], []>} : vector<17x4xf32>, vector<4x17xf32>, vector<17x17xf32> -> vector<17x17xf32>
    %cst_49 = arith.constant 2.500000e-01 : f32
    %79 = vector.broadcast %cst_49 : f32 to vector<17x17xf32>
    %80 = arith.mulf %78, %79 : vector<17x17xf32>
    %cst_50 = arith.constant dense<0xFF800000> : vector<17xf32>
    %81 = vector.multi_reduction <maximumf>, %80, %cst_50 [1] : vector<17x17xf32> to vector<17xf32>
    %82 = vector.shape_cast %81 : vector<17xf32> to vector<17x1xf32>
    %83 = vector.broadcast %82 : vector<17x1xf32> to vector<17x17xf32>
    %84 = arith.subf %80, %83 : vector<17x17xf32>
    %85 = math.exp %84 : vector<17x17xf32>
    %cst_51 = arith.constant dense<0.000000e+00> : vector<17xf32>
    %86 = vector.multi_reduction <add>, %85, %cst_51 [1] : vector<17x17xf32> to vector<17xf32>
    %87 = vector.shape_cast %86 : vector<17xf32> to vector<17x1xf32>
    %88 = tpu.reciprocal %87 {approx = true} : vector<17x1xf32> -> vector<17x1xf32>
    %89 = vector.broadcast %88 : vector<17x1xf32> to vector<17x17xf32>
    %90 = arith.mulf %85, %89 : vector<17x17xf32>
    %cst_52 = arith.constant dense<0.000000e+00> : vector<17x4xf32>
    %91 = tpu.matmul %90, %76, %cst_52 {dimension_numbers = #tpu.dot_dimension_numbers<[1], [0], [0], [1], [0, 0, 1, 1], [], []>} : vector<17x17xf32>, vector<17x4xf32>, vector<17x4xf32> -> vector<17x4xf32>
    %c0_53 = arith.constant 0 : index
    %c8 = arith.constant 8 : index
    %92 = vector.load %arg12[%c0_53, %c8] : memref<17x32xf32, #tpu.memory_space<vmem>>, vector<17x4xf32>
    tpu.vector_store %arg12[%c0_53, %c8], %91 {strides = array<i32>} : memref<17x32xf32, #tpu.memory_space<vmem>>, vector<17x4xf32>,
    %c3 = arith.constant 3 : index
    %c0_54 = arith.constant 0 : index
    %c0_55 = arith.constant 0 : index
    %93 = vector.load %arg1[%c3, %c0_54, %c0_55] : memref<8x17x4xf32, #tpu.memory_space<vmem>>, vector<1x17x4xf32>
    %94 = vector.shape_cast %93 : vector<1x17x4xf32> to vector<17x4xf32>
    %c3_56 = arith.constant 3 : index
    %c0_57 = arith.constant 0 : index
    %c0_58 = arith.constant 0 : index
    %95 = vector.load %arg2[%c3_56, %c0_57, %c0_58] : memref<8x17x4xf32, #tpu.memory_space<vmem>>, vector<1x17x4xf32>
    %96 = vector.shape_cast %95 : vector<1x17x4xf32> to vector<17x4xf32>
    %c3_59 = arith.constant 3 : index
    %c0_60 = arith.constant 0 : index
    %c0_61 = arith.constant 0 : index
    %97 = vector.load %arg3[%c3_59, %c0_60, %c0_61] : memref<8x17x4xf32, #tpu.memory_space<vmem>>, vector<1x17x4xf32>
    %98 = vector.shape_cast %97 : vector<1x17x4xf32> to vector<17x4xf32>
    %99 = tpu.transpose %96, [1, 0] : vector<17x4xf32> -> vector<4x17xf32>
    %cst_62 = arith.constant dense<0.000000e+00> : vector<17x17xf32>
    %100 = tpu.matmul %94, %99, %cst_62 {dimension_numbers = #tpu.dot_dimension_numbers<[1], [0], [0], [1], [0, 0, 1, 1], [], []>} : vector<17x4xf32>, vector<4x17xf32>, vector<17x17xf32> -> vector<17x17xf32>
    %cst_63 = arith.constant 2.500000e-01 : f32
    %101 = vector.broadcast %cst_63 : f32 to vector<17x17xf32>
    %102 = arith.mulf %100, %101 : vector<17x17xf32>
    %cst_64 = arith.constant dense<0xFF800000> : vector<17xf32>
    %103 = vector.multi_reduction <maximumf>, %102, %cst_64 [1] : vector<17x17xf32> to vector<17xf32>
    %104 = vector.shape_cast %103 : vector<17xf32> to vector<17x1xf32>
    %105 = vector.broadcast %104 : vector<17x1xf32> to vector<17x17xf32>
    %106 = arith.subf %102, %105 : vector<17x17xf32>
    %107 = math.exp %106 : vector<17x17xf32>
    %cst_65 = arith.constant dense<0.000000e+00> : vector<17xf32>
    %108 = vector.multi_reduction <add>, %107, %cst_65 [1] : vector<17x17xf32> to vector<17xf32>
    %109 = vector.shape_cast %108 : vector<17xf32> to vector<17x1xf32>
    %110 = tpu.reciprocal %109 {approx = true} : vector<17x1xf32> -> vector<17x1xf32>
    %111 = vector.broadcast %110 : vector<17x1xf32> to vector<17x17xf32>
    %112 = arith.mulf %107, %111 : vector<17x17xf32>
    %cst_66 = arith.constant dense<0.000000e+00> : vector<17x4xf32>
    %113 = tpu.matmul %112, %98, %cst_66 {dimension_numbers = #tpu.dot_dimension_numbers<[1], [0], [0], [1], [0, 0, 1, 1], [], []>} : vector<17x17xf32>, vector<17x4xf32>, vector<17x4xf32> -> vector<17x4xf32>
    %c0_67 = arith.constant 0 : index
    %c12 = arith.constant 12 : index
    %114 = vector.load %arg12[%c0_67, %c12] : memref<17x32xf32, #tpu.memory_space<vmem>>, vector<17x4xf32>
    tpu.vector_store %arg12[%c0_67, %c12], %113 {strides = array<i32>} : memref<17x32xf32, #tpu.memory_space<vmem>>, vector<17x4xf32>,
    %c4_68 = arith.constant 4 : index
    %c0_69 = arith.constant 0 : index
    %c0_70 = arith.constant 0 : index
    %115 = vector.load %arg1[%c4_68, %c0_69, %c0_70] : memref<8x17x4xf32, #tpu.memory_space<vmem>>, vector<1x17x4xf32>
    %116 = vector.shape_cast %115 : vector<1x17x4xf32> to vector<17x4xf32>
    %c4_71 = arith.constant 4 : index
    %c0_72 = arith.constant 0 : index
    %c0_73 = arith.constant 0 : index
    %117 = vector.load %arg2[%c4_71, %c0_72, %c0_73] : memref<8x17x4xf32, #tpu.memory_space<vmem>>, vector<1x17x4xf32>
    %118 = vector.shape_cast %117 : vector<1x17x4xf32> to vector<17x4xf32>
    %c4_74 = arith.constant 4 : index
    %c0_75 = arith.constant 0 : index
    %c0_76 = arith.constant 0 : index
    %119 = vector.load %arg3[%c4_74, %c0_75, %c0_76] : memref<8x17x4xf32, #tpu.memory_space<vmem>>, vector<1x17x4xf32>
    %120 = vector.shape_cast %119 : vector<1x17x4xf32> to vector<17x4xf32>
    %121 = tpu.transpose %118, [1, 0] : vector<17x4xf32> -> vector<4x17xf32>
    %cst_77 = arith.constant dense<0.000000e+00> : vector<17x17xf32>
    %122 = tpu.matmul %116, %121, %cst_77 {dimension_numbers = #tpu.dot_dimension_numbers<[1], [0], [0], [1], [0, 0, 1, 1], [], []>} : vector<17x4xf32>, vector<4x17xf32>, vector<17x17xf32> -> vector<17x17xf32>
    %cst_78 = arith.constant 2.500000e-01 : f32
    %123 = vector.broadcast %cst_78 : f32 to vector<17x17xf32>
    %124 = arith.mulf %122, %123 : vector<17x17xf32>
    %cst_79 = arith.constant dense<0xFF800000> : vector<17xf32>
    %125 = vector.multi_reduction <maximumf>, %124, %cst_79 [1] : vector<17x17xf32> to vector<17xf32>
    %126 = vector.shape_cast %125 : vector<17xf32> to vector<17x1xf32>
    %127 = vector.broadcast %126 : vector<17x1xf32> to vector<17x17xf32>
    %128 = arith.subf %124, %127 : vector<17x17xf32>
    %129 = math.exp %128 : vector<17x17xf32>
    %cst_80 = arith.constant dense<0.000000e+00> : vector<17xf32>
    %130 = vector.multi_reduction <add>, %129, %cst_80 [1] : vector<17x17xf32> to vector<17xf32>
    %131 = vector.shape_cast %130 : vector<17xf32> to vector<17x1xf32>
    %132 = tpu.reciprocal %131 {approx = true} : vector<17x1xf32> -> vector<17x1xf32>
    %133 = vector.broadcast %132 : vector<17x1xf32> to vector<17x17xf32>
    %134 = arith.mulf %129, %133 : vector<17x17xf32>
    %cst_81 = arith.constant dense<0.000000e+00> : vector<17x4xf32>
    %135 = tpu.matmul %134, %120, %cst_81 {dimension_numbers = #tpu.dot_dimension_numbers<[1], [0], [0], [1], [0, 0, 1, 1], [], []>} : vector<17x17xf32>, vector<17x4xf32>, vector<17x4xf32> -> vector<17x4xf32>
    %c0_82 = arith.constant 0 : index
    %c16 = arith.constant 16 : index
    %136 = vector.load %arg12[%c0_82, %c16] : memref<17x32xf32, #tpu.memory_space<vmem>>, vector<17x4xf32>
    tpu.vector_store %arg12[%c0_82, %c16], %135 {strides = array<i32>} : memref<17x32xf32, #tpu.memory_space<vmem>>, vector<17x4xf32>,
    %c5 = arith.constant 5 : index
    %c0_83 = arith.constant 0 : index
    %c0_84 = arith.constant 0 : index
    %137 = vector.load %arg1[%c5, %c0_83, %c0_84] : memref<8x17x4xf32, #tpu.memory_space<vmem>>, vector<1x17x4xf32>
    %138 = vector.shape_cast %137 : vector<1x17x4xf32> to vector<17x4xf32>
    %c5_85 = arith.constant 5 : index
    %c0_86 = arith.constant 0 : index
    %c0_87 = arith.constant 0 : index
    %139 = vector.load %arg2[%c5_85, %c0_86, %c0_87] : memref<8x17x4xf32, #tpu.memory_space<vmem>>, vector<1x17x4xf32>
    %140 = vector.shape_cast %139 : vector<1x17x4xf32> to vector<17x4xf32>
    %c5_88 = arith.constant 5 : index
    %c0_89 = arith.constant 0 : index
    %c0_90 = arith.constant 0 : index
    %141 = vector.load %arg3[%c5_88, %c0_89, %c0_90] : memref<8x17x4xf32, #tpu.memory_space<vmem>>, vector<1x17x4xf32>
    %142 = vector.shape_cast %141 : vector<1x17x4xf32> to vector<17x4xf32>
    %143 = tpu.transpose %140, [1, 0] : vector<17x4xf32> -> vector<4x17xf32>
    %cst_91 = arith.constant dense<0.000000e+00> : vector<17x17xf32>
    %144 = tpu.matmul %138, %143, %cst_91 {dimension_numbers = #tpu.dot_dimension_numbers<[1], [0], [0], [1], [0, 0, 1, 1], [], []>} : vector<17x4xf32>, vector<4x17xf32>, vector<17x17xf32> -> vector<17x17xf32>
    %cst_92 = arith.constant 2.500000e-01 : f32
    %145 = vector.broadcast %cst_92 : f32 to vector<17x17xf32>
    %146 = arith.mulf %144, %145 : vector<17x17xf32>
    %cst_93 = arith.constant dense<0xFF800000> : vector<17xf32>
    %147 = vector.multi_reduction <maximumf>, %146, %cst_93 [1] : vector<17x17xf32> to vector<17xf32>
    %148 = vector.shape_cast %147 : vector<17xf32> to vector<17x1xf32>
    %149 = vector.broadcast %148 : vector<17x1xf32> to vector<17x17xf32>
    %150 = arith.subf %146, %149 : vector<17x17xf32>
    %151 = math.exp %150 : vector<17x17xf32>
    %cst_94 = arith.constant dense<0.000000e+00> : vector<17xf32>
    %152 = vector.multi_reduction <add>, %151, %cst_94 [1] : vector<17x17xf32> to vector<17xf32>
    %153 = vector.shape_cast %152 : vector<17xf32> to vector<17x1xf32>
    %154 = tpu.reciprocal %153 {approx = true} : vector<17x1xf32> -> vector<17x1xf32>
    %155 = vector.broadcast %154 : vector<17x1xf32> to vector<17x17xf32>
    %156 = arith.mulf %151, %155 : vector<17x17xf32>
    %cst_95 = arith.constant dense<0.000000e+00> : vector<17x4xf32>
    %157 = tpu.matmul %156, %142, %cst_95 {dimension_numbers = #tpu.dot_dimension_numbers<[1], [0], [0], [1], [0, 0, 1, 1], [], []>} : vector<17x17xf32>, vector<17x4xf32>, vector<17x4xf32> -> vector<17x4xf32>
    %c0_96 = arith.constant 0 : index
    %c20 = arith.constant 20 : index
    %158 = vector.load %arg12[%c0_96, %c20] : memref<17x32xf32, #tpu.memory_space<vmem>>, vector<17x4xf32>
    tpu.vector_store %arg12[%c0_96, %c20], %157 {strides = array<i32>} : memref<17x32xf32, #tpu.memory_space<vmem>>, vector<17x4xf32>,
    %c6 = arith.constant 6 : index
    %c0_97 = arith.constant 0 : index
    %c0_98 = arith.constant 0 : index
    %159 = vector.load %arg1[%c6, %c0_97, %c0_98] : memref<8x17x4xf32, #tpu.memory_space<vmem>>, vector<1x17x4xf32>
    %160 = vector.shape_cast %159 : vector<1x17x4xf32> to vector<17x4xf32>
    %c6_99 = arith.constant 6 : index
    %c0_100 = arith.constant 0 : index
    %c0_101 = arith.constant 0 : index
    %161 = vector.load %arg2[%c6_99, %c0_100, %c0_101] : memref<8x17x4xf32, #tpu.memory_space<vmem>>, vector<1x17x4xf32>
    %162 = vector.shape_cast %161 : vector<1x17x4xf32> to vector<17x4xf32>
    %c6_102 = arith.constant 6 : index
    %c0_103 = arith.constant 0 : index
    %c0_104 = arith.constant 0 : index
    %163 = vector.load %arg3[%c6_102, %c0_103, %c0_104] : memref<8x17x4xf32, #tpu.memory_space<vmem>>, vector<1x17x4xf32>
    %164 = vector.shape_cast %163 : vector<1x17x4xf32> to vector<17x4xf32>
    %165 = tpu.transpose %162, [1, 0] : vector<17x4xf32> -> vector<4x17xf32>
    %cst_105 = arith.constant dense<0.000000e+00> : vector<17x17xf32>
    %166 = tpu.matmul %160, %165, %cst_105 {dimension_numbers = #tpu.dot_dimension_numbers<[1], [0], [0], [1], [0, 0, 1, 1], [], []>} : vector<17x4xf32>, vector<4x17xf32>, vector<17x17xf32> -> vector<17x17xf32>
    %cst_106 = arith.constant 2.500000e-01 : f32
    %167 = vector.broadcast %cst_106 : f32 to vector<17x17xf32>
    %168 = arith.mulf %166, %167 : vector<17x17xf32>
    %cst_107 = arith.constant dense<0xFF800000> : vector<17xf32>
    %169 = vector.multi_reduction <maximumf>, %168, %cst_107 [1] : vector<17x17xf32> to vector<17xf32>
    %170 = vector.shape_cast %169 : vector<17xf32> to vector<17x1xf32>
    %171 = vector.broadcast %170 : vector<17x1xf32> to vector<17x17xf32>
    %172 = arith.subf %168, %171 : vector<17x17xf32>
    %173 = math.exp %172 : vector<17x17xf32>
    %cst_108 = arith.constant dense<0.000000e+00> : vector<17xf32>
    %174 = vector.multi_reduction <add>, %173, %cst_108 [1] : vector<17x17xf32> to vector<17xf32>
    %175 = vector.shape_cast %174 : vector<17xf32> to vector<17x1xf32>
    %176 = tpu.reciprocal %175 {approx = true} : vector<17x1xf32> -> vector<17x1xf32>
    %177 = vector.broadcast %176 : vector<17x1xf32> to vector<17x17xf32>
    %178 = arith.mulf %173, %177 : vector<17x17xf32>
    %cst_109 = arith.constant dense<0.000000e+00> : vector<17x4xf32>
    %179 = tpu.matmul %178, %164, %cst_109 {dimension_numbers = #tpu.dot_dimension_numbers<[1], [0], [0], [1], [0, 0, 1, 1], [], []>} : vector<17x17xf32>, vector<17x4xf32>, vector<17x4xf32> -> vector<17x4xf32>
    %c0_110 = arith.constant 0 : index
    %c24 = arith.constant 24 : index
    %180 = vector.load %arg12[%c0_110, %c24] : memref<17x32xf32, #tpu.memory_space<vmem>>, vector<17x4xf32>
    tpu.vector_store %arg12[%c0_110, %c24], %179 {strides = array<i32>} : memref<17x32xf32, #tpu.memory_space<vmem>>, vector<17x4xf32>,
    %c7 = arith.constant 7 : index
    %c0_111 = arith.constant 0 : index
    %c0_112 = arith.constant 0 : index
    %181 = vector.load %arg1[%c7, %c0_111, %c0_112] : memref<8x17x4xf32, #tpu.memory_space<vmem>>, vector<1x17x4xf32>
    %182 = vector.shape_cast %181 : vector<1x17x4xf32> to vector<17x4xf32>
    %c7_113 = arith.constant 7 : index
    %c0_114 = arith.constant 0 : index
    %c0_115 = arith.constant 0 : index
    %183 = vector.load %arg2[%c7_113, %c0_114, %c0_115] : memref<8x17x4xf32, #tpu.memory_space<vmem>>, vector<1x17x4xf32>
    %184 = vector.shape_cast %183 : vector<1x17x4xf32> to vector<17x4xf32>
    %c7_116 = arith.constant 7 : index
    %c0_117 = arith.constant 0 : index
    %c0_118 = arith.constant 0 : index
    %185 = vector.load %arg3[%c7_116, %c0_117, %c0_118] : memref<8x17x4xf32, #tpu.memory_space<vmem>>, vector<1x17x4xf32>
    %186 = vector.shape_cast %185 : vector<1x17x4xf32> to vector<17x4xf32>
    %187 = tpu.transpose %184, [1, 0] : vector<17x4xf32> -> vector<4x17xf32>
    %cst_119 = arith.constant dense<0.000000e+00> : vector<17x17xf32>
    %188 = tpu.matmul %182, %187, %cst_119 {dimension_numbers = #tpu.dot_dimension_numbers<[1], [0], [0], [1], [0, 0, 1, 1], [], []>} : vector<17x4xf32>, vector<4x17xf32>, vector<17x17xf32> -> vector<17x17xf32>
    %cst_120 = arith.constant 2.500000e-01 : f32
    %189 = vector.broadcast %cst_120 : f32 to vector<17x17xf32>
    %190 = arith.mulf %188, %189 : vector<17x17xf32>
    %cst_121 = arith.constant dense<0xFF800000> : vector<17xf32>
    %191 = vector.multi_reduction <maximumf>, %190, %cst_121 [1] : vector<17x17xf32> to vector<17xf32>
    %192 = vector.shape_cast %191 : vector<17xf32> to vector<17x1xf32>
    %193 = vector.broadcast %192 : vector<17x1xf32> to vector<17x17xf32>
    %194 = arith.subf %190, %193 : vector<17x17xf32>
    %195 = math.exp %194 : vector<17x17xf32>
    %cst_122 = arith.constant dense<0.000000e+00> : vector<17xf32>
    %196 = vector.multi_reduction <add>, %195, %cst_122 [1] : vector<17x17xf32> to vector<17xf32>
    %197 = vector.shape_cast %196 : vector<17xf32> to vector<17x1xf32>
    %198 = tpu.reciprocal %197 {approx = true} : vector<17x1xf32> -> vector<17x1xf32>
    %199 = vector.broadcast %198 : vector<17x1xf32> to vector<17x17xf32>
    %200 = arith.mulf %195, %199 : vector<17x17xf32>
    %cst_123 = arith.constant dense<0.000000e+00> : vector<17x4xf32>
    %201 = tpu.matmul %200, %186, %cst_123 {dimension_numbers = #tpu.dot_dimension_numbers<[1], [0], [0], [1], [0, 0, 1, 1], [], []>} : vector<17x17xf32>, vector<17x4xf32>, vector<17x4xf32> -> vector<17x4xf32>
    %c0_124 = arith.constant 0 : index
    %c28 = arith.constant 28 : index
    %202 = vector.load %arg12[%c0_124, %c28] : memref<17x32xf32, #tpu.memory_space<vmem>>, vector<17x4xf32>
    tpu.vector_store %arg12[%c0_124, %c28], %201 {strides = array<i32>} : memref<17x32xf32, #tpu.memory_space<vmem>>, vector<17x4xf32>,
    %c0_125 = arith.constant 0 : index
    %c0_126 = arith.constant 0 : index
    %203 = vector.load %arg12[%c0_125, %c0_126] : memref<17x32xf32, #tpu.memory_space<vmem>>, vector<17x32xf32>
    %c0_127 = arith.constant 0 : index
    %c0_128 = arith.constant 0 : index
    %204 = vector.load %arg4[%c0_127, %c0_128] : memref<32x32xf32, #tpu.memory_space<vmem>>, vector<32x32xf32>
    %cst_129 = arith.constant dense<0.000000e+00> : vector<17x32xf32>
    %205 = tpu.matmul %203, %204, %cst_129 {dimension_numbers = #tpu.dot_dimension_numbers<[1], [0], [0], [1], [0, 0, 1, 1], [], []>} : vector<17x32xf32>, vector<32x32xf32>, vector<17x32xf32> -> vector<17x32xf32>
    %c0_130 = arith.constant 0 : index
    %c0_131 = arith.constant 0 : index
    %206 = vector.load %arg5[%c0_130, %c0_131] : memref<1x32xf32, #tpu.memory_space<vmem>>, vector<1x32xf32>
    %207 = vector.broadcast %206 : vector<1x32xf32> to vector<17x32xf32>
    %208 = arith.addf %205, %207 : vector<17x32xf32>
    %209 = arith.addf %208, %26 : vector<17x32xf32>
    %cst_132 = arith.constant dense<0.000000e+00> : vector<17xf32>
    %210 = vector.multi_reduction <add>, %209, %cst_132 [1] : vector<17x32xf32> to vector<17xf32>
    %211 = vector.shape_cast %210 : vector<17xf32> to vector<17x1xf32>
    %cst_133 = arith.constant 3.125000e-02 : f32
    %212 = vector.broadcast %cst_133 : f32 to vector<17x1xf32>
    %213 = arith.mulf %211, %212 : vector<17x1xf32>
    %214 = arith.mulf %209, %209 : vector<17x32xf32>
    %cst_134 = arith.constant dense<0.000000e+00> : vector<17xf32>
    %215 = vector.multi_reduction <add>, %214, %cst_134 [1] : vector<17x32xf32> to vector<17xf32>
    %216 = vector.shape_cast %215 : vector<17xf32> to vector<17x1xf32>
    %cst_135 = arith.constant 3.125000e-02 : f32
    %217 = vector.broadcast %cst_135 : f32 to vector<17x1xf32>
    %218 = arith.mulf %216, %217 : vector<17x1xf32>
    %219 = arith.mulf %213, %213 : vector<17x1xf32>
    %220 = arith.subf %218, %219 : vector<17x1xf32>
    %cst_136 = arith.constant 0.000000e+00 : f32
    %221 = vector.broadcast %cst_136 : f32 to vector<17x1xf32>
    %222 = arith.maximumf %220, %221 : vector<17x1xf32>
    %223 = vector.broadcast %213 : vector<17x1xf32> to vector<17x32xf32>
    %224 = arith.subf %209, %223 : vector<17x32xf32>
    %cst_137 = arith.constant 9.99999974E-6 : f32
    %225 = vector.broadcast %cst_137 : f32 to vector<17x1xf32>
    %226 = arith.addf %222, %225 : vector<17x1xf32>
    %227 = math.rsqrt %226 : vector<17x1xf32>
    %228 = vector.broadcast %227 : vector<17x1xf32> to vector<17x32xf32>
    %229 = arith.mulf %224, %228 : vector<17x32xf32>
    %230 = vector.broadcast %1 : vector<17x1xf32> to vector<17x32xf32>
    %231 = arith.mulf %229, %230 : vector<17x32xf32>
    %232 = vector.broadcast %2 : vector<17x1xf32> to vector<17x32xf32>
    %233 = arith.addf %231, %232 : vector<17x32xf32>
    %c0_138 = arith.constant 0 : index
    %c0_139 = arith.constant 0 : index
    %234 = vector.load %arg8[%c0_138, %c0_139] : memref<32x32xf32, #tpu.memory_space<vmem>>, vector<32x32xf32>
    %cst_140 = arith.constant dense<0.000000e+00> : vector<17x32xf32>
    %235 = tpu.matmul %233, %234, %cst_140 {dimension_numbers = #tpu.dot_dimension_numbers<[1], [0], [0], [1], [0, 0, 1, 1], [], []>} : vector<17x32xf32>, vector<32x32xf32>, vector<17x32xf32> -> vector<17x32xf32>
    %c0_141 = arith.constant 0 : index
    %c0_142 = arith.constant 0 : index
    %236 = vector.load %arg9[%c0_141, %c0_142] : memref<1x32xf32, #tpu.memory_space<vmem>>, vector<1x32xf32>
    %237 = vector.broadcast %236 : vector<1x32xf32> to vector<17x32xf32>
    %238 = arith.addf %235, %237 : vector<17x32xf32>
    %239 = arith.addf %238, %209 : vector<17x32xf32>
    %240 = vector.extract_strided_slice %239 {offsets = [0, 0], sizes = [1, 32], strides = [1, 1]} : vector<17x32xf32> to vector<1x32xf32>
    %c0_143 = arith.constant 0 : index
    %c0_144 = arith.constant 0 : index
    %241 = vector.load %arg10[%c0_143, %c0_144] : memref<32x10xf32, #tpu.memory_space<vmem>>, vector<32x10xf32>
    %cst_145 = arith.constant dense<0.000000e+00> : vector<1x10xf32>
    %242 = tpu.matmul %240, %241, %cst_145 {dimension_numbers = #tpu.dot_dimension_numbers<[1], [0], [0], [1], [0, 0, 1, 1], [], []>} : vector<1x32xf32>, vector<32x10xf32>, vector<1x10xf32> -> vector<1x10xf32>
    %c0_146 = arith.constant 0 : index
    %c0_147 = arith.constant 0 : index
    %243 = vector.load %arg11[%c0_146, %c0_147] : memref<1x10xf32, #tpu.memory_space<vmem>>, vector<1x10xf32>
    tpu.vector_store %arg11[%c0_146, %c0_147], %242 {strides = array<i32>} : memref<1x10xf32, #tpu.memory_space<vmem>>, vector<1x10xf32>,
    return
  }
}

</mosaic_0001>

<bundles_post_ra>
// kernel: squeeze.1
= control target key start
LH: loop header
LB: loop body
LE: loop exit
PB: predicated region body
PF: predicated region fallthrough
CT: control target
= control target key end

     0   :  { %vm3_vm0 = vcmask 31744   ;;  %s652_s12 = smov 124   ;;  %s654_s19 = smov 116   ;;  %s875_s0 = inlined_call_operand.vmem [shape: f32[1,3,16,16], index: 0, kind: input, shape index: {}]   ;;  %s876_s1 = inlined_call_operand.vmem [shape: f32[3,4,4,4,4], index: 1, kind: output, shape index: {}]  }
   0x1   :  { %v588_v0 = vld [vmem:[%s875_s0 + $0x10] sm:$0xff]   ;;  %v41_v1 = vld [vmem:[%s875_s0] sm:$0xff]   ;;  %v589_v2 = vld [vmem:[%s875_s0 + $0x18] sm:$0xff]  }
   0x2   :  { %60 = vrot.lane.b32.xlu1 %v588_v0, %s652_s12  ;;  %42 = vrot.lane.b32.xlu0 %v41_v1, %s652_s12  ;;  %v587_v3 = vld [vmem:[%s875_s0 + $0x8] sm:$0xff]   ;;  %4 = vst.msk [vmem:[#allocation0] ss:$8 sm:$0xf] %vm3_vm0, %v41_v1   ;;  %v590_v5 = vld [vmem:[%s875_s0 + $0x20] sm:$0xff]  }
   0x3   :  { %v591_v4 = vld [vmem:[%s875_s0 + $0x28] sm:$0xff]   ;;  %5 = vst.msk [vmem:[#allocation0] ss:$8 sm:$0xf0] %vm3_vm0, %v41_v1   ;;  %s653_s0 = smov 120  }
   0x4   :  { %24 = vst.msk [vmem:[#allocation0 + $0xc0] ss:$8 sm:$0xf] %vm3_vm0, %v589_v2   ;;  %26 = vst.msk [vmem:[#allocation0 + $0xc0] ss:$8 sm:$0xf0] %vm3_vm0, %v589_v2  }
   0x5   :  { %17 = vst.msk [vmem:[#allocation0 + $0x80] ss:$8 sm:$0xf] %vm3_vm0, %v588_v0   ;;  %19 = vst.msk [vmem:[#allocation0 + $0x80] ss:$8 sm:$0xf0] %vm3_vm0, %v588_v0  }
   0x6   :  { %10 = vst.msk [vmem:[#allocation0 + $0x40] ss:$8 sm:$0xf] %vm3_vm0, %v587_v3   ;;  %12 = vst.msk [vmem:[#allocation0 + $0x40] ss:$8 sm:$0xf0] %vm3_vm0, %v587_v3   ;;  %69 = vrot.lane.b32.xlu1 %v589_v2, %s652_s12  ;;  %51 = vrot.lane.b32.xlu0 %v587_v3, %s652_s12 }
   0x7   :  { %38 = vst.msk [vmem:[#allocation0 + $0x140] ss:$8 sm:$0xf] %vm3_vm0, %v591_v4   ;;  %40 = vst.msk [vmem:[#allocation0 + $0x140] ss:$8 sm:$0xf0] %vm3_vm0, %v591_v4  }
   0x8   :  { %31 = vst.msk [vmem:[#allocation0 + $0x100] ss:$8 sm:$0xf] %vm3_vm0, %v590_v5   ;;  %33 = vst.msk [vmem:[#allocation0 + $0x100] ss:$8 sm:$0xf0] %vm3_vm0, %v590_v5  }
   0xa   :  { %87 = vrot.lane.b32.xlu1 %v591_v4, %s652_s12  ;;  %78 = vrot.lane.b32.xlu0 %v590_v5, %s652_s12 }
   0xe   :  { %104 = vrot.lane.b32.xlu1 %v587_v3, %s653_s0  ;;  %95 = vrot.lane.b32.xlu0 %v41_v1, %s653_s0 }
  0x12   :  { %122 = vrot.lane.b32.xlu1 %v589_v2, %s653_s0  ;;  %113 = vrot.lane.b32.xlu0 %v588_v0, %s653_s0 }
  0x16   :  { %140 = vrot.lane.b32.xlu1 %v591_v4, %s653_s0  ;;  %131 = vrot.lane.b32.xlu0 %v590_v5, %s653_s0 }
  0x1a   :  { %157 = vrot.lane.b32.xlu1 %v587_v3, %s654_s19  ;;  %148 = vrot.lane.b32.xlu0 %v41_v1, %s654_s19 }
  0x1e   :  { %175 = vrot.lane.b32.xlu1 %v589_v2, %s654_s19  ;;  %166 = vrot.lane.b32.xlu0 %v588_v0, %s654_s19 }
  0x22   :  { %193 = vrot.lane.b32.xlu1 %v591_v4, %s654_s19  ;;  %184 = vrot.lane.b32.xlu0 %v590_v5, %s654_s19 }
  0x74   :  { %v61_v6 = vpop.permute.xlu1 %60   ;;  %v43_v7 = vpop.permute.xlu0 %42  }
  0x75   :  { %64 = vst.msk [vmem:[#allocation0 + $0x81] ss:$8 sm:$0xf] %vm3_vm0, %v61_v6   ;;  %66 = vst.msk [vmem:[#allocation0 + $0x81] ss:$8 sm:$0xf0] %vm3_vm0, %v61_v6  }
  0x76   :  { %46 = vst.msk [vmem:[#allocation0 + $0x1] ss:$8 sm:$0xf] %vm3_vm0, %v43_v7   ;;  %48 = vst.msk [vmem:[#allocation0 + $0x1] ss:$8 sm:$0xf0] %vm3_vm0, %v43_v7  }
  0x78   :  { %v70_v8 = vpop.permute.xlu1 %69   ;;  %v52_v9 = vpop.permute.xlu0 %51  }
  0x79   :  { %73 = vst.msk [vmem:[#allocation0 + $0xc1] ss:$8 sm:$0xf] %vm3_vm0, %v70_v8   ;;  %75 = vst.msk [vmem:[#allocation0 + $0xc1] ss:$8 sm:$0xf0] %vm3_vm0, %v70_v8  }
  0x7a   :  { %55 = vst.msk [vmem:[#allocation0 + $0x41] ss:$8 sm:$0xf] %vm3_vm0, %v52_v9   ;;  %57 = vst.msk [vmem:[#allocation0 + $0x41] ss:$8 sm:$0xf0] %vm3_vm0, %v52_v9  }
  0x7c   :  { %v88_v10 = vpop.permute.xlu1 %87   ;;  %v79_v11 = vpop.permute.xlu0 %78  }
  0x7d   :  { %91 = vst.msk [vmem:[#allocation0 + $0x141] ss:$8 sm:$0xf] %vm3_vm0, %v88_v10   ;;  %93 = vst.msk [vmem:[#allocation0 + $0x141] ss:$8 sm:$0xf0] %vm3_vm0, %v88_v10  }
  0x7e   :  { %82 = vst.msk [vmem:[#allocation0 + $0x101] ss:$8 sm:$0xf] %vm3_vm0, %v79_v11   ;;  %84 = vst.msk [vmem:[#allocation0 + $0x101] ss:$8 sm:$0xf0] %vm3_vm0, %v79_v11  }
  0x80   :  { %v105_v12 = vpop.permute.xlu1 %104   ;;  %v96_v13 = vpop.permute.xlu0 %95  }
  0x81   :  { %108 = vst.msk [vmem:[#allocation0 + $0x42] ss:$8 sm:$0xf] %vm3_vm0, %v105_v12   ;;  %110 = vst.msk [vmem:[#allocation0 + $0x42] ss:$8 sm:$0xf0] %vm3_vm0, %v105_v12  }
  0x82   :  { %99 = vst.msk [vmem:[#allocation0 + $0x2] ss:$8 sm:$0xf] %vm3_vm0, %v96_v13   ;;  %101 = vst.msk [vmem:[#allocation0 + $0x2] ss:$8 sm:$0xf0] %vm3_vm0, %v96_v13  }
  0x84   :  { %v123_v14 = vpop.permute.xlu1 %122   ;;  %v114_v15 = vpop.permute.xlu0 %113  }
  0x85   :  { %126 = vst.msk [vmem:[#allocation0 + $0xc2] ss:$8 sm:$0xf] %vm3_vm0, %v123_v14   ;;  %128 = vst.msk [vmem:[#allocation0 + $0xc2] ss:$8 sm:$0xf0] %vm3_vm0, %v123_v14  }
  0x86   :  { %117 = vst.msk [vmem:[#allocation0 + $0x82] ss:$8 sm:$0xf] %vm3_vm0, %v114_v15   ;;  %119 = vst.msk [vmem:[#allocation0 + $0x82] ss:$8 sm:$0xf0] %vm3_vm0, %v114_v15  }
  0x88   :  { %v141_v16 = vpop.permute.xlu1 %140   ;;  %v132_v17 = vpop.permute.xlu0 %131  }
  0x89   :  { %144 = vst.msk [vmem:[#allocation0 + $0x142] ss:$8 sm:$0xf] %vm3_vm0, %v141_v16   ;;  %146 = vst.msk [vmem:[#allocation0 + $0x142] ss:$8 sm:$0xf0] %vm3_vm0, %v141_v16  }
  0x8a   :  { %135 = vst.msk [vmem:[#allocation0 + $0x102] ss:$8 sm:$0xf] %vm3_vm0, %v132_v17   ;;  %137 = vst.msk [vmem:[#allocation0 + $0x102] ss:$8 sm:$0xf0] %vm3_vm0, %v132_v17  }
  0x8c   :  { %v158_v18 = vpop.permute.xlu1 %157   ;;  %v149_v19 = vpop.permute.xlu0 %148  }
  0x8d   :  { %161 = vst.msk [vmem:[#allocation0 + $0x43] ss:$8 sm:$0xf] %vm3_vm0, %v158_v18   ;;  %163 = vst.msk [vmem:[#allocation0 + $0x43] ss:$8 sm:$0xf0] %vm3_vm0, %v158_v18  }
  0x8e   :  { %152 = vst.msk [vmem:[#allocation0 + $0x3] ss:$8 sm:$0xf] %vm3_vm0, %v149_v19   ;;  %154 = vst.msk [vmem:[#allocation0 + $0x3] ss:$8 sm:$0xf0] %vm3_vm0, %v149_v19  }
  0x90   :  { %v176_v20 = vpop.permute.xlu1 %175   ;;  %v167_v21 = vpop.permute.xlu0 %166  }
  0x91   :  { %179 = vst.msk [vmem:[#allocation0 + $0xc3] ss:$8 sm:$0xf] %vm3_vm0, %v176_v20   ;;  %181 = vst.msk [vmem:[#allocation0 + $0xc3] ss:$8 sm:$0xf0] %vm3_vm0, %v176_v20  }
  0x92   :  { %170 = vst.msk [vmem:[#allocation0 + $0x83] ss:$8 sm:$0xf] %vm3_vm0, %v167_v21   ;;  %172 = vst.msk [vmem:[#allocation0 + $0x83] ss:$8 sm:$0xf0] %vm3_vm0, %v167_v21  }
  0x94   :  { %v257_v22 = vld [vmem:[#allocation0 + $0x40] sm:$0xf]  ;;  %v264_v23 = vld [vmem:[#allocation0 + $0x48] sm:$0xf]  ;;  %v271_v24 = vld [vmem:[#allocation0 + $0x50] sm:$0xf]  ;;  %v194_v25 = vpop.permute.xlu1 %193   ;;  %v185_v26 = vpop.permute.xlu0 %184  }
  0x95   :  { %609 = vst [vmem:[%s876_s1 + $0x20] sm:$0xf] %v257_v22  ;;  %610 = vst [vmem:[%s876_s1 + $0x24] sm:$0xf] %v264_v23  ;;  %v278_v27 = vld [vmem:[#allocation0 + $0x58] sm:$0xf] }
  0x96   :  { %611 = vst [vmem:[%s876_s1 + $0x28] sm:$0xf] %v271_v24  ;;  %v285_v28 = vld [vmem:[#allocation0 + $0x60] sm:$0xf]  ;;  %v292_v29 = vld [vmem:[#allocation0 + $0x68] sm:$0xf] }
  0x97   :  { %197 = vst.msk [vmem:[#allocation0 + $0x143] ss:$8 sm:$0xf] %vm3_vm0, %v194_v25   ;;  %199 = vst.msk [vmem:[#allocation0 + $0x143] ss:$8 sm:$0xf0] %vm3_vm0, %v194_v25  }
  0x98   :  { %188 = vst.msk [vmem:[#allocation0 + $0x103] ss:$8 sm:$0xf] %vm3_vm0, %v185_v26   ;;  %190 = vst.msk [vmem:[#allocation0 + $0x103] ss:$8 sm:$0xf0] %vm3_vm0, %v185_v26  }
  0x99   :  { %612 = vst [vmem:[%s876_s1 + $0x2c] sm:$0xf] %v278_v27  ;;  %613 = vst [vmem:[%s876_s1 + $0x30] sm:$0xf] %v285_v28  ;;  %v299_v30 = vld [vmem:[#allocation0 + $0x70] sm:$0xf] }
  0x9a   :  { %614 = vst [vmem:[%s876_s1 + $0x34] sm:$0xf] %v292_v29  ;;  %v306_v31 = vld [vmem:[#allocation0 + $0x78] sm:$0xf]  ;;  %v204_v32 = vld [vmem:[#allocation0] sm:$0xf] }
  0x9b   :  { %615 = vst [vmem:[%s876_s1 + $0x38] sm:$0xf] %v299_v30  ;;  %616 = vst [vmem:[%s876_s1 + $0x3c] sm:$0xf] %v306_v31  ;;  %v209_v33 = vld [vmem:[#allocation0 + $0x8] sm:$0xf] }
  0x9c   :  { %207 = vst [vmem:[%s876_s1] sm:$0xf] %v204_v32  ;;  %v215_v34 = vld [vmem:[#allocation0 + $0x10] sm:$0xf]  ;;  %v222_v35 = vld [vmem:[#allocation0 + $0x18] sm:$0xf] }
  0x9d   :  { %602 = vst [vmem:[%s876_s1 + $0x4] sm:$0xf] %v209_v33  ;;  %603 = vst [vmem:[%s876_s1 + $0x8] sm:$0xf] %v215_v34  ;;  %v229_v36 = vld [vmem:[#allocation0 + $0x20] sm:$0xf] }
  0x9e   :  { %604 = vst [vmem:[%s876_s1 + $0xc] sm:$0xf] %v222_v35  ;;  %v236_v37 = vld [vmem:[#allocation0 + $0x28] sm:$0xf]  ;;  %v243_v38 = vld [vmem:[#allocation0 + $0x30] sm:$0xf] }
  0x9f   :  { %605 = vst [vmem:[%s876_s1 + $0x10] sm:$0xf] %v229_v36  ;;  %606 = vst [vmem:[%s876_s1 + $0x14] sm:$0xf] %v236_v37  ;;  %v250_v39 = vld [vmem:[#allocation0 + $0x38] sm:$0xf] }
  0xa0   :  { %607 = vst [vmem:[%s876_s1 + $0x18] sm:$0xf] %v243_v38  ;;  %v369_v40 = vld [vmem:[#allocation0 + $0xc0] sm:$0xf]  ;;  %v376_v41 = vld [vmem:[#allocation0 + $0xc8] sm:$0xf] }
  0xa1   :  { %608 = vst [vmem:[%s876_s1 + $0x1c] sm:$0xf] %v250_v39  ;;  %625 = vst [vmem:[%s876_s1 + $0x60] sm:$0xf] %v369_v40  ;;  %v383_v42 = vld [vmem:[#allocation0 + $0xd0] sm:$0xf] }
  0xa2   :  { %626 = vst [vmem:[%s876_s1 + $0x64] sm:$0xf] %v376_v41  ;;  %v390_v43 = vld [vmem:[#allocation0 + $0xd8] sm:$0xf]  ;;  %v397_v44 = vld [vmem:[#allocation0 + $0xe0] sm:$0xf] }
  0xa3   :  { %627 = vst [vmem:[%s876_s1 + $0x68] sm:$0xf] %v383_v42  ;;  %628 = vst [vmem:[%s876_s1 + $0x6c] sm:$0xf] %v390_v43  ;;  %v404_v45 = vld [vmem:[#allocation0 + $0xe8] sm:$0xf] }
  0xa4   :  { %629 = vst [vmem:[%s876_s1 + $0x70] sm:$0xf] %v397_v44  ;;  %v411_v46 = vld [vmem:[#allocation0 + $0xf0] sm:$0xf]  ;;  %v418_v47 = vld [vmem:[#allocation0 + $0xf8] sm:$0xf] }
  0xa5   :  { %630 = vst [vmem:[%s876_s1 + $0x74] sm:$0xf] %v404_v45  ;;  %631 = vst [vmem:[%s876_s1 + $0x78] sm:$0xf] %v411_v46  ;;  %v313_v48 = vld [vmem:[#allocation0 + $0x80] sm:$0xf] }
  0xa6   :  { %632 = vst [vmem:[%s876_s1 + $0x7c] sm:$0xf] %v418_v47  ;;  %v320_v49 = vld [vmem:[#allocation0 + $0x88] sm:$0xf]  ;;  %v327_v50 = vld [vmem:[#allocation0 + $0x90] sm:$0xf] }
  0xa7   :  { %617 = vst [vmem:[%s876_s1 + $0x40] sm:$0xf] %v313_v48  ;;  %618 = vst [vmem:[%s876_s1 + $0x44] sm:$0xf] %v320_v49  ;;  %v334_v51 = vld [vmem:[#allocation0 + $0x98] sm:$0xf] }
  0xa8   :  { %619 = vst [vmem:[%s876_s1 + $0x48] sm:$0xf] %v327_v50  ;;  %v341_v52 = vld [vmem:[#allocation0 + $0xa0] sm:$0xf]  ;;  %v348_v53 = vld [vmem:[#allocation0 + $0xa8] sm:$0xf] }
  0xa9   :  { %620 = vst [vmem:[%s876_s1 + $0x4c] sm:$0xf] %v334_v51  ;;  %621 = vst [vmem:[%s876_s1 + $0x50] sm:$0xf] %v341_v52  ;;  %v355_v54 = vld [vmem:[#allocation0 + $0xb0] sm:$0xf] }
  0xaa   :  { %622 = vst [vmem:[%s876_s1 + $0x54] sm:$0xf] %v348_v53  ;;  %v362_v55 = vld [vmem:[#allocation0 + $0xb8] sm:$0xf]  ;;  %v481_v56 = vld [vmem:[#allocation0 + $0x140] sm:$0xf] }
  0xab   :  { %623 = vst [vmem:[%s876_s1 + $0x58] sm:$0xf] %v355_v54  ;;  %624 = vst [vmem:[%s876_s1 + $0x5c] sm:$0xf] %v362_v55  ;;  %v488_v57 = vld [vmem:[#allocation0 + $0x148] sm:$0xf] }
  0xac   :  { %641 = vst [vmem:[%s876_s1 + $0xa0] sm:$0xf] %v481_v56  ;;  %v495_v58 = vld [vmem:[#allocation0 + $0x150] sm:$0xf]  ;;  %v502_v59 = vld [vmem:[#allocation0 + $0x158] sm:$0xf] }
  0xad   :  { %642 = vst [vmem:[%s876_s1 + $0xa4] sm:$0xf] %v488_v57  ;;  %643 = vst [vmem:[%s876_s1 + $0xa8] sm:$0xf] %v495_v58  ;;  %v509_v60 = vld [vmem:[#allocation0 + $0x160] sm:$0xf] }
  0xae   :  { %644 = vst [vmem:[%s876_s1 + $0xac] sm:$0xf] %v502_v59  ;;  %v516_v61 = vld [vmem:[#allocation0 + $0x168] sm:$0xf]  ;;  %v523_v62 = vld [vmem:[#allocation0 + $0x170] sm:$0xf] }
  0xaf   :  { %645 = vst [vmem:[%s876_s1 + $0xb0] sm:$0xf] %v509_v60  ;;  %646 = vst [vmem:[%s876_s1 + $0xb4] sm:$0xf] %v516_v61  ;;  %v530_v63 = vld [vmem:[#allocation0 + $0x178] sm:$0xf] }
  0xb0   :  { %647 = vst [vmem:[%s876_s1 + $0xb8] sm:$0xf] %v523_v62  ;;  %v425_v0 = vld [vmem:[#allocation0 + $0x100] sm:$0xf]  ;;  %v432_v1 = vld [vmem:[#allocation0 + $0x108] sm:$0xf] }
  0xb1   :  { %648 = vst [vmem:[%s876_s1 + $0xbc] sm:$0xf] %v530_v63  ;;  %633 = vst [vmem:[%s876_s1 + $0x80] sm:$0xf] %v425_v0  ;;  %v439_v2 = vld [vmem:[#allocation0 + $0x110] sm:$0xf] }
  0xb2   :  { %634 = vst [vmem:[%s876_s1 + $0x84] sm:$0xf] %v432_v1  ;;  %v446_v3 = vld [vmem:[#allocation0 + $0x118] sm:$0xf]  ;;  %v453_v4 = vld [vmem:[#allocation0 + $0x120] sm:$0xf] }
  0xb3   :  { %635 = vst [vmem:[%s876_s1 + $0x88] sm:$0xf] %v439_v2  ;;  %636 = vst [vmem:[%s876_s1 + $0x8c] sm:$0xf] %v446_v3  ;;  %v460_v5 = vld [vmem:[#allocation0 + $0x128] sm:$0xf] }
  0xb4   :  { %637 = vst [vmem:[%s876_s1 + $0x90] sm:$0xf] %v453_v4  ;;  %v467_v6 = vld [vmem:[#allocation0 + $0x130] sm:$0xf]  ;;  %v474_v7 = vld [vmem:[#allocation0 + $0x138] sm:$0xf] }
  0xb5   :  { %638 = vst [vmem:[%s876_s1 + $0x94] sm:$0xf] %v460_v5  ;;  %639 = vst [vmem:[%s876_s1 + $0x98] sm:$0xf] %v467_v6 }
  0xb6   :  { %640 = vst [vmem:[%s876_s1 + $0x9c] sm:$0xf] %v474_v7 }

// kernel: vit_forward.3
= control target key start
LH: loop header
LB: loop body
LE: loop exit
PB: predicated region body
PF: predicated region fallthrough
CT: control target
= control target key end

     0   :  { %v639_v0 = vmov 0.0   ;;  %vm640_vm0 = vmmov 0   ;;  %vm48_vm1 = vcmask 392192   ;;  %vm138_vm2 = vcmask 261120   ;;  %s907_s1 = inlined_call_operand.vmem [shape: f32[48,32], index: 1, kind: input, shape index: {}]   ;;  %s908_s0 = inlined_call_operand.vmem [shape: f32[17,48], index: 0, kind: input, shape index: {}]   ;;  %s909_s3 = inlined_call_operand.vmem [shape: f32[32,32], index: 3, kind: input, shape index: {}]   ;;  %s910_s7 = inlined_call_operand.vmem [shape: f32[32,32], index: 7, kind: input, shape index: {}]   ;;  %s911_s4 = inlined_call_operand.vmem [shape: f32[32,1], index: 4, kind: input, shape index: {}]   ;;  %s912_s8 = inlined_call_operand.vmem [shape: f32[32,1], index: 8, kind: input, shape index: {}]   ;;  %s913_s2 = inlined_call_operand.vmem [shape: f32[17,32], index: 2, kind: input, shape index: {}]   ;;  %s914_s9 = inlined_call_operand.vmem [shape: f32[17,32], index: 9, kind: output, shape index: {0}]   ;;  %s915_s5 = inlined_call_operand.vmem [shape: f32[32,32], index: 5, kind: input, shape index: {}]   ;;  %s916_s10 = inlined_call_operand.vmem [shape: f32[32,17], index: 10, kind: output, shape index: {1}]   ;;  %s917_s12 = inlined_call_operand.vmem [shape: f32[32,17], index: 12, kind: output, shape index: {3}]   ;;  %s918_s6 = inlined_call_operand.vmem [shape: f32[1,32], index: 6, kind: input, shape index: {}]   ;;  %s919_s11 = inlined_call_operand.vmem [shape: f32[17,32], index: 11, kind: output, shape index: {2}]  }
   0x1   :  { %572 = vmatprep.subr.mxu0 %v639_v0  ;;  %v44_v1 = vld [vmem:[%s907_s1 + $0x28] sm:$0xff]  ;;  %v43_v2 = vld [vmem:[%s907_s1 + $0x20] sm:$0xff]  ;;  %584 = vmatprep.mubr.msk.f32.mxu0 %vm640_vm0, %v639_v0  ;;  %v42_v3 = vld [vmem:[%s907_s1 + $0x18] sm:$0xff]  ;;  %v641_v12 = vmov 0   ;;  %vm141_vm3 = vcmask 253952   ;;  %vm493_vm4 = vcmask 138240  }
   0x2   :  { %573 = vmatpush3.msra.mxu0 %v44_v1  ;;  %v41_v4 = vld [vmem:[%s907_s1 + $0x10] sm:$0xff]  ;;  %v40_v5 = vld [vmem:[%s907_s1 + $0x8] sm:$0xff]  ;;  %v39_v6 = vld [vmem:[%s907_s1] sm:$0xff]  ;;  %638 = vset.pattern.permute.xlu1 %v641_v12 }
   0x3   :  { %574 = vmatprep.subr.mxu0 %v639_v0  ;;  %v36_v7 = vld [vmem:[%s908_s0] sm:$0xff]  ;;  %v37_v8 = vld [vmem:[%s908_s0 + $0x8] sm:$0xff]  ;;  %v38_v9 = vld [vmem:[%s908_s0 + $0x10] sm:$0x1]  ;;  %637 = vset.pattern.permute.xlu0 %v641_v12 }
   0x4   :  { %575 = vmatpush3.msra.mxu0 %v43_v2  ;;  %v143_v10 = vld [vmem:[%s909_s3] sm:$0xff]  ;;  %v149_v13 = vld [vmem:[%s911_s4 + $0x10] sm:$0xff]  ;;  %v150_v15 = vld [vmem:[%s911_s4 + $0x18] sm:$0xff] }
   0x5   :  { %576 = vmatprep.subr.mxu0 %v639_v0  ;;  %v277_v11 = vld [vmem:[%s910_s7] sm:$0xff]  ;;  %599 = vmatprep.mubr.msk.f32.mxu1 %vm138_vm2, %v143_v10  ;;  %v148_v16 = vld [vmem:[%s911_s4 + $0x8] sm:$0xff]  ;;  %v284_v19 = vld [vmem:[%s912_s8 + $0x18] sm:$0xff] }
   0x6   :  { %577 = vmatpush3.msra.mxu0 %v42_v3  ;;  %v147_v14 = vld [vmem:[%s911_s4] sm:$0xff]  ;;  %163 = vperm.xlu1 %638, %v149_v13   ;;  %v282_v17 = vld [vmem:[%s912_s8 + $0x8] sm:$0xff]  ;;  %v283_v20 = vld [vmem:[%s912_s8 + $0x10] sm:$0xff] }
   0x7   :  { %578 = vmatprep.subr.mxu0 %v639_v0  ;;  %153 = vperm.xlu0 %637, %v147_v14   ;;  %v281_v18 = vld [vmem:[%s912_s8] sm:$0xff]  ;;  %v46_v25 = vld [vmem:[%s913_s2 + $0x8] sm:$0xff]  ;;  %v47_v29 = vld [vmem:[%s913_s2 + $0x10] sm:$0x1] }
   0x8   :  { %579 = vmatpush3.msra.mxu0 %v41_v4  ;;  %v45_v21 = vld [vmem:[%s913_s2] sm:$0xff]  ;;  %v144_v33 = vld [vmem:[%s909_s3 + $0x8] sm:$0xff]  ;;  %v405_v35 = vld [vmem:[%s915_s5 + $0x18] sm:$0xff] }
   0x9   :  { %580 = vmatprep.subr.mxu0 %v639_v0  ;;  %v278_v34 = vld [vmem:[%s910_s7 + $0x8] sm:$0xff]  ;;  %v145_v36 = vld [vmem:[%s909_s3 + $0x10] sm:$0xff]  ;;  %v146_v39 = vld [vmem:[%s909_s3 + $0x18] sm:$0xff] }
   0xa   :  { %581 = vmatpush3.msra.mxu0 %v40_v5  ;;  %168 = vperm.xlu1 %638, %v150_v15   ;;  %v279_v37 = vld [vmem:[%s910_s7 + $0x10] sm:$0xff]  ;;  %v280_v40 = vld [vmem:[%s910_s7 + $0x18] sm:$0xff]  ;;  %v403_v41 = vld [vmem:[%s915_s5 + $0x8] sm:$0xff] }
   0xb   :  { %582 = vmatprep.subr.mxu0 %v639_v0  ;;  %158 = vperm.xlu0 %637, %v148_v16   ;;  %v404_v38 = vld [vmem:[%s915_s5 + $0x10] sm:$0xff]  ;;  %v402_v42 = vld [vmem:[%s915_s5] sm:$0xff] }
   0xc   :  { %583 = vmatpush3.msra.mxu0 %v39_v6  ;;  %v538_v3 = vld [vmem:[%s918_s6] ss:$0 sm:$0xff] }
   0xd   :  { %585 = vmatmul.mubr.msk.f32.vlgmr.msra.gmra.mxu0 %vm48_vm1, %v36_v7 }
   0xe   :  { %587 = vmatprep.mubr.msk.f32.mxu0 %vm640_vm0, %v639_v0  ;;  %292 = vperm.xlu1 %638, %v282_v17  }
   0xf   :  { %287 = vperm.xlu0 %637, %v281_v18  }
  0x11   :  { %588 = vmatmul.mubr.msk.f32.gmra.mxu0 %vm48_vm1, %v37_v8 }
  0x12   :  { %590 = vmatprep.mubr.msk.f32.mxu0 %vm640_vm0, %v639_v0  ;;  %302 = vperm.xlu1 %638, %v284_v19  }
  0x13   :  { %297 = vperm.xlu0 %637, %v283_v20  }
  0x15   :  { %591 = vmatmul.mubr.msk.f32.gmra.mxu0 %vm48_vm1, %v38_v9 }
  0x16   :  { %611 = vmatprep.mubr.msk.f32.mxu0 %vm138_vm2, %v277_v11 }
  0x81   :  { %v164_v43 = vpop.permute.xlu1 %163 }
  0x82   :  { %v154_v44 = vpop.permute.xlu0 %153 }
  0x85   :  { %v169_v45 = vpop.permute.xlu1 %168 }
  0x86   :  { %v159_v46 = vpop.permute.xlu0 %158 }
  0x89   :  { %v293_v47 = vpop.permute.xlu1 %292 }
  0x8a   :  { %v288_v48 = vpop.permute.xlu0 %287 }
  0x8d   :  { %v303_v53 = vpop.permute.xlu1 %302 }
  0x8e   :  { %v298_v62 = vpop.permute.xlu0 %297 }
  0xcd   :  { %v124_v22 = vpop.f32.mrf.mxu0 }
  0xce   :  { %v125_v23 = vadd.f32 %v124_v22, %v45_v21 }
  0xcf   :  { %v586_v24 = vpop.f32.mrf.mxu0 }
  0xd0   :  { %139 = vst.msk [vmem:[%s914_s9] sm:$0xff] %vm138_vm2, %v125_v23 }
  0xd1   :  { %v129_v26 = vpop.f32.mrf.mxu0 }
  0xd2   :  { %v130_v27 = vadd.f32 %v129_v26, %v46_v25 }
  0xd3   :  { %v589_v28 = vpop.f32.mrf.mxu0 }
  0xd4   :  { %140 = vst.msk [vmem:[%s914_s9 + $0x8] sm:$0xff] %vm138_vm2, %v130_v27 }
  0xd5   :  { %v134_v30 = vpop.f32.mrf.mxu0 }
  0xd6   :  { %v135_v31 = vadd.f32 %v134_v30, %v47_v29 }
  0xd7   :  { %v592_v32 = vpop.f32.mrf.mxu0 }
  0xd8   :  { %593 = vmatprep.subr.msk.mxu1 %vm138_vm2, %v135_v31  ;;  %605 = vmatprep.subr.msk.mxu0 %vm138_vm2, %v135_v31  ;;  %142 = vst.msk [vmem:[%s914_s9 + $0x10] sm:$0x1] %vm141_vm3, %v135_v31 }
  0xd9   :  { %594 = vmatpush3.xpose.msk.msra.mxu1 %vm138_vm2, %v135_v31  ;;  %606 = vmatpush3.xpose.msk.msra.mxu0 %vm138_vm2, %v135_v31 }
  0xda   :  { %595 = vmatprep.subr.msk.mxu1 %vm138_vm2, %v130_v27  ;;  %607 = vmatprep.subr.msk.mxu0 %vm138_vm2, %v130_v27 }
  0xdd   :  { %596 = vmatpush3.xpose.msk.msra.mxu1 %vm138_vm2, %v130_v27  ;;  %608 = vmatpush3.xpose.msk.msra.mxu0 %vm138_vm2, %v130_v27 }
  0xde   :  { %597 = vmatprep.subr.msk.mxu1 %vm138_vm2, %v125_v23  ;;  %609 = vmatprep.subr.msk.mxu0 %vm138_vm2, %v125_v23 }
  0xe1   :  { %598 = vmatpush3.xpose.msk.msra.mxu1 %vm138_vm2, %v125_v23  ;;  %610 = vmatpush3.xpose.msk.msra.mxu0 %vm138_vm2, %v125_v23 }
  0xe2   :  { %617 = vmatprep.subr.mxu1 %v639_v0 }
  0xe4   :  { %600 = vmatmul.mubr.msk.f32.vlgmr.msra.gmra.mxu1 %vm138_vm2, %v144_v33  ;;  %612 = vmatmul.mubr.msk.f32.vlgmr.msra.gmra.mxu0 %vm138_vm2, %v278_v34 }
  0xe5   :  { %618 = vmatpush3.msra.mxu1 %v405_v35  ;;  %602 = vmatprep.mubr.msk.f32.mxu1 %vm138_vm2, %v145_v36 }
  0xe6   :  { %619 = vmatprep.subr.mxu1 %v639_v0  ;;  %614 = vmatprep.mubr.msk.f32.mxu0 %vm138_vm2, %v279_v37 }
  0xe7   :  { %620 = vmatpush3.msra.mxu1 %v404_v38 }
  0xe8   :  { %603 = vmatmul.mubr.msk.f32.gmra.mxu1 %vm138_vm2, %v146_v39  ;;  %615 = vmatmul.mubr.msk.f32.gmra.mxu0 %vm138_vm2, %v280_v40 }
  0xe9   :  { %621 = vmatprep.subr.mxu1 %v639_v0  ;;  %625 = vmatprep.mubr.msk.f32.mxu1 %vm640_vm0, %v639_v0 }
  0xea   :  { %622 = vmatpush3.msra.mxu1 %v403_v41 }
  0xeb   :  { %623 = vmatprep.subr.mxu1 %v639_v0 }
  0xec   :  { %624 = vmatpush3.msra.mxu1 %v402_v42 }
  0xed   :  { %626 = vmatmul.mubr.msk.f32.vlgmr.msra.gmra.mxu1 %vm138_vm2, %v125_v23 }
  0xee   :  { %628 = vmatprep.mubr.msk.f32.mxu1 %vm640_vm0, %v639_v0 }
  0xf1   :  { %629 = vmatmul.mubr.msk.f32.gmra.mxu1 %vm138_vm2, %v130_v27 }
  0xf2   :  { %631 = vmatprep.mubr.msk.f32.mxu1 %vm640_vm0, %v639_v0 }
  0xf5   :  { %632 = vmatmul.mubr.msk.f32.gmra.mxu1 %vm138_vm2, %v135_v31 }
 0x1a4   :  { %v601_v49 = vpop.f32.mrf.mxu1  ;;  %v613_v50 = vpop.f32.mrf.mxu0 }
 0x1a5   :  { %v264_v51 = vadd.f32 %v601_v49, %v159_v46  ;;  %v389_v52 = vadd.f32 %v613_v50, %v293_v47 }
 0x1a6   :  { %v258_v54 = vpop.f32.mrf.mxu1  ;;  %v383_v55 = vpop.f32.mrf.mxu0 }
 0x1a7   :  { %495 = vst.msk [vmem:[%s916_s10 + $0x8] sm:$0xff] %vm493_vm4, %v264_v51  ;;  %502 = vst.msk [vmem:[%s917_s12 + $0x8] sm:$0xff] %vm493_vm4, %v389_v52  ;;  %v259_v56 = vadd.f32 %v258_v54, %v154_v44  ;;  %v384_v57 = vadd.f32 %v383_v55, %v288_v48 }
 0x1a8   :  { %v604_v58 = vpop.f32.mrf.mxu1  ;;  %v616_v59 = vpop.f32.mrf.mxu0 }
 0x1a9   :  { %494 = vst.msk [vmem:[%s916_s10] sm:$0xff] %vm493_vm4, %v259_v56  ;;  %501 = vst.msk [vmem:[%s917_s12] sm:$0xff] %vm493_vm4, %v384_v57  ;;  %v274_v60 = vadd.f32 %v604_v58, %v169_v45  ;;  %v399_v61 = vadd.f32 %v616_v59, %v303_v53 }
 0x1aa   :  { %v268_v63 = vpop.f32.mrf.mxu1  ;;  %v393_v0 = vpop.f32.mrf.mxu0 }
 0x1ab   :  { %497 = vst.msk [vmem:[%s916_s10 + $0x18] sm:$0xff] %vm493_vm4, %v274_v60  ;;  %504 = vst.msk [vmem:[%s917_s12 + $0x18] sm:$0xff] %vm493_vm4, %v399_v61  ;;  %v269_v1 = vadd.f32 %v268_v63, %v164_v43  ;;  %v394_v2 = vadd.f32 %v393_v0, %v298_v62 }
 0x1ad   :  { %496 = vst.msk [vmem:[%s916_s10 + $0x10] sm:$0xff] %vm493_vm4, %v269_v1  ;;  %503 = vst.msk [vmem:[%s917_s12 + $0x10] sm:$0xff] %vm493_vm4, %v394_v2  ;;  %v479_v4 = vpop.f32.mrf.mxu1 }
 0x1ae   :  { %v480_v5 = vadd.f32 %v538_v3, %v479_v4 }
 0x1af   :  { %v627_v6 = vpop.f32.mrf.mxu1 }
 0x1b0   :  { %498 = vst.msk [vmem:[%s919_s11] sm:$0xff] %vm138_vm2, %v480_v5 }
 0x1b1   :  { %v484_v7 = vpop.f32.mrf.mxu1 }
 0x1b2   :  { %v485_v8 = vadd.f32 %v538_v3, %v484_v7 }
 0x1b3   :  { %v630_v9 = vpop.f32.mrf.mxu1 }
 0x1b4   :  { %499 = vst.msk [vmem:[%s919_s11 + $0x8] sm:$0xff] %vm138_vm2, %v485_v8 }
 0x1b5   :  { %v489_v10 = vpop.f32.mrf.mxu1 }
 0x1b6   :  { %v490_v11 = vadd.f32 %v538_v3, %v489_v10 }
 0x1b7   :  { %v633_v12 = vpop.f32.mrf.mxu1 }
 0x1b8   :  { %500 = vst.msk [vmem:[%s919_s11 + $0x10] sm:$0x1] %vm141_vm3, %v490_v11 }

// kernel: vit_forward.4
= control target key start
LH: loop header
LB: loop body
LE: loop exit
PB: predicated region body
PF: predicated region fallthrough
CT: control target
= control target key end

     0   :  { %vm161_vm0 = vcmask 31744   ;;  %v3558_v0 = vmov 0.0   ;;  %vm3559_vm1 = vmmov 0   ;;  %vm263_vm2 = vcmask 138240   ;;  %s3563_s23 = smov 16   ;;  %s3564_s24 = smov 20   ;;  %s4639_s2 = inlined_call_operand.vmem [shape: f32[8,17,4], index: 2, kind: input, shape index: {}]   ;;  %s4640_s1 = inlined_call_operand.vmem [shape: f32[8,17,4], index: 1, kind: input, shape index: {}]   ;;  %s4641_s3 = inlined_call_operand.vmem [shape: f32[8,17,4], index: 3, kind: input, shape index: {}]   ;;  %s4642_s4 = inlined_call_operand.vmem [shape: f32[32,32], index: 4, kind: input, shape index: {}]   ;;  %s4643_s0 = inlined_call_operand.vmem [shape: f32[17,32], index: 0, kind: input, shape index: {}]   ;;  %s4644_s6 = inlined_call_operand.vmem [shape: f32[17,1], index: 6, kind: input, shape index: {}]   ;;  %s4645_s7 = inlined_call_operand.vmem [shape: f32[17,1], index: 7, kind: input, shape index: {}]   ;;  %s4646_s5 = inlined_call_operand.vmem [shape: f32[1,32], index: 5, kind: input, shape index: {}]   ;;  %s4647_s11 = inlined_call_operand.vmem [shape: f32[32,1], index: 11, kind: input, shape index: {}]   ;;  %s4648_s15 = inlined_call_operand.vmem [shape: f32[32,1], index: 15, kind: input, shape index: {}]   ;;  %s4649_s8 = inlined_call_operand.vmem [shape: f32[32,32], index: 8, kind: input, shape index: {}]   ;;  %s4650_s10 = inlined_call_operand.vmem [shape: f32[32,32], index: 10, kind: input, shape index: {}]   ;;  %s4651_s14 = inlined_call_operand.vmem [shape: f32[32,32], index: 14, kind: input, shape index: {}]   ;;  %s4652_s9 = inlined_call_operand.vmem [shape: f32[1,32], index: 9, kind: input, shape index: {}]   ;;  %s4653_s16 = inlined_call_operand.vmem [shape: f32[17,32], index: 16, kind: output, shape index: {0}]   ;;  %s4654_s12 = inlined_call_operand.vmem [shape: f32[32,32], index: 12, kind: input, shape index: {}]   ;;  %s4655_s17 = inlined_call_operand.vmem [shape: f32[32,17], index: 17, kind: output, shape index: {1}]   ;;  %s4656_s19 = inlined_call_operand.vmem [shape: f32[32,17], index: 19, kind: output, shape index: {3}]   ;;  %s4657_s13 = inlined_call_operand.vmem [shape: f32[1,32], index: 13, kind: input, shape index: {}]   ;;  %s4658_s18 = inlined_call_operand.vmem [shape: f32[17,32], index: 18, kind: output, shape index: {2}]  }
   0x1   :  { %4663 = sst [smem:[#allocation3_spill]] %s4639_s2  ;;  %3123 = vmatprep.subr.mxu0 %v3558_v0  ;;  %3129 = vmatprep.mubr.msk.f32.mxu0 %vm3559_vm1, %v3558_v0  ;;  %vm270_vm3 = vcmask 131072   ;;  %vm307_vm4 = vcmask 1040384   ;;  %vm393_vm5 = vcmask 24576   ;;  %vm66_vm6 = vcmask 261120  }
   0x2   :  { %4664 = sst [smem:[#allocation4_spill]] %s4640_s1  ;;  %3138 = vmatprep.subr.mxu1 %v3558_v0  ;;  %3144 = vmatprep.mubr.msk.f32.mxu1 %vm3559_vm1, %v3558_v0  ;;  %vm645_vm7 = vcmask 64544   ;;  %vm73_vm8 = vcmask 253952   ;;  %vm648_vm9 = vcmask 57376   ;;  %vm900_vm10 = vcmask 97344  }
   0x3   :  { %4665 = sst [smem:[#allocation5_spill]] %s4641_s3  ;;  %s3562_s3 = smov 12   ;;  %vm903_vm11 = vcmask 90176   ;;  %vm1155_vm12 = vcmask 130144   ;;  %vm1158_vm13 = vcmask 122976   ;;  %vm1410_vm14 = vcmask 162944  }
   0x4   :  { %4666 = sst [smem:[#allocation6_spill]] %s4642_s4  ;;  %vm1665_vm15 = vcmask 195744  }
   0x5   :  { %s4667_s20 = sld [smem:[#allocation3_spill]] }
   0x6   :  { %s4668_s25 = sld [smem:[#allocation4_spill]] }
   0x7   :  { %s4669_s30 = sld [smem:[#allocation5_spill]] }
   0x8   :  { %s4670_s27 = sld [smem:[#allocation6_spill]] }
   0xb   :  { %v157_v1 = vld [vmem:[%s4667_s20 + $0x10] sm:$0x1]  ;;  %v156_v2 = vld [vmem:[%s4667_s20 + $0x8] sm:$0xff]  ;;  %v155_v3 = vld [vmem:[%s4667_s20] sm:$0xff] }
   0xc   :  { %3124 = vmatpush3.xpose.msk.msra.mxu0 %vm161_vm0, %v157_v1  ;;  %v152_v4 = vld [vmem:[%s4668_s25] sm:$0xff]  ;;  %v153_v5 = vld [vmem:[%s4668_s25 + $0x8] sm:$0xff]  ;;  %v154_v6 = vld [vmem:[%s4668_s25 + $0x10] sm:$0x1] }
   0xd   :  { %3125 = vmatprep.subr.mxu0 %v3558_v0  ;;  %v160_v34 = vld [vmem:[%s4669_s30 + $0x10] sm:$0x1]  ;;  %v159_v35 = vld [vmem:[%s4669_s30 + $0x8] sm:$0xff]  ;;  %v158_v36 = vld [vmem:[%s4669_s30] sm:$0xff] }
   0xe   :  { %3139 = vmatpush3.msk.msra.mxu1 %vm307_vm4, %v160_v34  ;;  %v2838_v42 = vld [vmem:[%s4667_s20 + $0x28] sm:$0x1]  ;;  %v2837_v45 = vld [vmem:[%s4667_s20 + $0x20] sm:$0xff]  ;;  %v2836_v48 = vld [vmem:[%s4667_s20 + $0x18] sm:$0xff] }
   0xf   :  { %3140 = vmatprep.subr.mxu1 %v3558_v0  ;;  %v2833_v49 = vld [vmem:[%s4668_s25 + $0x18] sm:$0xff]  ;;  %v2857_v50 = vld [vmem:[%s4667_s20 + $0x40] sm:$0x1]  ;;  %v2835_v53 = vld [vmem:[%s4668_s25 + $0x28] sm:$0x1] }
  0x10   :  { %3126 = vmatpush3.xpose.msk.msra.mxu0 %vm161_vm0, %v156_v2  ;;  %3141 = vmatpush3.msra.mxu1 %v159_v35  ;;  %v2834_v51 = vld [vmem:[%s4668_s25 + $0x20] sm:$0xff]  ;;  %v2856_v52 = vld [vmem:[%s4667_s20 + $0x38] sm:$0xff]  ;;  %v2855_v54 = vld [vmem:[%s4667_s20 + $0x30] sm:$0xff] }
  0x11   :  { %3127 = vmatprep.subr.mxu0 %v3558_v0  ;;  %3142 = vmatprep.subr.mxu1 %v3558_v0  ;;  %v2852_v55 = vld [vmem:[%s4668_s25 + $0x30] sm:$0xff]  ;;  %v2876_v56 = vld [vmem:[%s4667_s20 + $0x58] sm:$0x1]  ;;  %v2854_v59 = vld [vmem:[%s4668_s25 + $0x40] sm:$0x1] }
  0x12   :  { %3143 = vmatpush3.msra.mxu1 %v158_v36  ;;  %v2853_v57 = vld [vmem:[%s4668_s25 + $0x38] sm:$0xff]  ;;  %v2875_v58 = vld [vmem:[%s4667_s20 + $0x50] sm:$0xff]  ;;  %v2874_v60 = vld [vmem:[%s4667_s20 + $0x48] sm:$0xff] }
  0x13   :  { %3153 = vmatprep.subr.mxu1 %v3558_v0  ;;  %v2871_v61 = vld [vmem:[%s4668_s25 + $0x48] sm:$0xff]  ;;  %v2895_v62 = vld [vmem:[%s4667_s20 + $0x70] sm:$0x1]  ;;  %v2873_v2 = vld [vmem:[%s4668_s25 + $0x58] sm:$0x1] }
  0x14   :  { %3128 = vmatpush3.xpose.msk.msra.mxu0 %vm161_vm0, %v155_v3  ;;  %v2872_v63 = vld [vmem:[%s4668_s25 + $0x50] sm:$0xff]  ;;  %v2894_v1 = vld [vmem:[%s4667_s20 + $0x68] sm:$0xff]  ;;  %v2893_v3 = vld [vmem:[%s4667_s20 + $0x60] sm:$0xff] }
  0x15   :  { %3168 = vmatprep.subr.mxu0 %v3558_v0 }
  0x17   :  { %3130 = vmatmul.mubr.msk.f32.vlgmr.msra.gmra.mxu0 %vm161_vm0, %v152_v4  ;;  %v2890_v4 = vld [vmem:[%s4668_s25 + $0x60] sm:$0xff] }
  0x18   :  { %3132 = vmatprep.mubr.msk.f32.mxu0 %vm3559_vm1, %v3558_v0 }
  0x1b   :  { %3133 = vmatmul.mubr.msk.f32.gmra.mxu0 %vm161_vm0, %v153_v5  ;;  %v2914_v5 = vld [vmem:[%s4667_s20 + $0x88] sm:$0x1] }
  0x1c   :  { %3135 = vmatprep.mubr.msk.f32.mxu0 %vm3559_vm1, %v3558_v0 }
  0x1f   :  { %3136 = vmatmul.mubr.msk.f32.gmra.mxu0 %vm161_vm0, %v154_v6  ;;  %v2891_v6 = vld [vmem:[%s4668_s25 + $0x68] sm:$0xff] }
  0x20   :  { %3174 = vmatprep.mubr.msk.f32.mxu0 %vm3559_vm1, %v3558_v0 }
  0xd7   :  { %v246_v7 = vpop.f32.mrf.mxu0 }
  0xd8   :  { %v260_v8 = vmul.f32 0.25, %v246_v7  ;;  %v2913_v7 = vld [vmem:[%s4667_s20 + $0x80] sm:$0xff] }
  0xd9   :  { %v3131_v9 = vpop.f32.mrf.mxu0 }
  0xda   :  { %v264_v10 = vsel %vm263_vm2, %v260_v8, -inf  ;;  %v2912_v9 = vld [vmem:[%s4667_s20 + $0x78] sm:$0xff] }
  0xdb   :  { %265 = vmax.xlane.f32.xlu0 %v264_v10  ;;  %v251_v11 = vpop.f32.mrf.mxu0  ;;  %v2909_v10 = vld [vmem:[%s4668_s25 + $0x78] sm:$0xff] }
  0xdc   :  { %v261_v12 = vmul.f32 0.25, %v251_v11  ;;  %v2933_v11 = vld [vmem:[%s4667_s20 + $0xa0] sm:$0x1] }
  0xdd   :  { %v3134_v13 = vpop.f32.mrf.mxu0 }
  0xde   :  { %v267_v14 = vsel %vm263_vm2, %v261_v12, -inf  ;;  %v2932_v13 = vld [vmem:[%s4667_s20 + $0x98] sm:$0xff] }
  0xdf   :  { %268 = vmax.xlane.f32.xlu0 %v267_v14  ;;  %v256_v15 = vpop.f32.mrf.mxu0  ;;  %v2911_v14 = vld [vmem:[%s4668_s25 + $0x88] sm:$0x1] }
  0xe0   :  { %v262_v16 = vmul.f32 0.25, %v256_v15  ;;  %v2931_v15 = vld [vmem:[%s4667_s20 + $0x90] sm:$0xff] }
  0xe1   :  { %v3137_v17 = vpop.f32.mrf.mxu0 }
  0xe2   :  { %v271_v18 = vsel %vm270_vm3, %v262_v16, -inf  ;;  %v2952_v17 = vld [vmem:[%s4667_s20 + $0xb8] sm:$0x1] }
  0xe3   :  { %272 = vmax.xlane.f32.xlu1 %v271_v18  ;;  %v2929_v18 = vld [vmem:[%s4668_s25 + $0x98] sm:$0xff] }
 0x164   :  { %v266_v19 = vpop.xlane.xlu0 %265 }
 0x165   :  { %v274_v20 = vsub.f32 %v260_v8, %v266_v19  ;;  %v2892_v8 = vld [vmem:[%s4668_s25 + $0x70] sm:$0x1] }
 0x166   :  { %v2951_v19 = vld [vmem:[%s4667_s20 + $0xb0] sm:$0xff] }
 0x167   :  { %v277_v21 = vmul.f32 1.442695, %v274_v20  ;;  %v2930_v20 = vld [vmem:[%s4668_s25 + $0xa0] sm:$0x1] }
 0x168   :  { %v269_v22 = vpop.xlane.xlu0 %268 }
 0x169   :  { %3450 = vpow2.f32 %v277_v21  ;;  %v275_v23 = vsub.f32 %v261_v12, %v269_v22  ;;  %v2910_v12 = vld [vmem:[%s4668_s25 + $0x80] sm:$0xff]  ;;  %v2950_v21 = vld [vmem:[%s4667_s20 + $0xa8] sm:$0xff]  ;;  %s3565_s20 = smov 24  }
 0x16a   :  { %v2947_v22 = vld [vmem:[%s4668_s25 + $0xa8] sm:$0xff] }
 0x16b   :  { %v279_v24 = vmul.f32 1.442695, %v275_v23  ;;  %v2948_v23 = vld [vmem:[%s4668_s25 + $0xb0] sm:$0xff] }
 0x16c   :  { %v273_v25 = vpop.xlane.xlu1 %272 }
 0x16d   :  { %3452 = vpow2.f32 %v279_v24  ;;  %v276_v26 = vsub.f32 %v262_v16, %v273_v25  ;;  %v2928_v16 = vld [vmem:[%s4668_s25 + $0x90] sm:$0xff]  ;;  %v2949_v24 = vld [vmem:[%s4668_s25 + $0xb8] sm:$0x1]  ;;  %s3561_s25 = smov 8  }
 0x16f   :  { %v281_v27 = vmul.f32 1.442695, %v276_v26 }
 0x171   :  { %3454 = vpow2.f32 %v281_v27 }
 0x176   :  { %v3451_v28 = vpop.eup %3450 }
 0x177   :  { %v283_v29 = vsel %vm263_vm2, %v3451_v28, 0.0 }
 0x178   :  { %284 = vadd.xlane.f32.xlu1 %v283_v29 }
 0x17a   :  { %v3453_v30 = vpop.eup %3452 }
 0x17b   :  { %v286_v31 = vsel %vm263_vm2, %v3453_v30, 0.0 }
 0x17c   :  { %287 = vadd.xlane.f32.xlu0 %v286_v31 }
 0x17e   :  { %v3455_v32 = vpop.eup %3454 }
 0x17f   :  { %v289_v33 = vsel %vm270_vm3, %v3455_v32, 0.0 }
 0x180   :  { %290 = vadd.xlane.f32.xlu1 %v289_v33 }
 0x201   :  { %v285_v37 = vpop.xlane.xlu1 %284 }
 0x202   :  { %3456 = vrcp.f32 %v285_v37 }
 0x205   :  { %v288_v38 = vpop.xlane.xlu0 %287 }
 0x206   :  { %3458 = vrcp.f32 %v288_v38 }
 0x209   :  { %v291_v39 = vpop.xlane.xlu1 %290 }
 0x20a   :  { %3460 = vrcp.f32 %v291_v39 }
 0x20f   :  { %v3457_v40 = vpop.eup %3456 }
 0x210   :  { %v295_v41 = vmul.f32 %v3457_v40, %v3451_v28 }
 0x212   :  { %3145 = vmatmul.mubr.msk.f32.vlgmr.msra.gmra.mxu1 %vm263_vm2, %v295_v41 }
 0x213   :  { %v3459_v43 = vpop.eup %3458  ;;  %3154 = vmatpush3.xpose.msk.msra.mxu1 %vm161_vm0, %v2838_v42  ;;  %3147 = vmatprep.mubr.msk.f32.mxu1 %vm3559_vm1, %v3558_v0 }
 0x214   :  { %v296_v44 = vmul.f32 %v3459_v43, %v3453_v30  ;;  %3155 = vmatprep.subr.mxu1 %v3558_v0 }
 0x216   :  { %3148 = vmatmul.mubr.msk.f32.gmra.mxu1 %vm263_vm2, %v296_v44 }
 0x217   :  { %v3461_v46 = vpop.eup %3460  ;;  %3156 = vmatpush3.xpose.msk.msra.mxu1 %vm161_vm0, %v2837_v45  ;;  %3150 = vmatprep.mubr.msk.f32.mxu1 %vm3559_vm1, %v3558_v0 }
 0x218   :  { %v297_v47 = vmul.f32 %v3461_v46, %v3455_v32  ;;  %3157 = vmatprep.subr.mxu1 %v3558_v0 }
 0x21a   :  { %3151 = vmatmul.mubr.msk.f32.gmra.mxu1 %vm263_vm2, %v297_v47 }
 0x21b   :  { %3158 = vmatpush3.xpose.msk.msra.mxu1 %vm161_vm0, %v2836_v48  ;;  %3159 = vmatprep.mubr.msk.f32.mxu1 %vm3559_vm1, %v3558_v0 }
 0x21c   :  { %3183 = vmatprep.subr.mxu1 %v3558_v0 }
 0x21e   :  { %3160 = vmatmul.mubr.msk.f32.vlgmr.msra.gmra.mxu1 %vm161_vm0, %v2833_v49 }
 0x21f   :  { %3184 = vmatpush3.xpose.msk.msra.mxu1 %vm161_vm0, %v2857_v50  ;;  %3162 = vmatprep.mubr.msk.f32.mxu1 %vm3559_vm1, %v3558_v0 }
 0x220   :  { %3185 = vmatprep.subr.mxu1 %v3558_v0 }
 0x222   :  { %3163 = vmatmul.mubr.msk.f32.gmra.mxu1 %vm161_vm0, %v2834_v51 }
 0x223   :  { %3186 = vmatpush3.xpose.msk.msra.mxu1 %vm161_vm0, %v2856_v52  ;;  %3165 = vmatprep.mubr.msk.f32.mxu1 %vm3559_vm1, %v3558_v0 }
 0x224   :  { %3187 = vmatprep.subr.mxu1 %v3558_v0 }
 0x226   :  { %3166 = vmatmul.mubr.msk.f32.gmra.mxu1 %vm161_vm0, %v2835_v53 }
 0x227   :  { %3188 = vmatpush3.xpose.msk.msra.mxu1 %vm161_vm0, %v2855_v54  ;;  %3189 = vmatprep.mubr.msk.f32.mxu1 %vm3559_vm1, %v3558_v0 }
 0x228   :  { %3213 = vmatprep.subr.mxu1 %v3558_v0 }
 0x22a   :  { %3190 = vmatmul.mubr.msk.f32.vlgmr.msra.gmra.mxu1 %vm161_vm0, %v2852_v55 }
 0x22b   :  { %3214 = vmatpush3.xpose.msk.msra.mxu1 %vm161_vm0, %v2876_v56  ;;  %3192 = vmatprep.mubr.msk.f32.mxu1 %vm3559_vm1, %v3558_v0 }
 0x22c   :  { %3215 = vmatprep.subr.mxu1 %v3558_v0 }
 0x22e   :  { %3193 = vmatmul.mubr.msk.f32.gmra.mxu1 %vm161_vm0, %v2853_v57 }
 0x22f   :  { %3216 = vmatpush3.xpose.msk.msra.mxu1 %vm161_vm0, %v2875_v58  ;;  %3195 = vmatprep.mubr.msk.f32.mxu1 %vm3559_vm1, %v3558_v0 }
 0x230   :  { %3217 = vmatprep.subr.mxu1 %v3558_v0 }
 0x232   :  { %3196 = vmatmul.mubr.msk.f32.gmra.mxu1 %vm161_vm0, %v2854_v59 }
 0x233   :  { %3218 = vmatpush3.xpose.msk.msra.mxu1 %vm161_vm0, %v2874_v60  ;;  %3219 = vmatprep.mubr.msk.f32.mxu1 %vm3559_vm1, %v3558_v0 }
 0x234   :  { %3243 = vmatprep.subr.mxu1 %v3558_v0 }
 0x236   :  { %3220 = vmatmul.mubr.msk.f32.vlgmr.msra.gmra.mxu1 %vm161_vm0, %v2871_v61 }
 0x237   :  { %3244 = vmatpush3.xpose.msk.msra.mxu1 %vm161_vm0, %v2895_v62  ;;  %3222 = vmatprep.mubr.msk.f32.mxu1 %vm3559_vm1, %v3558_v0 }
 0x238   :  { %3245 = vmatprep.subr.mxu1 %v3558_v0 }
 0x23a   :  { %3223 = vmatmul.mubr.msk.f32.gmra.mxu1 %vm161_vm0, %v2872_v63 }
 0x23b   :  { %3246 = vmatpush3.xpose.msk.msra.mxu1 %vm161_vm0, %v2894_v1  ;;  %3225 = vmatprep.mubr.msk.f32.mxu1 %vm3559_vm1, %v3558_v0 }
 0x23c   :  { %3247 = vmatprep.subr.mxu1 %v3558_v0 }
 0x23e   :  { %3226 = vmatmul.mubr.msk.f32.gmra.mxu1 %vm161_vm0, %v2873_v2 }
 0x23f   :  { %3248 = vmatpush3.xpose.msk.msra.mxu1 %vm161_vm0, %v2893_v3  ;;  %3249 = vmatprep.mubr.msk.f32.mxu1 %vm3559_vm1, %v3558_v0 }
 0x240   :  { %3273 = vmatprep.subr.mxu1 %v3558_v0 }
 0x242   :  { %3250 = vmatmul.mubr.msk.f32.vlgmr.msra.gmra.mxu1 %vm161_vm0, %v2890_v4 }
 0x243   :  { %3274 = vmatpush3.xpose.msk.msra.mxu1 %vm161_vm0, %v2914_v5  ;;  %3252 = vmatprep.mubr.msk.f32.mxu1 %vm3559_vm1, %v3558_v0 }
 0x244   :  { %3275 = vmatprep.subr.mxu1 %v3558_v0 }
 0x246   :  { %3253 = vmatmul.mubr.msk.f32.gmra.mxu1 %vm161_vm0, %v2891_v6 }
 0x247   :  { %3276 = vmatpush3.xpose.msk.msra.mxu1 %vm161_vm0, %v2913_v7  ;;  %3255 = vmatprep.mubr.msk.f32.mxu1 %vm3559_vm1, %v3558_v0 }
 0x248   :  { %3277 = vmatprep.subr.mxu1 %v3558_v0 }
 0x24a   :  { %3256 = vmatmul.mubr.msk.f32.gmra.mxu1 %vm161_vm0, %v2892_v8 }
 0x24b   :  { %3278 = vmatpush3.xpose.msk.msra.mxu1 %vm161_vm0, %v2912_v9  ;;  %3279 = vmatprep.mubr.msk.f32.mxu1 %vm3559_vm1, %v3558_v0 }
 0x24c   :  { %3303 = vmatprep.subr.mxu1 %v3558_v0 }
 0x24e   :  { %3280 = vmatmul.mubr.msk.f32.vlgmr.msra.gmra.mxu1 %vm161_vm0, %v2909_v10 }
 0x24f   :  { %3304 = vmatpush3.xpose.msk.msra.mxu1 %vm161_vm0, %v2933_v11  ;;  %3282 = vmatprep.mubr.msk.f32.mxu1 %vm3559_vm1, %v3558_v0 }
 0x250   :  { %3305 = vmatprep.subr.mxu1 %v3558_v0 }
 0x252   :  { %3283 = vmatmul.mubr.msk.f32.gmra.mxu1 %vm161_vm0, %v2910_v12 }
 0x253   :  { %3306 = vmatpush3.xpose.msk.msra.mxu1 %vm161_vm0, %v2932_v13  ;;  %3285 = vmatprep.mubr.msk.f32.mxu1 %vm3559_vm1, %v3558_v0 }
 0x254   :  { %3307 = vmatprep.subr.mxu1 %v3558_v0 }
 0x256   :  { %3286 = vmatmul.mubr.msk.f32.gmra.mxu1 %vm161_vm0, %v2911_v14 }
 0x257   :  { %3308 = vmatpush3.xpose.msk.msra.mxu1 %vm161_vm0, %v2931_v15  ;;  %3309 = vmatprep.mubr.msk.f32.mxu1 %vm3559_vm1, %v3558_v0 }
 0x258   :  { %3333 = vmatprep.subr.mxu1 %v3558_v0 }
 0x25a   :  { %3310 = vmatmul.mubr.msk.f32.vlgmr.msra.gmra.mxu1 %vm161_vm0, %v2928_v16 }
 0x25b   :  { %3334 = vmatpush3.xpose.msk.msra.mxu1 %vm161_vm0, %v2952_v17  ;;  %3312 = vmatprep.mubr.msk.f32.mxu1 %vm3559_vm1, %v3558_v0 }
 0x25c   :  { %3335 = vmatprep.subr.mxu1 %v3558_v0 }
 0x25e   :  { %3313 = vmatmul.mubr.msk.f32.gmra.mxu1 %vm161_vm0, %v2929_v18 }
 0x25f   :  { %3336 = vmatpush3.xpose.msk.msra.mxu1 %vm161_vm0, %v2951_v19  ;;  %3315 = vmatprep.mubr.msk.f32.mxu1 %vm3559_vm1, %v3558_v0 }
 0x260   :  { %3337 = vmatprep.subr.mxu1 %v3558_v0 }
 0x262   :  { %3316 = vmatmul.mubr.msk.f32.gmra.mxu1 %vm161_vm0, %v2930_v20 }
 0x263   :  { %3338 = vmatpush3.xpose.msk.msra.mxu1 %vm161_vm0, %v2950_v21  ;;  %3339 = vmatprep.mubr.msk.f32.mxu1 %vm3559_vm1, %v3558_v0 }
 0x264   :  { %3363 = vmatprep.subr.mxu1 %v3558_v0 }
 0x266   :  { %3340 = vmatmul.mubr.msk.f32.vlgmr.msra.gmra.mxu1 %vm161_vm0, %v2947_v22 }
 0x267   :  { %3342 = vmatprep.mubr.msk.f32.mxu1 %vm3559_vm1, %v3558_v0 }
 0x26a   :  { %3343 = vmatmul.mubr.msk.f32.gmra.mxu1 %vm161_vm0, %v2948_v23 }
 0x26b   :  { %3345 = vmatprep.mubr.msk.f32.mxu1 %vm3559_vm1, %v3558_v0 }
 0x26e   :  { %3346 = vmatmul.mubr.msk.f32.gmra.mxu1 %vm161_vm0, %v2949_v24 }
 0x26f   :  { %3371 = vmatprep.mubr.msk.f32.mxu1 %vm3559_vm1, %v3558_v0 }
 0x2d2   :  { %v377_v25 = vpop.f32.mrf.mxu1 }
 0x2d3   :  { %391 = vst.msk [vmem:[#allocation2] sm:$0xff] %vm161_vm0, %v377_v25 }
 0x2d4   :  { %v3146_v26 = vpop.f32.mrf.mxu1 }
 0x2d6   :  { %v382_v27 = vpop.f32.mrf.mxu1 }
 0x2d7   :  { %392 = vst.msk [vmem:[#allocation2 + $0x8] sm:$0xff] %vm161_vm0, %v382_v27  ;;  %vm1920_vm0 = vcmask 228544  }
 0x2d8   :  { %v3149_v28 = vpop.f32.mrf.mxu1 }
 0x2da   :  { %v387_v29 = vpop.f32.mrf.mxu1 }
 0x2db   :  { %394 = vst.msk [vmem:[#allocation2 + $0x10] sm:$0x1] %vm393_vm5, %v387_v29  ;;  %vm1668_vm5 = vcmask 188576  }
 0x2dc   :  { %v3152_v30 = vpop.f32.mrf.mxu1 }
 0x2de   :  { %v491_v31 = vpop.f32.mrf.mxu1 }
 0x2df   :  { %v3968_v32 = vmul.f32 0.25, %v491_v31 }
 0x2e0   :  { %v3161_v33 = vpop.f32.mrf.mxu1 }
 0x2e1   :  { %v508_v34 = vsel %vm263_vm2, %v3968_v32, -inf }
 0x2e2   :  { %509 = vmax.xlane.f32.xlu0 %v508_v34  ;;  %v496_v35 = vpop.f32.mrf.mxu1 }
 0x2e3   :  { %v3972_v36 = vmul.f32 0.25, %v496_v35 }
 0x2e4   :  { %v3164_v37 = vpop.f32.mrf.mxu1 }
 0x2e5   :  { %v511_v38 = vsel %vm263_vm2, %v3972_v36, -inf }
 0x2e6   :  { %512 = vmax.xlane.f32.xlu1 %v511_v38  ;;  %v501_v39 = vpop.f32.mrf.mxu1 }
 0x2e7   :  { %v3976_v40 = vmul.f32 0.25, %v501_v39 }
 0x2e8   :  { %v3167_v41 = vpop.f32.mrf.mxu1 }
 0x2e9   :  { %v514_v42 = vsel %vm270_vm3, %v3976_v40, -inf }
 0x2ea   :  { %515 = vmax.xlane.f32.xlu0 %v514_v42  ;;  %v746_v43 = vpop.f32.mrf.mxu1 }
 0x2eb   :  { %v3980_v44 = vmul.f32 0.25, %v746_v43 }
 0x2ec   :  { %v3191_v45 = vpop.f32.mrf.mxu1 }
 0x2ed   :  { %v763_v46 = vsel %vm263_vm2, %v3980_v44, -inf }
 0x2ee   :  { %764 = vmax.xlane.f32.xlu1 %v763_v46  ;;  %v751_v47 = vpop.f32.mrf.mxu1 }
 0x2ef   :  { %v3984_v48 = vmul.f32 0.25, %v751_v47 }
 0x2f0   :  { %v3194_v49 = vpop.f32.mrf.mxu1 }
 0x2f1   :  { %v766_v50 = vsel %vm263_vm2, %v3984_v48, -inf }
 0x2f2   :  { %767 = vmax.xlane.f32.xlu0 %v766_v50  ;;  %v756_v51 = vpop.f32.mrf.mxu1 }
 0x2f3   :  { %v3988_v52 = vmul.f32 0.25, %v756_v51 }
 0x2f4   :  { %v3197_v53 = vpop.f32.mrf.mxu1 }
 0x2f5   :  { %v769_v54 = vsel %vm270_vm3, %v3988_v52, -inf }
 0x2f6   :  { %770 = vmax.xlane.f32.xlu1 %v769_v54  ;;  %v1001_v55 = vpop.f32.mrf.mxu1 }
 0x2f7   :  { %v3992_v56 = vmul.f32 0.25, %v1001_v55 }
 0x2f8   :  { %v3221_v57 = vpop.f32.mrf.mxu1 }
 0x2f9   :  { %v1018_v58 = vsel %vm263_vm2, %v3992_v56, -inf }
 0x2fa   :  { %1019 = vmax.xlane.f32.xlu0 %v1018_v58  ;;  %v1006_v59 = vpop.f32.mrf.mxu1 }
 0x2fb   :  { %v3996_v60 = vmul.f32 0.25, %v1006_v59 }
 0x2fc   :  { %v3224_v61 = vpop.f32.mrf.mxu1 }
 0x2fd   :  { %v1021_v62 = vsel %vm263_vm2, %v3996_v60, -inf }
 0x2fe   :  { %1022 = vmax.xlane.f32.xlu1 %v1021_v62  ;;  %v1011_v63 = vpop.f32.mrf.mxu1 }
 0x2ff   :  { %v4000_v1 = vmul.f32 0.25, %v1011_v63 }
 0x300   :  { %v3227_v2 = vpop.f32.mrf.mxu1 }
 0x301   :  { %v1024_v3 = vsel %vm270_vm3, %v4000_v1, -inf }
 0x302   :  { %1025 = vmax.xlane.f32.xlu0 %v1024_v3  ;;  %v1256_v4 = vpop.f32.mrf.mxu1 }
 0x303   :  { %v4004_v5 = vmul.f32 0.25, %v1256_v4 }
 0x304   :  { %v3251_v6 = vpop.f32.mrf.mxu1 }
 0x305   :  { %v1273_v7 = vsel %vm263_vm2, %v4004_v5, -inf }
 0x306   :  { %1274 = vmax.xlane.f32.xlu1 %v1273_v7  ;;  %v1261_v8 = vpop.f32.mrf.mxu1 }
 0x307   :  { %v4008_v9 = vmul.f32 0.25, %v1261_v8 }
 0x308   :  { %v3254_v10 = vpop.f32.mrf.mxu1 }
 0x309   :  { %v1276_v11 = vsel %vm263_vm2, %v4008_v9, -inf }
 0x30a   :  { %1277 = vmax.xlane.f32.xlu0 %v1276_v11  ;;  %v1266_v12 = vpop.f32.mrf.mxu1 }
 0x30b   :  { %v4012_v13 = vmul.f32 0.25, %v1266_v12 }
 0x30c   :  { %v3257_v14 = vpop.f32.mrf.mxu1 }
 0x30d   :  { %v1279_v15 = vsel %vm270_vm3, %v4012_v13, -inf }
 0x30e   :  { %1280 = vmax.xlane.f32.xlu1 %v1279_v15  ;;  %v1511_v16 = vpop.f32.mrf.mxu1 }
 0x30f   :  { %v4016_v17 = vmul.f32 0.25, %v1511_v16 }
 0x310   :  { %v3281_v18 = vpop.f32.mrf.mxu1 }
 0x311   :  { %v1528_v19 = vsel %vm263_vm2, %v4016_v17, -inf }
 0x312   :  { %1529 = vmax.xlane.f32.xlu0 %v1528_v19  ;;  %v1516_v20 = vpop.f32.mrf.mxu1 }
 0x313   :  { %v4020_v21 = vmul.f32 0.25, %v1516_v20 }
 0x314   :  { %v3284_v22 = vpop.f32.mrf.mxu1 }
 0x315   :  { %v1531_v23 = vsel %vm263_vm2, %v4020_v21, -inf }
 0x316   :  { %1532 = vmax.xlane.f32.xlu1 %v1531_v23  ;;  %v1521_v24 = vpop.f32.mrf.mxu1 }
 0x317   :  { %v4024_v25 = vmul.f32 0.25, %v1521_v24 }
 0x318   :  { %v3287_v26 = vpop.f32.mrf.mxu1 }
 0x319   :  { %v1534_v27 = vsel %vm270_vm3, %v4024_v25, -inf }
 0x31a   :  { %1535 = vmax.xlane.f32.xlu0 %v1534_v27  ;;  %v1766_v28 = vpop.f32.mrf.mxu1 }
 0x31b   :  { %v4028_v29 = vmul.f32 0.25, %v1766_v28 }
 0x31c   :  { %v3311_v30 = vpop.f32.mrf.mxu1 }
 0x31d   :  { %v1783_v31 = vsel %vm263_vm2, %v4028_v29, -inf }
 0x31e   :  { %1784 = vmax.xlane.f32.xlu1 %v1783_v31  ;;  %v1771_v33 = vpop.f32.mrf.mxu1 }
 0x31f   :  { %v4032_v34 = vmul.f32 0.25, %v1771_v33 }
 0x320   :  { %v3314_v35 = vpop.f32.mrf.mxu1 }
 0x321   :  { %v1786_v37 = vsel %vm263_vm2, %v4032_v34, -inf }
 0x322   :  { %1787 = vmax.xlane.f32.xlu0 %v1786_v37  ;;  %v1776_v38 = vpop.f32.mrf.mxu1 }
 0x323   :  { %v4036_v39 = vmul.f32 0.25, %v1776_v38 }
 0x324   :  { %v3317_v41 = vpop.f32.mrf.mxu1 }
 0x325   :  { %v1789_v42 = vsel %vm270_vm3, %v4036_v39, -inf }
 0x326   :  { %1790 = vmax.xlane.f32.xlu1 %v1789_v42  ;;  %v2021_v43 = vpop.f32.mrf.mxu1 }
 0x327   :  { %v4040_v45 = vmul.f32 0.25, %v2021_v43 }
 0x328   :  { %v3341_v46 = vpop.f32.mrf.mxu1 }
 0x329   :  { %v2038_v47 = vsel %vm263_vm2, %v4040_v45, -inf }
 0x32a   :  { %2039 = vmax.xlane.f32.xlu0 %v2038_v47  ;;  %v2026_v49 = vpop.f32.mrf.mxu1 }
 0x32b   :  { %v4044_v50 = vmul.f32 0.25, %v2026_v49 }
 0x32c   :  { %v3344_v51 = vpop.f32.mrf.mxu1 }
 0x32d   :  { %v2041_v53 = vsel %vm263_vm2, %v4044_v50, -inf }
 0x32e   :  { %2042 = vmax.xlane.f32.xlu1 %v2041_v53  ;;  %v2031_v54 = vpop.f32.mrf.mxu1 }
 0x32f   :  { %v4048_v55 = vmul.f32 0.25, %v2031_v54 }
 0x330   :  { %v3347_v57 = vpop.f32.mrf.mxu1 }
 0x331   :  { %v2044_v58 = vsel %vm270_vm3, %v4048_v55, -inf }
 0x332   :  { %2045 = vmax.xlane.f32.xlu0 %v2044_v58 }
 0x36b   :  { %v510_v59 = vpop.xlane.xlu0 %509 }
 0x36c   :  { %v517_v61 = vsub.f32 %v3968_v32, %v510_v59 }
 0x36e   :  { %v520_v62 = vmul.f32 1.442695, %v517_v61 }
 0x36f   :  { %v513_v63 = vpop.xlane.xlu1 %512 }
 0x370   :  { %3462 = vpow2.f32 %v520_v62  ;;  %v518_v2 = vsub.f32 %v3972_v36, %v513_v63 }
 0x372   :  { %v522_v3 = vmul.f32 1.442695, %v518_v2 }
 0x373   :  { %v516_v4 = vpop.xlane.xlu0 %515 }
 0x374   :  { %3464 = vpow2.f32 %v522_v3  ;;  %v519_v6 = vsub.f32 %v3976_v40, %v516_v4 }
 0x376   :  { %v524_v7 = vmul.f32 1.442695, %v519_v6 }
 0x377   :  { %v765_v8 = vpop.xlane.xlu1 %764 }
 0x378   :  { %3466 = vpow2.f32 %v524_v7  ;;  %v772_v10 = vsub.f32 %v3980_v44, %v765_v8 }
 0x37a   :  { %v775_v11 = vmul.f32 1.442695, %v772_v10 }
 0x37b   :  { %v768_v12 = vpop.xlane.xlu0 %767 }
 0x37c   :  { %3468 = vpow2.f32 %v775_v11  ;;  %v773_v32 = vsub.f32 %v3984_v48, %v768_v12 }
 0x37d   :  { %v4057_v14 = vpop.eup %3462 }
 0x37e   :  { %v777_v15 = vmul.f32 1.442695, %v773_v32  ;;  %v526_v36 = vsel %vm263_vm2, %v4057_v14, 0.0 }
 0x37f   :  { %v771_v16 = vpop.xlane.xlu1 %770  ;;  %527 = vadd.xlane.f32.xlu1 %v526_v36 }
 0x380   :  { %3470 = vpow2.f32 %v777_v15  ;;  %v774_v40 = vsub.f32 %v3988_v52, %v771_v16 }
 0x381   :  { %v4062_v18 = vpop.eup %3464 }
 0x382   :  { %v779_v19 = vmul.f32 1.442695, %v774_v40  ;;  %v529_v44 = vsel %vm263_vm2, %v4062_v18, 0.0 }
 0x383   :  { %v1020_v20 = vpop.xlane.xlu0 %1019  ;;  %530 = vadd.xlane.f32.xlu0 %v529_v44 }
 0x384   :  { %3472 = vpow2.f32 %v779_v19  ;;  %v1027_v48 = vsub.f32 %v3992_v56, %v1020_v20 }
 0x385   :  { %v4067_v22 = vpop.eup %3466 }
 0x386   :  { %v1030_v23 = vmul.f32 1.442695, %v1027_v48  ;;  %v532_v24 = vsel %vm270_vm3, %v4067_v22, 0.0 }
 0x387   :  { %v1023_v26 = vpop.xlane.xlu1 %1022  ;;  %533 = vadd.xlane.f32.xlu1 %v532_v24 }
 0x388   :  { %3474 = vpow2.f32 %v1030_v23  ;;  %v1028_v52 = vsub.f32 %v3996_v60, %v1023_v26 }
 0x389   :  { %v4072_v27 = vpop.eup %3468 }
 0x38a   :  { %v1032_v28 = vmul.f32 1.442695, %v1028_v52  ;;  %v781_v30 = vsel %vm263_vm2, %v4072_v27, 0.0 }
 0x38b   :  { %v1026_v31 = vpop.xlane.xlu0 %1025  ;;  %782 = vadd.xlane.f32.xlu0 %v781_v30 }
 0x38c   :  { %3476 = vpow2.f32 %v1032_v28  ;;  %v1029_v56 = vsub.f32 %v4000_v1, %v1026_v31  ;;  %v2841_v1 = vld [vmem:[%s4669_s30 + $0x28] sm:$0x1] }
 0x38d   :  { %v4077_v33 = vpop.eup %3470  ;;  %3169 = vmatpush3.msk.msra.mxu0 %vm307_vm4, %v2841_v1 }
 0x38e   :  { %v1034_v35 = vmul.f32 1.442695, %v1029_v56  ;;  %v784_v37 = vsel %vm263_vm2, %v4077_v33, 0.0  ;;  %3170 = vmatprep.subr.mxu0 %v3558_v0 }
 0x38f   :  { %v1275_v38 = vpop.xlane.xlu1 %1274  ;;  %785 = vadd.xlane.f32.xlu1 %v784_v37 }
 0x390   :  { %3478 = vpow2.f32 %v1034_v35  ;;  %v1282_v60 = vsub.f32 %v4004_v5, %v1275_v38  ;;  %v2840_v5 = vld [vmem:[%s4669_s30 + $0x20] sm:$0xff] }
 0x391   :  { %v4082_v41 = vpop.eup %3472  ;;  %3171 = vmatpush3.msra.mxu0 %v2840_v5 }
 0x392   :  { %v1285_v42 = vmul.f32 1.442695, %v1282_v60  ;;  %v787_v43 = vsel %vm270_vm3, %v4082_v41, 0.0  ;;  %3172 = vmatprep.subr.mxu0 %v3558_v0 }
 0x393   :  { %v1278_v46 = vpop.xlane.xlu0 %1277  ;;  %788 = vadd.xlane.f32.xlu0 %v787_v43 }
 0x394   :  { %3480 = vpow2.f32 %v1285_v42  ;;  %v1283_v47 = vsub.f32 %v4008_v9, %v1278_v46  ;;  %v2839_v9 = vld [vmem:[%s4669_s30 + $0x18] sm:$0xff] }
 0x395   :  { %v4091_v49 = vpop.eup %3474  ;;  %3173 = vmatpush3.msra.mxu0 %v2839_v9 }
 0x396   :  { %v1287_v51 = vmul.f32 1.442695, %v1283_v47  ;;  %v1036_v53 = vsel %vm263_vm2, %v4091_v49, 0.0  ;;  %3198 = vmatprep.subr.mxu0 %v3558_v0 }
 0x397   :  { %v1281_v54 = vpop.xlane.xlu1 %1280  ;;  %1037 = vadd.xlane.f32.xlu1 %v1036_v53 }
 0x398   :  { %3482 = vpow2.f32 %v1287_v51  ;;  %v1284_v57 = vsub.f32 %v4012_v13, %v1281_v54 }
 0x399   :  { %v4104_v58 = vpop.eup %3476 }
 0x39a   :  { %v1289_v59 = vmul.f32 1.442695, %v1284_v57  ;;  %v1039_v61 = vsel %vm263_vm2, %v4104_v58, 0.0 }
 0x39b   :  { %v1530_v62 = vpop.xlane.xlu0 %1529  ;;  %1040 = vadd.xlane.f32.xlu0 %v1039_v61 }
 0x39c   :  { %3484 = vpow2.f32 %v1289_v59  ;;  %v1537_v63 = vsub.f32 %v4016_v17, %v1530_v62 }
 0x39d   :  { %v4110_v2 = vpop.eup %3478 }
 0x39e   :  { %v1540_v3 = vmul.f32 1.442695, %v1537_v63  ;;  %v1042_v13 = vsel %vm270_vm3, %v4110_v2, 0.0 }
 0x39f   :  { %v1533_v4 = vpop.xlane.xlu1 %1532  ;;  %1043 = vadd.xlane.f32.xlu1 %v1042_v13 }
 0x3a0   :  { %3486 = vpow2.f32 %v1540_v3  ;;  %v1538_v6 = vsub.f32 %v4020_v21, %v1533_v4  ;;  %v2860_v4 = vld [vmem:[%s4669_s30 + $0x40] sm:$0x1] }
 0x3a1   :  { %v4115_v7 = vpop.eup %3480 }
 0x3a2   :  { %v1542_v8 = vmul.f32 1.442695, %v1538_v6  ;;  %v1291_v10 = vsel %vm263_vm2, %v4115_v7, 0.0 }
 0x3a3   :  { %v1536_v11 = vpop.xlane.xlu0 %1535  ;;  %1292 = vadd.xlane.f32.xlu0 %v1291_v10 }
 0x3a4   :  { %3488 = vpow2.f32 %v1542_v8  ;;  %v1539_v17 = vsub.f32 %v4024_v25, %v1536_v11  ;;  %v2859_v8 = vld [vmem:[%s4669_s30 + $0x38] sm:$0xff]  ;;  %v2858_v11 = vld [vmem:[%s4669_s30 + $0x30] sm:$0xff] }
 0x3a5   :  { %v4120_v12 = vpop.eup %3482 }
 0x3a6   :  { %v1544_v32 = vmul.f32 1.442695, %v1539_v17  ;;  %v1294_v15 = vsel %vm263_vm2, %v4120_v12, 0.0 }
 0x3a7   :  { %v1785_v36 = vpop.xlane.xlu1 %1784  ;;  %1295 = vadd.xlane.f32.xlu1 %v1294_v15 }
 0x3a8   :  { %3490 = vpow2.f32 %v1544_v32  ;;  %v1792_v21 = vsub.f32 %v4028_v29, %v1785_v36 }
 0x3a9   :  { %v4125_v16 = vpop.eup %3484 }
 0x3aa   :  { %v1795_v40 = vmul.f32 1.442695, %v1792_v21  ;;  %v1297_v19 = vsel %vm270_vm3, %v4125_v16, 0.0 }
 0x3ab   :  { %v1788_v44 = vpop.xlane.xlu0 %1787  ;;  %1298 = vadd.xlane.f32.xlu0 %v1297_v19 }
 0x3ac   :  { %3492 = vpow2.f32 %v1795_v40  ;;  %v1793_v25 = vsub.f32 %v4032_v34, %v1788_v44  ;;  %v2879_v40 = vld [vmem:[%s4669_s30 + $0x58] sm:$0x1] }
 0x3ad   :  { %v4130_v20 = vpop.eup %3486 }
 0x3ae   :  { %v1797_v48 = vmul.f32 1.442695, %v1793_v25  ;;  %v1546_v23 = vsel %vm263_vm2, %v4130_v20, 0.0  ;;  %v2877_v25 = vld [vmem:[%s4669_s30 + $0x48] sm:$0xff] }
 0x3af   :  { %v1791_v24 = vpop.xlane.xlu1 %1790  ;;  %1547 = vadd.xlane.f32.xlu1 %v1546_v23 }
 0x3b0   :  { %3494 = vpow2.f32 %v1797_v48  ;;  %v1794_v29 = vsub.f32 %v4036_v39, %v1791_v24 }
 0x3b1   :  { %v4135_v26 = vpop.eup %3488 }
 0x3b2   :  { %v1799_v52 = vmul.f32 1.442695, %v1794_v29  ;;  %v1549_v28 = vsel %vm263_vm2, %v4135_v26, 0.0 }
 0x3b3   :  { %v2040_v30 = vpop.xlane.xlu0 %2039  ;;  %1550 = vadd.xlane.f32.xlu0 %v1549_v28  ;;  %v2898_v28 = vld [vmem:[%s4669_s30 + $0x70] sm:$0x1] }
 0x3b4   :  { %3496 = vpow2.f32 %v1799_v52  ;;  %v2047_v34 = vsub.f32 %v4040_v45, %v2040_v30 }
 0x3b5   :  { %v4140_v31 = vpop.eup %3490 }
 0x3b6   :  { %v2050_v56 = vmul.f32 1.442695, %v2047_v34  ;;  %v1552_v35 = vsel %vm270_vm3, %v4140_v31, 0.0 }
 0x3b7   :  { %1553 = vadd.xlane.f32.xlu1 %v1552_v35  ;;  %v2043_v37 = vpop.xlane.xlu1 %2042 }
 0x3b8   :  { %3498 = vpow2.f32 %v2050_v56  ;;  %v2048_v39 = vsub.f32 %v4044_v50, %v2043_v37  ;;  %v2896_v56 = vld [vmem:[%s4669_s30 + $0x60] sm:$0xff] }
 0x3b9   :  { %v4145_v38 = vpop.eup %3492 }
 0x3ba   :  { %v2052_v60 = vmul.f32 1.442695, %v2048_v39  ;;  %v1801_v42 = vsel %vm263_vm2, %v4145_v38, 0.0 }
 0x3bb   :  { %1802 = vadd.xlane.f32.xlu0 %v1801_v42  ;;  %v2046_v43 = vpop.xlane.xlu0 %2045 }
 0x3bc   :  { %3500 = vpow2.f32 %v2052_v60  ;;  %v2049_v45 = vsub.f32 %v4048_v55, %v2046_v43  ;;  %v2917_v43 = vld [vmem:[%s4669_s30 + $0x88] sm:$0x1] }
 0x3bd   :  { %v4150_v46 = vpop.eup %3494 }
 0x3be   :  { %v2054_v1 = vmul.f32 1.442695, %v2049_v45  ;;  %v1804_v47 = vsel %vm263_vm2, %v4150_v46, 0.0 }
 0x3bf   :  { %1805 = vadd.xlane.f32.xlu1 %v1804_v47  ;;  %v2915_v47 = vld [vmem:[%s4669_s30 + $0x78] sm:$0xff] }
 0x3c0   :  { %3502 = vpow2.f32 %v2054_v1 }
 0x3c1   :  { %v4154_v50 = vpop.eup %3496 }
 0x3c2   :  { %v1807_v5 = vsel %vm270_vm3, %v4154_v50, 0.0 }
 0x3c3   :  { %1808 = vadd.xlane.f32.xlu0 %v1807_v5 }
 0x3c5   :  { %v4158_v51 = vpop.eup %3498 }
 0x3c6   :  { %v2056_v53 = vsel %vm263_vm2, %v4158_v51, 0.0 }
 0x3c7   :  { %2057 = vadd.xlane.f32.xlu1 %v2056_v53 }
 0x3c9   :  { %v4162_v55 = vpop.eup %3500 }
 0x3ca   :  { %v2059_v54 = vsel %vm263_vm2, %v4162_v55, 0.0 }
 0x3cb   :  { %2060 = vadd.xlane.f32.xlu0 %v2059_v54 }
 0x3cd   :  { %v4166_v9 = vpop.eup %3502 }
 0x3ce   :  { %v2062_v57 = vsel %vm270_vm3, %v4166_v9, 0.0  ;;  %vm2175_vm3 = vcmask 261344  }
 0x3cf   :  { %2063 = vadd.xlane.f32.xlu1 %v2062_v57 }
 0x408   :  { %v528_v59 = vpop.xlane.xlu1 %527 }
 0x409   :  { %3504 = vrcp.f32 %v528_v59 }
 0x40c   :  { %v531_v61 = vpop.xlane.xlu0 %530 }
 0x40d   :  { %3506 = vrcp.f32 %v531_v61  ;;  %v2936_v61 = vld [vmem:[%s4669_s30 + $0xa0] sm:$0x1] }
 0x410   :  { %v534_v62 = vpop.xlane.xlu1 %533 }
 0x411   :  { %3508 = vrcp.f32 %v534_v62 }
 0x414   :  { %v783_v63 = vpop.xlane.xlu0 %782 }
 0x415   :  { %3510 = vrcp.f32 %v783_v63 }
 0x416   :  { %v3505_v3 = vpop.eup %3504 }
 0x417   :  { %v538_v13 = vmul.f32 %v3505_v3, %v4057_v14  ;;  %v2934_v3 = vld [vmem:[%s4669_s30 + $0x90] sm:$0xff] }
 0x418   :  { %v786_v6 = vpop.xlane.xlu1 %785 }
 0x419   :  { %3512 = vrcp.f32 %v786_v6  ;;  %3175 = vmatmul.mubr.msk.f32.vlgmr.msra.gmra.mxu0 %vm263_vm2, %v538_v13 }
 0x41a   :  { %v3507_v10 = vpop.eup %3506  ;;  %3199 = vmatpush3.msk.msra.mxu0 %vm307_vm4, %v2860_v4  ;;  %3177 = vmatprep.mubr.msk.f32.mxu0 %vm3559_vm1, %v3558_v0 }
 0x41b   :  { %v539_v14 = vmul.f32 %v3507_v10, %v4062_v18  ;;  %3200 = vmatprep.subr.mxu0 %v3558_v0 }
 0x41c   :  { %v789_v17 = vpop.xlane.xlu0 %788  ;;  %3201 = vmatpush3.msra.mxu0 %v2859_v8 }
 0x41d   :  { %3514 = vrcp.f32 %v789_v17  ;;  %3178 = vmatmul.mubr.msk.f32.gmra.mxu0 %vm263_vm2, %v539_v14  ;;  %3202 = vmatprep.subr.mxu0 %v3558_v0  ;;  %v2955_v14 = vld [vmem:[%s4669_s30 + $0xb8] sm:$0x1] }
 0x41e   :  { %v3509_v32 = vpop.eup %3508  ;;  %3180 = vmatprep.mubr.msk.f32.mxu0 %vm3559_vm1, %v3558_v0  ;;  %3203 = vmatpush3.msra.mxu0 %v2858_v11 }
 0x41f   :  { %v540_v18 = vmul.f32 %v3509_v32, %v4067_v22  ;;  %3228 = vmatprep.subr.mxu0 %v3558_v0  ;;  %v2878_v22 = vld [vmem:[%s4669_s30 + $0x50] sm:$0xff]  ;;  %v2953_v32 = vld [vmem:[%s4669_s30 + $0xa8] sm:$0xff] }
 0x420   :  { %v1038_v15 = vpop.xlane.xlu1 %1037 }
 0x421   :  { %3516 = vrcp.f32 %v1038_v15  ;;  %3181 = vmatmul.mubr.msk.f32.gmra.mxu0 %vm263_vm2, %v540_v18 }
 0x422   :  { %v3511_v36 = vpop.eup %3510  ;;  %3204 = vmatprep.mubr.msk.f32.mxu0 %vm3559_vm1, %v3558_v0 }
 0x423   :  { %v793_v21 = vmul.f32 %v3511_v36, %v4072_v27 }
 0x424   :  { %v1041_v19 = vpop.xlane.xlu0 %1040 }
 0x425   :  { %3518 = vrcp.f32 %v1041_v19  ;;  %3205 = vmatmul.mubr.msk.f32.vlgmr.msra.gmra.mxu0 %vm263_vm2, %v793_v21 }
 0x426   :  { %v3513_v44 = vpop.eup %3512  ;;  %3229 = vmatpush3.msk.msra.mxu0 %vm307_vm4, %v2879_v40  ;;  %3207 = vmatprep.mubr.msk.f32.mxu0 %vm3559_vm1, %v3558_v0 }
 0x427   :  { %v794_v27 = vmul.f32 %v3513_v44, %v4077_v33  ;;  %3230 = vmatprep.subr.mxu0 %v3558_v0 }
 0x428   :  { %v1044_v48 = vpop.xlane.xlu1 %1043  ;;  %3231 = vmatpush3.msra.mxu0 %v2878_v22 }
 0x429   :  { %3520 = vrcp.f32 %v1044_v48  ;;  %3208 = vmatmul.mubr.msk.f32.gmra.mxu0 %vm263_vm2, %v794_v27  ;;  %3232 = vmatprep.subr.mxu0 %v3558_v0 }
 0x42a   :  { %v3515_v23 = vpop.eup %3514  ;;  %3210 = vmatprep.mubr.msk.f32.mxu0 %vm3559_vm1, %v3558_v0  ;;  %3233 = vmatpush3.msra.mxu0 %v2877_v25 }
 0x42b   :  { %v795_v33 = vmul.f32 %v3515_v23, %v4082_v41  ;;  %3258 = vmatprep.subr.mxu0 %v3558_v0  ;;  %v2897_v41 = vld [vmem:[%s4669_s30 + $0x68] sm:$0xff] }
 0x42c   :  { %v1293_v24 = vpop.xlane.xlu0 %1292 }
 0x42d   :  { %3522 = vrcp.f32 %v1293_v24  ;;  %3211 = vmatmul.mubr.msk.f32.gmra.mxu0 %vm263_vm2, %v795_v33 }
 0x42e   :  { %v3517_v29 = vpop.eup %3516  ;;  %3234 = vmatprep.mubr.msk.f32.mxu0 %vm3559_vm1, %v3558_v0 }
 0x42f   :  { %v1048_v52 = vmul.f32 %v3517_v29, %v4091_v49 }
 0x430   :  { %v1296_v30 = vpop.xlane.xlu1 %1295 }
 0x431   :  { %3524 = vrcp.f32 %v1296_v30  ;;  %3235 = vmatmul.mubr.msk.f32.vlgmr.msra.gmra.mxu0 %vm263_vm2, %v1048_v52 }
 0x432   :  { %v3519_v34 = vpop.eup %3518  ;;  %3259 = vmatpush3.msk.msra.mxu0 %vm307_vm4, %v2898_v28  ;;  %3237 = vmatprep.mubr.msk.f32.mxu0 %vm3559_vm1, %v3558_v0 }
 0x433   :  { %v1049_v49 = vmul.f32 %v3519_v34, %v4104_v58  ;;  %3260 = vmatprep.subr.mxu0 %v3558_v0 }
 0x434   :  { %v1299_v35 = vpop.xlane.xlu0 %1298  ;;  %3261 = vmatpush3.msra.mxu0 %v2897_v41 }
 0x435   :  { %3526 = vrcp.f32 %v1299_v35  ;;  %3238 = vmatmul.mubr.msk.f32.gmra.mxu0 %vm263_vm2, %v1049_v49  ;;  %3262 = vmatprep.subr.mxu0 %v3558_v0 }
 0x436   :  { %v3521_v37 = vpop.eup %3520  ;;  %3240 = vmatprep.mubr.msk.f32.mxu0 %vm3559_vm1, %v3558_v0  ;;  %3263 = vmatpush3.msra.mxu0 %v2896_v56 }
 0x437   :  { %v1050_v58 = vmul.f32 %v3521_v37, %v4110_v2  ;;  %3288 = vmatprep.subr.mxu0 %v3558_v0  ;;  %v2916_v2 = vld [vmem:[%s4669_s30 + $0x80] sm:$0xff] }
 0x438   :  { %v1548_v39 = vpop.xlane.xlu1 %1547 }
 0x439   :  { %3528 = vrcp.f32 %v1548_v39  ;;  %3241 = vmatmul.mubr.msk.f32.gmra.mxu0 %vm263_vm2, %v1050_v58 }
 0x43a   :  { %v3523_v60 = vpop.eup %3522  ;;  %3264 = vmatprep.mubr.msk.f32.mxu0 %vm3559_vm1, %v3558_v0 }
 0x43b   :  { %v1303_v42 = vmul.f32 %v3523_v60, %v4115_v7 }
 0x43c   :  { %v1551_v45 = vpop.xlane.xlu0 %1550 }
 0x43d   :  { %3530 = vrcp.f32 %v1551_v45  ;;  %3265 = vmatmul.mubr.msk.f32.vlgmr.msra.gmra.mxu0 %vm263_vm2, %v1303_v42 }
 0x43e   :  { %v3525_v1 = vpop.eup %3524  ;;  %3289 = vmatpush3.msk.msra.mxu0 %vm307_vm4, %v2917_v43  ;;  %3267 = vmatprep.mubr.msk.f32.mxu0 %vm3559_vm1, %v3558_v0 }
 0x43f   :  { %v1304_v7 = vmul.f32 %v3525_v1, %v4120_v12  ;;  %3290 = vmatprep.subr.mxu0 %v3558_v0 }
 0x440   :  { %v1554_v5 = vpop.xlane.xlu1 %1553  ;;  %3291 = vmatpush3.msra.mxu0 %v2916_v2 }
 0x441   :  { %3532 = vrcp.f32 %v1554_v5  ;;  %3268 = vmatmul.mubr.msk.f32.gmra.mxu0 %vm263_vm2, %v1304_v7  ;;  %3292 = vmatprep.subr.mxu0 %v3558_v0 }
 0x442   :  { %v3527_v53 = vpop.eup %3526  ;;  %3270 = vmatprep.mubr.msk.f32.mxu0 %vm3559_vm1, %v3558_v0  ;;  %3293 = vmatpush3.msra.mxu0 %v2915_v47  ;;  %v2186_v47 = vld [vmem:[%s4670_s27 + $0x18] sm:$0xff] }
 0x443   :  { %v1305_v12 = vmul.f32 %v3527_v53, %v4125_v16  ;;  %3318 = vmatprep.subr.mxu0 %v3558_v0  ;;  %v2935_v16 = vld [vmem:[%s4669_s30 + $0x98] sm:$0xff]  ;;  %3364 = vmatpush3.msra.mxu1 %v2186_v47 }
 0x444   :  { %v1803_v54 = vpop.xlane.xlu0 %1802  ;;  %3365 = vmatprep.subr.mxu1 %v3558_v0 }
 0x445   :  { %3534 = vrcp.f32 %v1803_v54  ;;  %3271 = vmatmul.mubr.msk.f32.gmra.mxu0 %vm263_vm2, %v1305_v12  ;;  %v2185_v12 = vld [vmem:[%s4670_s27 + $0x10] sm:$0xff]  ;;  %v2184_v54 = vld [vmem:[%s4670_s27 + $0x8] sm:$0xff] }
 0x446   :  { %v3529_v57 = vpop.eup %3528  ;;  %3294 = vmatprep.mubr.msk.f32.mxu0 %vm3559_vm1, %v3558_v0  ;;  %3366 = vmatpush3.msra.mxu1 %v2185_v12 }
 0x447   :  { %v1558_v59 = vmul.f32 %v3529_v57, %v4130_v20  ;;  %3367 = vmatprep.subr.mxu1 %v3558_v0 }
 0x448   :  { %v1806_v62 = vpop.xlane.xlu1 %1805  ;;  %3368 = vmatpush3.msra.mxu1 %v2184_v54 }
 0x449   :  { %3536 = vrcp.f32 %v1806_v62  ;;  %3295 = vmatmul.mubr.msk.f32.vlgmr.msra.gmra.mxu0 %vm263_vm2, %v1558_v59  ;;  %3369 = vmatprep.subr.mxu1 %v3558_v0 }
 0x44a   :  { %v3531_v63 = vpop.eup %3530  ;;  %3319 = vmatpush3.msk.msra.mxu0 %vm307_vm4, %v2936_v61  ;;  %3297 = vmatprep.mubr.msk.f32.mxu0 %vm3559_vm1, %v3558_v0  ;;  %v2183_v61 = vld [vmem:[%s4670_s27] sm:$0xff] }
 0x44b   :  { %v1559_v20 = vmul.f32 %v3531_v63, %v4135_v26  ;;  %3320 = vmatprep.subr.mxu0 %v3558_v0  ;;  %3370 = vmatpush3.msra.mxu1 %v2183_v61 }
 0x44c   :  { %v1809_v13 = vpop.xlane.xlu0 %1808  ;;  %3321 = vmatpush3.msra.mxu0 %v2935_v16 }
 0x44d   :  { %3538 = vrcp.f32 %v1809_v13  ;;  %3298 = vmatmul.mubr.msk.f32.gmra.mxu0 %vm263_vm2, %v1559_v20  ;;  %3322 = vmatprep.subr.mxu0 %v3558_v0 }
 0x44e   :  { %v3533_v4 = vpop.eup %3532  ;;  %3300 = vmatprep.mubr.msk.f32.mxu0 %vm3559_vm1, %v3558_v0  ;;  %3323 = vmatpush3.msra.mxu0 %v2934_v3 }
 0x44f   :  { %v1560_v26 = vmul.f32 %v3533_v4, %v4140_v31  ;;  %3348 = vmatprep.subr.mxu0 %v3558_v0  ;;  %v2954_v31 = vld [vmem:[%s4669_s30 + $0xb0] sm:$0xff]  ;;  %s3560_s30 = smov 4  }
 0x450   :  { %v2058_v6 = vpop.xlane.xlu1 %2057 }
 0x451   :  { %3540 = vrcp.f32 %v2058_v6  ;;  %3301 = vmatmul.mubr.msk.f32.gmra.mxu0 %vm263_vm2, %v1560_v26  ;;  %v3567_v26 = vmov 0  }
 0x452   :  { %v3535_v8 = vpop.eup %3534  ;;  %3324 = vmatprep.mubr.msk.f32.mxu0 %vm3559_vm1, %v3558_v0  ;;  %3448 = vset.pattern.permute.xlu1 %v3567_v26 }
 0x453   :  { %v1813_v10 = vmul.f32 %v3535_v8, %v4145_v38  ;;  %3449 = vset.pattern.permute.xlu0 %v3567_v26 }
 0x454   :  { %v2061_v11 = vpop.xlane.xlu0 %2060 }
 0x455   :  { %3542 = vrcp.f32 %v2061_v11  ;;  %3325 = vmatmul.mubr.msk.f32.vlgmr.msra.gmra.mxu0 %vm263_vm2, %v1813_v10  ;;  %v4353_v10 = vld [vmem:[%s4643_s0] sm:$0xff] }
 0x456   :  { %v3537_v17 = vpop.eup %3536  ;;  %3349 = vmatpush3.msk.msra.mxu0 %vm307_vm4, %v2955_v14  ;;  %3327 = vmatprep.mubr.msk.f32.mxu0 %vm3559_vm1, %v3558_v0  ;;  %v80_v14 = vmul.f32 %v4353_v10, %v4353_v10  ;;  %vm1413_vm4 = vcmask 155776  }
 0x457   :  { %v1814_v38 = vmul.f32 %v3537_v17, %v4150_v46  ;;  %3350 = vmatprep.subr.mxu0 %v3558_v0 }
 0x458   :  { %v2064_v18 = vpop.xlane.xlu1 %2063  ;;  %3351 = vmatpush3.msra.mxu0 %v2954_v31  ;;  %v83_v11 = vsel %vm66_vm6, %v80_v14, 0.0  ;;  %v4361_v31 = vld [vmem:[%s4643_s0 + $0x8] sm:$0xff] }
 0x459   :  { %3544 = vrcp.f32 %v2064_v18  ;;  %3328 = vmatmul.mubr.msk.f32.gmra.mxu0 %vm263_vm2, %v1814_v38  ;;  %3352 = vmatprep.subr.mxu0 %v3558_v0  ;;  %v70_v17 = vsel %vm66_vm6, %v4361_v31, 0.0  ;;  %v81_v38 = vmul.f32 %v4361_v31, %v4361_v31  ;;  %v4372_v18 = vld [vmem:[%s4643_s0 + $0x10] sm:$0x1] }
 0x45a   :  { %v3539_v15 = vpop.eup %3538  ;;  %3330 = vmatprep.mubr.msk.f32.mxu0 %vm3559_vm1, %v3558_v0  ;;  %3353 = vmatpush3.msra.mxu0 %v2953_v32  ;;  %v67_v32 = vsel %vm66_vm6, %v4353_v10, 0.0 }
 0x45b   :  { %v1815_v46 = vmul.f32 %v3539_v15, %v4154_v50  ;;  %3380 = vmatprep.subr.mxu0 %v3558_v0 }
 0x45d   :  { %3331 = vmatmul.mubr.msk.f32.gmra.mxu0 %vm263_vm2, %v1815_v46  ;;  %v86_v46 = vsel %vm66_vm6, %v81_v38, 0.0 }
 0x45e   :  { %v3541_v36 = vpop.eup %3540  ;;  %3354 = vmatprep.mubr.msk.f32.mxu0 %vm3559_vm1, %v3558_v0 }
 0x45f   :  { %v2068_v21 = vmul.f32 %v3541_v36, %v4158_v51  ;;  %v82_v36 = vmul.f32 %v4372_v18, %v4372_v18 }
 0x461   :  { %3355 = vmatmul.mubr.msk.f32.vlgmr.msra.gmra.mxu0 %vm263_vm2, %v2068_v21  ;;  %v74_v21 = vsel %vm73_vm8, %v4372_v18, 0.0 }
 0x462   :  { %v3543_v40 = vpop.eup %3542  ;;  %3357 = vmatprep.mubr.msk.f32.mxu0 %vm3559_vm1, %v3558_v0 }
 0x463   :  { %v2069_v19 = vmul.f32 %v3543_v40, %v4162_v55 }
 0x465   :  { %3358 = vmatmul.mubr.msk.f32.gmra.mxu0 %vm263_vm2, %v2069_v19  ;;  %v89_v19 = vsel %vm73_vm8, %v82_v36, 0.0 }
 0x466   :  { %v3545_v50 = vpop.eup %3544  ;;  %3360 = vmatprep.mubr.msk.f32.mxu0 %vm3559_vm1, %v3558_v0 }
 0x467   :  { %v2070_v22 = vmul.f32 %v3545_v50, %v4166_v9 }
 0x469   :  { %3361 = vmatmul.mubr.msk.f32.gmra.mxu0 %vm263_vm2, %v2070_v22 }
 0x46a   :  { %3388 = vmatprep.mubr.msk.f32.mxu0 %vm3559_vm1, %v3558_v0 }
 0x4d9   :  { %v619_v51 = vpop.f32.mrf.mxu0 }
 0x4da   :  { %636 = vrot.lane.b32.xlu0 %v619_v51, %s3560_s30 }
 0x4db   :  { %v3176_v44 = vpop.f32.mrf.mxu0 }
 0x4dd   :  { %v624_v27 = vpop.f32.mrf.mxu0 }
 0x4de   :  { %638 = vrot.lane.b32.xlu0 %v624_v27, %s3560_s30  ;;  %v60_v27 = vld [vmem:[%s4644_s6] sm:$0xff] }
 0x4df   :  { %v3179_v55 = vpop.f32.mrf.mxu0 }
 0x4e1   :  { %v629_v25 = vpop.f32.mrf.mxu0 }
 0x4e2   :  { %640 = vrot.lane.b32.xlu1 %v629_v25, %s3560_s30  ;;  %s3566_s30 = smov 28   ;;  %v61_v25 = vld [vmem:[%s4644_s6 + $0x8] sm:$0xff] }
 0x4e3   :  { %v3182_v48 = vpop.f32.mrf.mxu0 }
 0x4e5   :  { %v874_v23 = vpop.f32.mrf.mxu0 }
 0x4e6   :  { %891 = vrot.lane.b32.xlu1 %v874_v23, %s3561_s25  ;;  %v63_v23 = vld [vmem:[%s4645_s7] sm:$0xff] }
 0x4e7   :  { %v3206_v33 = vpop.f32.mrf.mxu0 }
 0x4e8   :  { %v64_v33 = vld [vmem:[%s4645_s7 + $0x8] sm:$0xff] }
 0x4e9   :  { %v879_v9 = vpop.f32.mrf.mxu0 }
 0x4ea   :  { %893 = vrot.lane.b32.xlu0 %v879_v9, %s3561_s25 }
 0x4eb   :  { %v3209_v24 = vpop.f32.mrf.mxu0 }
 0x4ec   :  { %v62_v24 = vld [vmem:[%s4644_s6 + $0x10] sm:$0x1] }
 0x4ed   :  { %v884_v29 = vpop.f32.mrf.mxu0 }
 0x4ee   :  { %895 = vrot.lane.b32.xlu1 %v884_v29, %s3561_s25 }
 0x4ef   :  { %v3212_v52 = vpop.f32.mrf.mxu0 }
 0x4f0   :  { %v65_v52 = vld [vmem:[%s4645_s7 + $0x10] sm:$0x1] }
 0x4f1   :  { %v1129_v28 = vpop.f32.mrf.mxu0 }
 0x4f2   :  { %1146 = vrot.lane.b32.xlu1 %v1129_v28, %s3562_s3 }
 0x4f3   :  { %v3236_v30 = vpop.f32.mrf.mxu0 }
 0x4f5   :  { %v1134_v41 = vpop.f32.mrf.mxu0 }
 0x4f6   :  { %1148 = vrot.lane.b32.xlu0 %v1134_v41, %s3562_s3 }
 0x4f7   :  { %v3239_v34 = vpop.f32.mrf.mxu0 }
 0x4f9   :  { %v1139_v49 = vpop.f32.mrf.mxu0 }
 0x4fa   :  { %1150 = vrot.lane.b32.xlu1 %v1139_v49, %s3562_s3 }
 0x4fb   :  { %v3242_v56 = vpop.f32.mrf.mxu0 }
 0x4fd   :  { %v1384_v35 = vpop.f32.mrf.mxu0 }
 0x4fe   :  { %1401 = vrot.lane.b32.xlu1 %v1384_v35, %s3563_s23 }
 0x4ff   :  { %v3266_v37 = vpop.f32.mrf.mxu0 }
 0x501   :  { %v1389_v58 = vpop.f32.mrf.mxu0 }
 0x502   :  { %1403 = vrot.lane.b32.xlu0 %v1389_v58, %s3563_s23 }
 0x503   :  { %v3269_v39 = vpop.f32.mrf.mxu0 }
 0x505   :  { %v1394_v60 = vpop.f32.mrf.mxu0 }
 0x507   :  { %v3272_v42 = vpop.f32.mrf.mxu0 }
 0x509   :  { %v1639_v43 = vpop.f32.mrf.mxu0 }
 0x50a   :  { %1656 = vrot.lane.b32.xlu1 %v1639_v43, %s3564_s24 }
 0x50b   :  { %v3296_v45 = vpop.f32.mrf.mxu0 }
 0x50d   :  { %v1644_v2 = vpop.f32.mrf.mxu0 }
 0x50e   :  { %1658 = vrot.lane.b32.xlu0 %v1644_v2, %s3564_s24 }
 0x50f   :  { %v3299_v1 = vpop.f32.mrf.mxu0 }
 0x511   :  { %v1649_v7 = vpop.f32.mrf.mxu0 }
 0x513   :  { %v3302_v5 = vpop.f32.mrf.mxu0 }
 0x515   :  { %v1894_v53 = vpop.f32.mrf.mxu0 }
 0x516   :  { %1911 = vrot.lane.b32.xlu1 %v1894_v53, %s3565_s20 }
 0x517   :  { %v3326_v57 = vpop.f32.mrf.mxu0 }
 0x519   :  { %v1899_v59 = vpop.f32.mrf.mxu0 }
 0x51a   :  { %1913 = vrot.lane.b32.xlu0 %v1899_v59, %s3565_s20 }
 0x51b   :  { %v3329_v62 = vpop.f32.mrf.mxu0 }
 0x51d   :  { %v1904_v16 = vpop.f32.mrf.mxu0 }
 0x51e   :  { %1660 = vrot.lane.b32.xlu0 %v1649_v7, %s3564_s24 }
 0x51f   :  { %v3332_v63 = vpop.f32.mrf.mxu0 }
 0x521   :  { %v2149_v20 = vpop.f32.mrf.mxu0 }
 0x522   :  { %2166 = vrot.lane.b32.xlu1 %v2149_v20, %s3566_s30 }
 0x523   :  { %v3356_v3 = vpop.f32.mrf.mxu0 }
 0x525   :  { %v2154_v13 = vpop.f32.mrf.mxu0 }
 0x526   :  { %1405 = vrot.lane.b32.xlu1 %v1394_v60, %s3563_s23  ;;  %2168 = vrot.lane.b32.xlu0 %v2154_v13, %s3566_s30 }
 0x527   :  { %v3359_v4 = vpop.f32.mrf.mxu0 }
 0x529   :  { %v2159_v6 = vpop.f32.mrf.mxu0 }
 0x52a   :  { %1915 = vrot.lane.b32.xlu1 %v1904_v16, %s3565_s20  ;;  %2170 = vrot.lane.b32.xlu0 %v2159_v6, %s3566_s30 }
 0x52b   :  { %v3362_v8 = vpop.f32.mrf.mxu0 }
 0x549   :  { %84 = vadd.xlane.f32.xlu0 %v83_v11 }
 0x54c   :  { %v637_v15 = vpop.permute.xlu0 %636 }
 0x54d   :  { %646 = vst.msk [vmem:[#allocation2] sm:$0xff] %vm645_vm7, %v637_v15  ;;  %71 = vadd.xlane.f32.xlu0 %v70_v17 }
 0x54e   :  { %68 = vadd.xlane.f32.xlu1 %v67_v32 }
 0x550   :  { %v639_v40 = vpop.permute.xlu0 %638 }
 0x551   :  { %647 = vst.msk [vmem:[#allocation2 + $0x8] sm:$0xff] %vm645_vm7, %v639_v40  ;;  %87 = vadd.xlane.f32.xlu0 %v86_v46  ;;  %vm1923_vm7 = vcmask 221376  }
 0x552   :  { %75 = vadd.xlane.f32.xlu1 %v74_v21 }
 0x554   :  { %v641_v50 = vpop.permute.xlu1 %640 }
 0x555   :  { %649 = vst.msk [vmem:[#allocation2 + $0x10] sm:$0x1] %vm648_vm9, %v641_v50  ;;  %90 = vadd.xlane.f32.xlu0 %v89_v19  ;;  %vm2178_vm9 = vcmask 254176  }
 0x558   :  { %v892_v22 = vpop.permute.xlu1 %891 }
 0x559   :  { %901 = vst.msk [vmem:[#allocation2] sm:$0xff] %vm900_vm10, %v892_v22 }
 0x55c   :  { %v894_v51 = vpop.permute.xlu0 %893 }
 0x55d   :  { %902 = vst.msk [vmem:[#allocation2 + $0x8] sm:$0xff] %vm900_vm10, %v894_v51 }
 0x560   :  { %v896_v44 = vpop.permute.xlu1 %895 }
 0x561   :  { %904 = vst.msk [vmem:[#allocation2 + $0x10] sm:$0x1] %vm903_vm11, %v896_v44 }
 0x563   :  { %118 = vperm.xlu1 %3448, %v60_v27  }
 0x564   :  { %v1147_v55 = vpop.permute.xlu1 %1146 }
 0x565   :  { %1156 = vst.msk [vmem:[#allocation2] sm:$0xff] %vm1155_vm12, %v1147_v55 }
 0x567   :  { %123 = vperm.xlu1 %3448, %v61_v25  }
 0x568   :  { %v1149_v48 = vpop.permute.xlu0 %1148 }
 0x569   :  { %1157 = vst.msk [vmem:[#allocation2 + $0x8] sm:$0xff] %vm1155_vm12, %v1149_v48 }
 0x56b   :  { %136 = vperm.xlu0 %3449, %v63_v23   ;;  %141 = vperm.xlu1 %3448, %v64_v33  }
 0x56c   :  { %v1151_v9 = vpop.permute.xlu1 %1150 }
 0x56d   :  { %1159 = vst.msk [vmem:[#allocation2 + $0x10] sm:$0x1] %vm1158_vm13, %v1151_v9 }
 0x56f   :  { %128 = vperm.xlu1 %3448, %v62_v24  }
 0x570   :  { %v1402_v29 = vpop.permute.xlu1 %1401 }
 0x571   :  { %1411 = vst.msk [vmem:[#allocation2] sm:$0xff] %vm1410_vm14, %v1402_v29 }
 0x573   :  { %146 = vperm.xlu1 %3448, %v65_v52  }
 0x574   :  { %v1404_v28 = vpop.permute.xlu0 %1403 }
 0x575   :  { %1412 = vst.msk [vmem:[#allocation2 + $0x8] sm:$0xff] %vm1410_vm14, %v1404_v28 }
 0x57c   :  { %v1657_v30 = vpop.permute.xlu1 %1656 }
 0x57d   :  { %1666 = vst.msk [vmem:[#allocation2] sm:$0xff] %vm1665_vm15, %v1657_v30 }
 0x580   :  { %v1659_v41 = vpop.permute.xlu0 %1658 }
 0x581   :  { %1667 = vst.msk [vmem:[#allocation2 + $0x8] sm:$0xff] %vm1665_vm15, %v1659_v41 }
 0x588   :  { %v1912_v34 = vpop.permute.xlu1 %1911 }
 0x589   :  { %1921 = vst.msk [vmem:[#allocation2] sm:$0xff] %vm1920_vm0, %v1912_v34 }
 0x58c   :  { %v1914_v49 = vpop.permute.xlu0 %1913 }
 0x58d   :  { %1922 = vst.msk [vmem:[#allocation2 + $0x8] sm:$0xff] %vm1920_vm0, %v1914_v49 }
 0x590   :  { %v1661_v56 = vpop.permute.xlu0 %1660 }
 0x594   :  { %v2167_v35 = vpop.permute.xlu1 %2166 }
 0x595   :  { %2176 = vst.msk [vmem:[#allocation2] sm:$0xff] %vm2175_vm3, %v2167_v35 }
 0x598   :  { %v1406_v37 = vpop.permute.xlu1 %1405  ;;  %v2169_v58 = vpop.permute.xlu0 %2168 }
 0x599   :  { %1414 = vst.msk [vmem:[#allocation2 + $0x10] sm:$0x1] %vm1413_vm4, %v1406_v37 }
 0x59a   :  { %2177 = vst.msk [vmem:[#allocation2 + $0x8] sm:$0xff] %vm2175_vm3, %v2169_v58 }
 0x59b   :  { %1669 = vst.msk [vmem:[#allocation2 + $0x10] sm:$0x1] %vm1668_vm5, %v1661_v56 }
 0x59c   :  { %v1916_v39 = vpop.permute.xlu1 %1915  ;;  %v2171_v60 = vpop.permute.xlu0 %2170  ;;  %v2180_v42 = vld [vmem:[#allocation2] sm:$0xff] }
 0x59d   :  { %1924 = vst.msk [vmem:[#allocation2 + $0x10] sm:$0x1] %vm1923_vm7, %v1916_v39  ;;  %3372 = vmatmul.mubr.msk.f32.vlgmr.msra.gmra.mxu1 %vm66_vm6, %v2180_v42 }
 0x59e   :  { %2179 = vst.msk [vmem:[#allocation2 + $0x10] sm:$0x1] %vm2178_vm9, %v2171_v60  ;;  %3374 = vmatprep.mubr.msk.f32.mxu1 %vm3559_vm1, %v3558_v0 }
 0x5a1   :  { %v2181_v43 = vld [vmem:[#allocation2 + $0x8] sm:$0xff] }
 0x5a2   :  { %3375 = vmatmul.mubr.msk.f32.gmra.mxu1 %vm66_vm6, %v2181_v43 }
 0x5a3   :  { %3377 = vmatprep.mubr.msk.f32.mxu1 %vm3559_vm1, %v3558_v0 }
 0x5a5   :  { %v2182_v45 = vld [vmem:[#allocation2 + $0x10] sm:$0x1] }
 0x5a6   :  { %3378 = vmatmul.mubr.msk.f32.gmra.mxu1 %vm66_vm6, %v2182_v45 }
 0x5d2   :  { %v85_v2 = vpop.xlane.xlu0 %84 }
 0x5d3   :  { %v92_v5 = vmul.f32 0.03125, %v85_v2 }
 0x5d6   :  { %v72_v7 = vpop.xlane.xlu0 %71 }
 0x5d7   :  { %v69_v1 = vpop.xlane.xlu1 %68  ;;  %v78_v53 = vmul.f32 0.03125, %v72_v7 }
 0x5d8   :  { %v77_v47 = vmul.f32 0.03125, %v69_v1 }
 0x5d9   :  { %v96_v59 = vmul.f32 %v78_v53, %v78_v53  ;;  %v105_v36 = vsub.f32 %v4361_v31, %v78_v53  ;;  %v2451_v53 = vld [vmem:[%s4647_s11 + $0x8] sm:$0xff] }
 0x5da   :  { %v95_v12 = vmul.f32 %v77_v47, %v77_v47  ;;  %v88_v54 = vpop.xlane.xlu0 %87  ;;  %v104_v32 = vsub.f32 %v4353_v10, %v77_v47  ;;  %v2966_v10 = vld [vmem:[%s4646_s5] ss:$0 sm:$0xff] }
 0x5db   :  { %v76_v57 = vpop.xlane.xlu1 %75  ;;  %v93_v62 = vmul.f32 0.03125, %v88_v54  ;;  %v2343_v54 = vld [vmem:[%s4649_s8 + $0x18] sm:$0xff] }
 0x5dc   :  { %v98_v61 = vsub.f32 %v92_v5, %v95_v12  ;;  %v79_v16 = vmul.f32 0.03125, %v76_v57  ;;  %v2450_v5 = vld [vmem:[%s4647_s11] sm:$0xff]  ;;  %v2452_v12 = vld [vmem:[%s4647_s11 + $0x10] sm:$0xff]  ;;  %3381 = vmatpush3.msra.mxu0 %v2343_v54 }
 0x5dd   :  { %v99_v3 = vsub.f32 %v93_v62, %v96_v59  ;;  %v2584_v57 = vld [vmem:[%s4648_s15] sm:$0xff]  ;;  %v2453_v59 = vld [vmem:[%s4647_s11 + $0x18] sm:$0xff]  ;;  %3382 = vmatprep.subr.mxu0 %v3558_v0  ;;  %v2341_v62 = vld [vmem:[%s4649_s8 + $0x8] sm:$0xff] }
 0x5de   :  { %v91_v63 = vpop.xlane.xlu0 %90  ;;  %v101_v20 = vmax.f32 %v98_v61, 0.0  ;;  %v97_v13 = vmul.f32 %v79_v16, %v79_v16  ;;  %v106_v51 = vsub.f32 %v4372_v18, %v79_v16  ;;  %v2342_v61 = vld [vmem:[%s4649_s8 + $0x10] sm:$0xff] }
 0x5df   :  { %v94_v4 = vmul.f32 0.03125, %v91_v63  ;;  %v102_v6 = vmax.f32 %v99_v3, 0.0  ;;  %v4405_v38 = vpop.permute.xlu1 %118  ;;  %3383 = vmatpush3.msra.mxu0 %v2342_v61  ;;  %v2586_v16 = vld [vmem:[%s4648_s15 + $0x10] sm:$0xff]  ;;  %v2585_v63 = vld [vmem:[%s4648_s15 + $0x8] sm:$0xff]  ;;  %v2587_v3 = vld [vmem:[%s4648_s15 + $0x18] sm:$0xff] }
 0x5e0   :  { %v107_v26 = vadd.f32 1e-05, %v101_v20  ;;  %3384 = vmatprep.subr.mxu0 %v3558_v0  ;;  %v2340_v20 = vld [vmem:[%s4649_s8] sm:$0xff]  ;;  %v2448_v61 = vld [vmem:[%s4650_s10 + $0x10] sm:$0xff] }
 0x5e1   :  { %v100_v8 = vsub.f32 %v94_v4, %v97_v13  ;;  %v108_v14 = vadd.f32 1e-05, %v102_v6  ;;  %3385 = vmatpush3.msra.mxu0 %v2341_v62  ;;  %v2582_v62 = vld [vmem:[%s4651_s14 + $0x10] sm:$0xff] }
 0x5e2   :  { %3546 = vrsqrt.f32 %v107_v26  ;;  %3386 = vmatprep.subr.mxu0 %v3558_v0 }
 0x5e3   :  { %v103_v11 = vmax.f32 %v100_v8, 0.0  ;;  %3548 = vrsqrt.f32 %v108_v14  ;;  %v4408_v46 = vpop.permute.xlu1 %123  ;;  %3387 = vmatpush3.msra.mxu0 %v2340_v20  ;;  %v2583_v20 = vld [vmem:[%s4651_s14 + $0x18] sm:$0xff] }
 0x5e5   :  { %v109_v17 = vadd.f32 1e-05, %v103_v11 }
 0x5e6   :  { %v4415_v44 = vpop.permute.xlu0 %136 }
 0x5e7   :  { %3550 = vrsqrt.f32 %v109_v17  ;;  %v4412_v22 = vpop.permute.xlu1 %141 }
 0x5eb   :  { %v4422_v48 = vpop.permute.xlu1 %128 }
 0x5ef   :  { %v3547_v15 = vpop.eup %3546  ;;  %v4432_v49 = vpop.permute.xlu1 %146 }
 0x5f0   :  { %v113_v21 = vmul.f32 %v3547_v15, %v104_v32  ;;  %v3549_v40 = vpop.eup %3548 }
 0x5f1   :  { %v114_v50 = vmul.f32 %v3549_v40, %v105_v36 }
 0x5f2   :  { %v131_v19 = vmul.f32 %v4405_v38, %v113_v21 }
 0x5f3   :  { %v132_v25 = vmul.f32 %v4408_v46, %v114_v50 }
 0x5f4   :  { %v3551_v27 = vpop.eup %3550  ;;  %v149_v31 = vadd.f32 %v4415_v44, %v131_v19 }
 0x5f5   :  { %v115_v33 = vmul.f32 %v3551_v27, %v106_v51  ;;  %v150_v29 = vadd.f32 %v4412_v22, %v132_v25 }
 0x5f7   :  { %v133_v41 = vmul.f32 %v4422_v48, %v115_v33 }
 0x5f9   :  { %v151_v60 = vadd.f32 %v4432_v49, %v133_v41 }
 0x65d   :  { %v2269_v55 = vpop.f32.mrf.mxu1 }
 0x65e   :  { %v2270_v23 = vadd.f32 %v2966_v10, %v2269_v55 }
 0x65f   :  { %v3373_v9 = vpop.f32.mrf.mxu1 }
 0x660   :  { %v4424_v24 = vadd.f32 %v2270_v23, %v149_v31 }
 0x662   :  { %v2274_v18 = vpop.f32.mrf.mxu1  ;;  %v2286_v28 = vsel %vm66_vm6, %v4424_v24, 0.0  ;;  %v2298_v30 = vmul.f32 %v4424_v24, %v4424_v24 }
 0x663   :  { %v2275_v52 = vadd.f32 %v2966_v10, %v2274_v18  ;;  %2287 = vadd.xlane.f32.xlu1 %v2286_v28 }
 0x664   :  { %v3376_v34 = vpop.f32.mrf.mxu1  ;;  %v2301_v35 = vsel %vm66_vm6, %v2298_v30, 0.0 }
 0x665   :  { %v4434_v56 = vadd.f32 %v2275_v52, %v150_v29  ;;  %2302 = vadd.xlane.f32.xlu0 %v2301_v35 }
 0x666   :  { %v2279_v37 = vpop.f32.mrf.mxu1 }
 0x667   :  { %v2289_v58 = vsel %vm66_vm6, %v4434_v56, 0.0  ;;  %v2299_v39 = vmul.f32 %v4434_v56, %v4434_v56  ;;  %v2280_v42 = vadd.f32 %v2966_v10, %v2279_v37 }
 0x668   :  { %2290 = vadd.xlane.f32.xlu1 %v2289_v58  ;;  %v3379_v43 = vpop.f32.mrf.mxu1 }
 0x669   :  { %v4442_v45 = vadd.f32 %v2280_v42, %v151_v60  ;;  %v2304_v2 = vsel %vm66_vm6, %v2299_v39, 0.0 }
 0x66b   :  { %v2300_v1 = vmul.f32 %v4442_v45, %v4442_v45  ;;  %v2292_v47 = vsel %vm73_vm8, %v4442_v45, 0.0 }
 0x66c   :  { %2305 = vadd.xlane.f32.xlu1 %v2304_v2 }
 0x66d   :  { %v2307_v7 = vsel %vm73_vm8, %v2300_v1, 0.0 }
 0x66e   :  { %2308 = vadd.xlane.f32.xlu0 %v2307_v7 }
 0x670   :  { %2293 = vadd.xlane.f32.xlu1 %v2292_v47 }
 0x681   :  { %2456 = vperm.xlu1 %3448, %v2450_v5  }
 0x684   :  { %2461 = vperm.xlu0 %3449, %v2451_v53  }
 0x685   :  { %2466 = vperm.xlu1 %3448, %v2452_v12  }
 0x688   :  { %2590 = vperm.xlu0 %3449, %v2584_v57  }
 0x689   :  { %2471 = vperm.xlu1 %3448, %v2453_v59   ;;  %v2708_v59 = vld [vmem:[%s4654_s12 + $0x18] sm:$0xff] }
 0x68c   :  { %2600 = vperm.xlu0 %3449, %v2586_v16   ;;  %v2707_v16 = vld [vmem:[%s4654_s12 + $0x10] sm:$0xff] }
 0x68d   :  { %2595 = vperm.xlu1 %3448, %v2585_v63   ;;  %v2449_v63 = vld [vmem:[%s4650_s10 + $0x18] sm:$0xff] }
 0x691   :  { %2605 = vperm.xlu1 %3448, %v2587_v3   ;;  %v2706_v3 = vld [vmem:[%s4654_s12 + $0x8] sm:$0xff] }
 0x6ec   :  { %v2288_v13 = vpop.xlane.xlu1 %2287 }
 0x6ed   :  { %v2295_v4 = vmul.f32 0.03125, %v2288_v13  ;;  %v2705_v13 = vld [vmem:[%s4654_s12] sm:$0xff] }
 0x6ee   :  { %v2303_v26 = vpop.xlane.xlu0 %2302 }
 0x6ef   :  { %v2313_v6 = vmul.f32 %v2295_v4, %v2295_v4  ;;  %v2310_v8 = vmul.f32 0.03125, %v2303_v26  ;;  %v2322_v18 = vsub.f32 %v4424_v24, %v2295_v4 }
 0x6f1   :  { %v2291_v14 = vpop.xlane.xlu1 %2290  ;;  %v2316_v11 = vsub.f32 %v2310_v8, %v2313_v6 }
 0x6f2   :  { %v2296_v17 = vmul.f32 0.03125, %v2291_v14 }
 0x6f3   :  { %v2319_v32 = vmax.f32 %v2316_v11, 0.0 }
 0x6f4   :  { %v2314_v21 = vmul.f32 %v2296_v17, %v2296_v17  ;;  %v2323_v30 = vsub.f32 %v4434_v56, %v2296_v17 }
 0x6f5   :  { %v2306_v15 = vpop.xlane.xlu1 %2305  ;;  %v2325_v36 = vadd.f32 1e-05, %v2319_v32 }
 0x6f6   :  { %v2311_v40 = vmul.f32 0.03125, %v2306_v15 }
 0x6f7   :  { %3552 = vrsqrt.f32 %v2325_v36  ;;  %v2309_v50 = vpop.xlane.xlu0 %2308 }
 0x6f8   :  { %v2317_v19 = vsub.f32 %v2311_v40, %v2314_v21  ;;  %v2312_v25 = vmul.f32 0.03125, %v2309_v50 }
 0x6f9   :  { %v2294_v51 = vpop.xlane.xlu1 %2293 }
 0x6fa   :  { %v2320_v10 = vmax.f32 %v2317_v19, 0.0  ;;  %v2297_v27 = vmul.f32 0.03125, %v2294_v51 }
 0x6fc   :  { %v2326_v55 = vadd.f32 1e-05, %v2320_v10  ;;  %v2315_v31 = vmul.f32 %v2297_v27, %v2297_v27  ;;  %v2324_v58 = vsub.f32 %v4442_v45, %v2297_v27 }
 0x6fd   :  { %v2457_v4 = vpop.permute.xlu1 %2456 }
 0x6fe   :  { %3554 = vrsqrt.f32 %v2326_v55  ;;  %v2318_v23 = vsub.f32 %v2312_v25, %v2315_v31 }
 0x6ff   :  { %v2462_v8 = vpop.permute.xlu0 %2461 }
 0x700   :  { %v2321_v33 = vmax.f32 %v2318_v23, 0.0 }
 0x701   :  { %v2467_v26 = vpop.permute.xlu1 %2466 }
 0x702   :  { %v2327_v9 = vadd.f32 1e-05, %v2321_v33 }
 0x703   :  { %v2591_v11 = vpop.permute.xlu0 %2590 }
 0x704   :  { %3556 = vrsqrt.f32 %v2327_v9  ;;  %v3553_v29 = vpop.eup %3552 }
 0x705   :  { %v2331_v52 = vmul.f32 %v3553_v29, %v2322_v18  ;;  %v2472_v6 = vpop.permute.xlu1 %2471  ;;  %v2988_v18 = vld [vmem:[%s4657_s13] ss:$0 sm:$0xff] }
 0x707   :  { %v2334_v28 = vmul.f32 %v2331_v52, %v4405_v38  ;;  %v2601_v27 = vpop.permute.xlu0 %2600 }
 0x709   :  { %v2337_v41 = vadd.f32 %v2334_v28, %v4415_v44  ;;  %v2596_v14 = vpop.permute.xlu1 %2595 }
 0x70b   :  { %v3555_v34 = vpop.eup %3554  ;;  %3389 = vmatmul.mubr.msk.f32.vlgmr.msra.gmra.mxu0 %vm66_vm6, %v2337_v41 }
 0x70c   :  { %v2332_v35 = vmul.f32 %v3555_v34, %v2323_v30  ;;  %3391 = vmatprep.mubr.msk.f32.mxu0 %vm3559_vm1, %v3558_v0 }
 0x70d   :  { %v2606_v19 = vpop.permute.xlu1 %2605 }
 0x70e   :  { %v2335_v37 = vmul.f32 %v2332_v35, %v4408_v46  ;;  %v2446_v46 = vld [vmem:[%s4650_s10] sm:$0xff] }
 0x70f   :  { %3403 = vmatprep.mubr.msk.f32.mxu1 %vm66_vm6, %v2446_v46 }
 0x710   :  { %v2338_v39 = vadd.f32 %v2335_v37, %v4412_v22  ;;  %v2580_v22 = vld [vmem:[%s4651_s14] sm:$0xff] }
 0x711   :  { %v3557_v60 = vpop.eup %3556 }
 0x712   :  { %v2333_v42 = vmul.f32 %v3557_v60, %v2324_v58  ;;  %3392 = vmatmul.mubr.msk.f32.gmra.mxu0 %vm66_vm6, %v2338_v39 }
 0x713   :  { %3394 = vmatprep.mubr.msk.f32.mxu0 %vm3559_vm1, %v3558_v0 }
 0x714   :  { %v2336_v38 = vmul.f32 %v2333_v42, %v4422_v48  ;;  %v2970_v48 = vld [vmem:[%s4652_s9] ss:$0 sm:$0xff] }
 0x716   :  { %v2339_v44 = vadd.f32 %v2336_v38, %v4432_v49 }
 0x718   :  { %3395 = vmatmul.mubr.msk.f32.gmra.mxu0 %vm66_vm6, %v2339_v44 }
 0x719   :  { %3415 = vmatprep.mubr.msk.f32.mxu0 %vm66_vm6, %v2580_v22 }
 0x7cb   :  { %v2426_v43 = vpop.f32.mrf.mxu0 }
 0x7cc   :  { %v2427_v49 = vadd.f32 %v2970_v48, %v2426_v43 }
 0x7cd   :  { %v3390_v2 = vpop.f32.mrf.mxu0 }
 0x7ce   :  { %v2440_v1 = vadd.f32 %v2427_v49, %v4424_v24 }
 0x7d0   :  { %2443 = vst.msk [vmem:[%s4653_s16] sm:$0xff] %vm66_vm6, %v2440_v1 }
 0x7d2   :  { %v2431_v7 = vpop.f32.mrf.mxu0 }
 0x7d3   :  { %v2432_v47 = vadd.f32 %v2970_v48, %v2431_v7 }
 0x7d4   :  { %v3393_v5 = vpop.f32.mrf.mxu0 }
 0x7d5   :  { %v2441_v53 = vadd.f32 %v2432_v47, %v4434_v56  ;;  %v2447_v56 = vld [vmem:[%s4650_s10 + $0x8] sm:$0xff] }
 0x7d7   :  { %2444 = vst.msk [vmem:[%s4653_s16 + $0x8] sm:$0xff] %vm66_vm6, %v2441_v53 }
 0x7d8   :  { %v2436_v12 = vpop.f32.mrf.mxu0 }
 0x7d9   :  { %v2437_v54 = vadd.f32 %v2970_v48, %v2436_v12 }
 0x7da   :  { %v3396_v57 = vpop.f32.mrf.mxu0 }
 0x7db   :  { %v2442_v24 = vadd.f32 %v2437_v54, %v4442_v45  ;;  %v2581_v45 = vld [vmem:[%s4651_s14 + $0x8] sm:$0xff] }
 0x7dd   :  { %2445 = vst.msk [vmem:[%s4653_s16 + $0x10] sm:$0x1] %vm73_vm8, %v2442_v24  ;;  %3397 = vmatprep.subr.msk.mxu1 %vm66_vm6, %v2442_v24  ;;  %3409 = vmatprep.subr.msk.mxu0 %vm66_vm6, %v2442_v24 }
 0x7de   :  { %3398 = vmatpush3.xpose.msk.msra.mxu1 %vm66_vm6, %v2442_v24  ;;  %3410 = vmatpush3.xpose.msk.msra.mxu0 %vm66_vm6, %v2442_v24 }
 0x7df   :  { %3399 = vmatprep.subr.msk.mxu1 %vm66_vm6, %v2441_v53  ;;  %3411 = vmatprep.subr.msk.mxu0 %vm66_vm6, %v2441_v53 }
 0x7e2   :  { %3400 = vmatpush3.xpose.msk.msra.mxu1 %vm66_vm6, %v2441_v53  ;;  %3412 = vmatpush3.xpose.msk.msra.mxu0 %vm66_vm6, %v2441_v53 }
 0x7e3   :  { %3401 = vmatprep.subr.msk.mxu1 %vm66_vm6, %v2440_v1  ;;  %3413 = vmatprep.subr.msk.mxu0 %vm66_vm6, %v2440_v1 }
 0x7e6   :  { %3402 = vmatpush3.xpose.msk.msra.mxu1 %vm66_vm6, %v2440_v1  ;;  %3414 = vmatpush3.xpose.msk.msra.mxu0 %vm66_vm6, %v2440_v1 }
 0x7e7   :  { %3421 = vmatprep.subr.mxu1 %v3558_v0 }
 0x7e9   :  { %3404 = vmatmul.mubr.msk.f32.vlgmr.msra.gmra.mxu1 %vm66_vm6, %v2447_v56  ;;  %3416 = vmatmul.mubr.msk.f32.vlgmr.msra.gmra.mxu0 %vm66_vm6, %v2581_v45 }
 0x7ea   :  { %3422 = vmatpush3.msra.mxu1 %v2708_v59  ;;  %3406 = vmatprep.mubr.msk.f32.mxu1 %vm66_vm6, %v2448_v61 }
 0x7eb   :  { %3423 = vmatprep.subr.mxu1 %v3558_v0  ;;  %3418 = vmatprep.mubr.msk.f32.mxu0 %vm66_vm6, %v2582_v62 }
 0x7ec   :  { %3424 = vmatpush3.msra.mxu1 %v2707_v16 }
 0x7ed   :  { %3407 = vmatmul.mubr.msk.f32.gmra.mxu1 %vm66_vm6, %v2449_v63  ;;  %3419 = vmatmul.mubr.msk.f32.gmra.mxu0 %vm66_vm6, %v2583_v20 }
 0x7ee   :  { %3425 = vmatprep.subr.mxu1 %v3558_v0  ;;  %3429 = vmatprep.mubr.msk.f32.mxu1 %vm3559_vm1, %v3558_v0 }
 0x7ef   :  { %3426 = vmatpush3.msra.mxu1 %v2706_v3 }
 0x7f0   :  { %3427 = vmatprep.subr.mxu1 %v3558_v0 }
 0x7f1   :  { %3428 = vmatpush3.msra.mxu1 %v2705_v13 }
 0x7f2   :  { %3430 = vmatmul.mubr.msk.f32.vlgmr.msra.gmra.mxu1 %vm66_vm6, %v2440_v1 }
 0x7f3   :  { %3432 = vmatprep.mubr.msk.f32.mxu1 %vm3559_vm1, %v3558_v0 }
 0x7f6   :  { %3433 = vmatmul.mubr.msk.f32.gmra.mxu1 %vm66_vm6, %v2441_v53 }
 0x7f7   :  { %3435 = vmatprep.mubr.msk.f32.mxu1 %vm3559_vm1, %v3558_v0 }
 0x7fa   :  { %3436 = vmatmul.mubr.msk.f32.gmra.mxu1 %vm66_vm6, %v2442_v24 }
 0x8a9   :  { %v3405_v17 = vpop.f32.mrf.mxu1  ;;  %v3417_v32 = vpop.f32.mrf.mxu0 }
 0x8aa   :  { %v2567_v15 = vadd.f32 %v3405_v17, %v2462_v8  ;;  %v2692_v36 = vadd.f32 %v3417_v32, %v2596_v14 }
 0x8ab   :  { %v2561_v21 = vpop.f32.mrf.mxu1  ;;  %v2686_v40 = vpop.f32.mrf.mxu0 }
 0x8ac   :  { %2797 = vst.msk [vmem:[%s4655_s17 + $0x8] sm:$0xff] %vm263_vm2, %v2567_v15  ;;  %2804 = vst.msk [vmem:[%s4656_s19 + $0x8] sm:$0xff] %vm263_vm2, %v2692_v36  ;;  %v2562_v0 = vadd.f32 %v2561_v21, %v2457_v4  ;;  %v2687_v50 = vadd.f32 %v2686_v40, %v2591_v11 }
 0x8ad   :  { %v3408_v51 = vpop.f32.mrf.mxu1  ;;  %v3420_v10 = vpop.f32.mrf.mxu0 }
 0x8ae   :  { %2796 = vst.msk [vmem:[%s4655_s17] sm:$0xff] %vm263_vm2, %v2562_v0  ;;  %2803 = vst.msk [vmem:[%s4656_s19] sm:$0xff] %vm263_vm2, %v2687_v50  ;;  %v2577_v55 = vadd.f32 %v3408_v51, %v2472_v6  ;;  %v2702_v25 = vadd.f32 %v3420_v10, %v2606_v19 }
 0x8af   :  { %v2571_v31 = vpop.f32.mrf.mxu1  ;;  %v2696_v23 = vpop.f32.mrf.mxu0 }
 0x8b0   :  { %2799 = vst.msk [vmem:[%s4655_s17 + $0x18] sm:$0xff] %vm263_vm2, %v2577_v55  ;;  %2806 = vst.msk [vmem:[%s4656_s19 + $0x18] sm:$0xff] %vm263_vm2, %v2702_v25  ;;  %v2572_v33 = vadd.f32 %v2571_v31, %v2467_v26  ;;  %v2697_v9 = vadd.f32 %v2696_v23, %v2601_v27 }
 0x8b2   :  { %2798 = vst.msk [vmem:[%s4655_s17 + $0x10] sm:$0xff] %vm263_vm2, %v2572_v33  ;;  %2805 = vst.msk [vmem:[%s4656_s19 + $0x10] sm:$0xff] %vm263_vm2, %v2697_v9  ;;  %v2782_v29 = vpop.f32.mrf.mxu1 }
 0x8b3   :  { %v2783_v52 = vadd.f32 %v2988_v18, %v2782_v29 }
 0x8b4   :  { %v3431_v28 = vpop.f32.mrf.mxu1 }
 0x8b5   :  { %2800 = vst.msk [vmem:[%s4658_s18] sm:$0xff] %vm66_vm6, %v2783_v52 }
 0x8b6   :  { %v2787_v30 = vpop.f32.mrf.mxu1 }
 0x8b7   :  { %v2788_v41 = vadd.f32 %v2988_v18, %v2787_v30 }
 0x8b8   :  { %v3434_v34 = vpop.f32.mrf.mxu1 }
 0x8b9   :  { %2801 = vst.msk [vmem:[%s4658_s18 + $0x8] sm:$0xff] %vm66_vm6, %v2788_v41 }
 0x8ba   :  { %v2792_v35 = vpop.f32.mrf.mxu1 }
 0x8bb   :  { %v2793_v37 = vadd.f32 %v2988_v18, %v2792_v35 }
 0x8bc   :  { %v3437_v58 = vpop.f32.mrf.mxu1 }
 0x8bd   :  { %2802 = vst.msk [vmem:[%s4658_s18 + $0x10] sm:$0x1] %vm73_vm8, %v2793_v37 }

// kernel: vit_forward.5
= control target key start
LH: loop header
LB: loop body
LE: loop exit
PB: predicated region body
PF: predicated region fallthrough
CT: control target
= control target key end

     0   :  { %vm143_vm0 = vcmask 31744   ;;  %v3209_v1 = vmov 0.0   ;;  %vm3210_vm1 = vmmov 0   ;;  %s4148_s0 = inlined_call_operand.vmem [shape: f32[17,32], index: 0, kind: input, shape index: {}]   ;;  %s4149_s1 = inlined_call_operand.vmem [shape: f32[8,17,4], index: 1, kind: input, shape index: {}]   ;;  %s4150_s2 = inlined_call_operand.vmem [shape: f32[8,17,4], index: 2, kind: input, shape index: {}]   ;;  %s4151_s3 = inlined_call_operand.vmem [shape: f32[8,17,4], index: 3, kind: input, shape index: {}]   ;;  %s4152_s4 = inlined_call_operand.vmem [shape: f32[32,32], index: 4, kind: input, shape index: {}]   ;;  %s4153_s5 = inlined_call_operand.vmem [shape: f32[1,32], index: 5, kind: input, shape index: {}]   ;;  %s4154_s6 = inlined_call_operand.vmem [shape: f32[17,1], index: 6, kind: input, shape index: {}]   ;;  %s4155_s7 = inlined_call_operand.vmem [shape: f32[17,1], index: 7, kind: input, shape index: {}]   ;;  %s4156_s8 = inlined_call_operand.vmem [shape: f32[32,32], index: 8, kind: input, shape index: {}]   ;;  %s4157_s9 = inlined_call_operand.vmem [shape: f32[1,32], index: 9, kind: input, shape index: {}]   ;;  %s4158_s10 = inlined_call_operand.vmem [shape: f32[32,10], index: 10, kind: input, shape index: {}]   ;;  %s4159_s11 = inlined_call_operand.hbm [shape: f32[1,10], index: 11, kind: output, shape index: {}]  }
   0x1   :  { %v139_v0 = vld [vmem:[%s4150_s2 + $0x10] sm:$0x1]  ;;  %2781 = vmatprep.subr.mxu0 %v3209_v1  ;;  %2796 = vmatprep.subr.mxu1 %v3209_v1 }
   0x2   :  { %2782 = vmatpush3.xpose.msk.msra.mxu0 %vm143_vm0, %v139_v0  ;;  %2787 = vmatprep.mubr.msk.f32.mxu0 %vm3210_vm1, %v3209_v1 }
   0x3   :  { %16 = vsyncpa [#allocation4], 0  ;;  %2783 = vmatprep.subr.mxu0 %v3209_v1  ;;  %v138_v2 = vld [vmem:[%s4150_s2 + $0x8] sm:$0xff]  ;;  %2802 = vmatprep.mubr.msk.f32.mxu1 %vm3210_vm1, %v3209_v1  ;;  %v137_v3 = vld [vmem:[%s4150_s2] sm:$0xff]  ;;  %vm245_vm2 = vcmask 138240   ;;  %vm252_vm3 = vcmask 131072  }
   0x4   :  { %v134_v4 = vld [vmem:[%s4149_s1] sm:$0xff]  ;;  %v135_v5 = vld [vmem:[%s4149_s1 + $0x8] sm:$0xff]  ;;  %v136_v6 = vld [vmem:[%s4149_s1 + $0x10] sm:$0x1]  ;;  %vm289_vm4 = vcmask 1040384   ;;  %vm375_vm5 = vcmask 24576  }
   0x5   :  { %v142_v34 = vld [vmem:[%s4151_s3 + $0x10] sm:$0x1]  ;;  %v141_v35 = vld [vmem:[%s4151_s3 + $0x8] sm:$0xff]  ;;  %v140_v36 = vld [vmem:[%s4151_s3] sm:$0xff]  ;;  %s3214_s23 = smov 12   ;;  %s3215_s24 = smov 16  }
   0x6   :  { %2784 = vmatpush3.xpose.msk.msra.mxu0 %vm143_vm0, %v138_v2  ;;  %2797 = vmatpush3.msk.msra.mxu1 %vm289_vm4, %v142_v34  ;;  %v2529_v42 = vld [vmem:[%s4150_s2 + $0x28] sm:$0x1]  ;;  %v2528_v45 = vld [vmem:[%s4150_s2 + $0x20] sm:$0xff]  ;;  %v2527_v48 = vld [vmem:[%s4150_s2 + $0x18] sm:$0xff]  ;;  %s3216_s29 = smov 20   ;;  %s3217_s15 = smov 24  }
   0x7   :  { %2785 = vmatprep.subr.mxu0 %v3209_v1  ;;  %2798 = vmatprep.subr.mxu1 %v3209_v1  ;;  %v2524_v49 = vld [vmem:[%s4149_s1 + $0x18] sm:$0xff]  ;;  %v2548_v50 = vld [vmem:[%s4150_s2 + $0x40] sm:$0x1]  ;;  %v2526_v53 = vld [vmem:[%s4149_s1 + $0x28] sm:$0x1]  ;;  %s3218_s16 = smov 28  }
   0x8   :  { %2799 = vmatpush3.msra.mxu1 %v141_v35  ;;  %v2525_v51 = vld [vmem:[%s4149_s1 + $0x20] sm:$0xff]  ;;  %v2547_v52 = vld [vmem:[%s4150_s2 + $0x38] sm:$0xff]  ;;  %v2546_v54 = vld [vmem:[%s4150_s2 + $0x30] sm:$0xff]  ;;  %vm48_vm6 = vcmask 261120   ;;  %vm627_vm7 = vcmask 64544   ;;  %vm882_vm8 = vcmask 97344  }
   0x9   :  { %2800 = vmatprep.subr.mxu1 %v3209_v1  ;;  %v2543_v55 = vld [vmem:[%s4149_s1 + $0x30] sm:$0xff]  ;;  %v2567_v56 = vld [vmem:[%s4150_s2 + $0x58] sm:$0x1]  ;;  %v2545_v59 = vld [vmem:[%s4149_s1 + $0x40] sm:$0x1]  ;;  %vm1137_vm9 = vcmask 130144  }
   0xa   :  { %2786 = vmatpush3.xpose.msk.msra.mxu0 %vm143_vm0, %v137_v3  ;;  %2801 = vmatpush3.msra.mxu1 %v140_v36  ;;  %v2544_v57 = vld [vmem:[%s4149_s1 + $0x38] sm:$0xff]  ;;  %v2566_v58 = vld [vmem:[%s4150_s2 + $0x50] sm:$0xff]  ;;  %v2565_v60 = vld [vmem:[%s4150_s2 + $0x48] sm:$0xff]  ;;  %vm1392_vm10 = vcmask 162944   ;;  %vm1647_vm11 = vcmask 195744   ;;  %vm1902_vm12 = vcmask 228544  }
   0xb   :  { %2826 = vmatprep.subr.mxu0 %v3209_v1  ;;  %2811 = vmatprep.subr.mxu1 %v3209_v1  ;;  %v2562_v61 = vld [vmem:[%s4149_s1 + $0x48] sm:$0xff]  ;;  %v2586_v62 = vld [vmem:[%s4150_s2 + $0x70] sm:$0x1]  ;;  %v2564_v2 = vld [vmem:[%s4149_s1 + $0x58] sm:$0x1]  ;;  %vm2157_vm13 = vcmask 261344  }
   0xc   :  { %v2563_v63 = vld [vmem:[%s4149_s1 + $0x50] sm:$0xff]  ;;  %v2585_v0 = vld [vmem:[%s4150_s2 + $0x68] sm:$0xff]  ;;  %v2584_v3 = vld [vmem:[%s4150_s2 + $0x60] sm:$0xff]  ;;  %vm630_vm14 = vcmask 57376   ;;  %vm885_vm15 = vcmask 90176  }
   0xd   :  { %2788 = vmatmul.mubr.msk.f32.vlgmr.msra.gmra.mxu0 %vm143_vm0, %v134_v4  ;;  %v2581_v4 = vld [vmem:[%s4149_s1 + $0x60] sm:$0xff] }
   0xe   :  { %2790 = vmatprep.mubr.msk.f32.mxu0 %vm3210_vm1, %v3209_v1 }
  0x11   :  { %2791 = vmatmul.mubr.msk.f32.gmra.mxu0 %vm143_vm0, %v135_v5  ;;  %v2605_v5 = vld [vmem:[%s4150_s2 + $0x88] sm:$0x1] }
  0x12   :  { %2793 = vmatprep.mubr.msk.f32.mxu0 %vm3210_vm1, %v3209_v1 }
  0x15   :  { %2794 = vmatmul.mubr.msk.f32.gmra.mxu0 %vm143_vm0, %v136_v6  ;;  %v2582_v6 = vld [vmem:[%s4149_s1 + $0x68] sm:$0xff] }
  0x16   :  { %2832 = vmatprep.mubr.msk.f32.mxu0 %vm3210_vm1, %v3209_v1 }
  0xcd   :  { %v228_v7 = vpop.f32.mrf.mxu0 }
  0xce   :  { %v242_v8 = vmul.f32 0.25, %v228_v7  ;;  %v2604_v7 = vld [vmem:[%s4150_s2 + $0x80] sm:$0xff] }
  0xcf   :  { %v2789_v9 = vpop.f32.mrf.mxu0 }
  0xd0   :  { %v246_v10 = vsel %vm245_vm2, %v242_v8, -inf  ;;  %v2603_v9 = vld [vmem:[%s4150_s2 + $0x78] sm:$0xff] }
  0xd1   :  { %247 = vmax.xlane.f32.xlu0 %v246_v10  ;;  %v233_v11 = vpop.f32.mrf.mxu0  ;;  %v2600_v10 = vld [vmem:[%s4149_s1 + $0x78] sm:$0xff] }
  0xd2   :  { %v243_v12 = vmul.f32 0.25, %v233_v11  ;;  %v2624_v11 = vld [vmem:[%s4150_s2 + $0xa0] sm:$0x1] }
  0xd3   :  { %v2792_v13 = vpop.f32.mrf.mxu0 }
  0xd4   :  { %v249_v14 = vsel %vm245_vm2, %v243_v12, -inf  ;;  %v2623_v13 = vld [vmem:[%s4150_s2 + $0x98] sm:$0xff] }
  0xd5   :  { %250 = vmax.xlane.f32.xlu0 %v249_v14  ;;  %v238_v15 = vpop.f32.mrf.mxu0  ;;  %v2602_v14 = vld [vmem:[%s4149_s1 + $0x88] sm:$0x1] }
  0xd6   :  { %v244_v16 = vmul.f32 0.25, %v238_v15  ;;  %v2622_v15 = vld [vmem:[%s4150_s2 + $0x90] sm:$0xff] }
  0xd7   :  { %v2795_v17 = vpop.f32.mrf.mxu0 }
  0xd8   :  { %v253_v18 = vsel %vm252_vm3, %v244_v16, -inf  ;;  %v2643_v17 = vld [vmem:[%s4150_s2 + $0xb8] sm:$0x1] }
  0xd9   :  { %254 = vmax.xlane.f32.xlu1 %v253_v18  ;;  %v2620_v18 = vld [vmem:[%s4149_s1 + $0x98] sm:$0xff] }
 0x15a   :  { %v248_v19 = vpop.xlane.xlu0 %247 }
 0x15b   :  { %v256_v20 = vsub.f32 %v242_v8, %v248_v19  ;;  %v2583_v8 = vld [vmem:[%s4149_s1 + $0x70] sm:$0x1] }
 0x15c   :  { %v2642_v19 = vld [vmem:[%s4150_s2 + $0xb0] sm:$0xff] }
 0x15d   :  { %v259_v21 = vmul.f32 1.442695, %v256_v20  ;;  %v2621_v20 = vld [vmem:[%s4149_s1 + $0xa0] sm:$0x1] }
 0x15e   :  { %v251_v22 = vpop.xlane.xlu0 %250 }
 0x15f   :  { %3079 = vpow2.f32 %v259_v21  ;;  %v257_v23 = vsub.f32 %v243_v12, %v251_v22  ;;  %v2601_v12 = vld [vmem:[%s4149_s1 + $0x80] sm:$0xff]  ;;  %v2641_v21 = vld [vmem:[%s4150_s2 + $0xa8] sm:$0xff] }
 0x160   :  { %v2638_v22 = vld [vmem:[%s4149_s1 + $0xa8] sm:$0xff] }
 0x161   :  { %v261_v24 = vmul.f32 1.442695, %v257_v23  ;;  %v2639_v23 = vld [vmem:[%s4149_s1 + $0xb0] sm:$0xff] }
 0x162   :  { %v255_v25 = vpop.xlane.xlu1 %254 }
 0x163   :  { %3081 = vpow2.f32 %v261_v24  ;;  %v258_v26 = vsub.f32 %v244_v16, %v255_v25  ;;  %v2619_v16 = vld [vmem:[%s4149_s1 + $0x90] sm:$0xff]  ;;  %v2640_v24 = vld [vmem:[%s4149_s1 + $0xb8] sm:$0x1]  ;;  %s3213_s1 = smov 8  }
 0x165   :  { %v263_v27 = vmul.f32 1.442695, %v258_v26 }
 0x167   :  { %3083 = vpow2.f32 %v263_v27 }
 0x16c   :  { %v3080_v28 = vpop.eup %3079 }
 0x16d   :  { %v265_v29 = vsel %vm245_vm2, %v3080_v28, 0.0 }
 0x16e   :  { %266 = vadd.xlane.f32.xlu1 %v265_v29 }
 0x170   :  { %v3082_v30 = vpop.eup %3081 }
 0x171   :  { %v268_v31 = vsel %vm245_vm2, %v3082_v30, 0.0 }
 0x172   :  { %269 = vadd.xlane.f32.xlu0 %v268_v31 }
 0x174   :  { %v3084_v32 = vpop.eup %3083 }
 0x175   :  { %v271_v33 = vsel %vm252_vm3, %v3084_v32, 0.0 }
 0x176   :  { %272 = vadd.xlane.f32.xlu1 %v271_v33 }
 0x1f7   :  { %v267_v37 = vpop.xlane.xlu1 %266 }
 0x1f8   :  { %3085 = vrcp.f32 %v267_v37 }
 0x1fb   :  { %v270_v38 = vpop.xlane.xlu0 %269 }
 0x1fc   :  { %3087 = vrcp.f32 %v270_v38 }
 0x1ff   :  { %v273_v39 = vpop.xlane.xlu1 %272 }
 0x200   :  { %3089 = vrcp.f32 %v273_v39 }
 0x205   :  { %v3086_v40 = vpop.eup %3085 }
 0x206   :  { %v277_v41 = vmul.f32 %v3086_v40, %v3080_v28 }
 0x208   :  { %2803 = vmatmul.mubr.msk.f32.vlgmr.msra.gmra.mxu1 %vm245_vm2, %v277_v41 }
 0x209   :  { %v3088_v43 = vpop.eup %3087  ;;  %2812 = vmatpush3.xpose.msk.msra.mxu1 %vm143_vm0, %v2529_v42  ;;  %2805 = vmatprep.mubr.msk.f32.mxu1 %vm3210_vm1, %v3209_v1 }
 0x20a   :  { %2813 = vmatprep.subr.mxu1 %v3209_v1  ;;  %v278_v44 = vmul.f32 %v3088_v43, %v3082_v30 }
 0x20c   :  { %2806 = vmatmul.mubr.msk.f32.gmra.mxu1 %vm245_vm2, %v278_v44 }
 0x20d   :  { %v3090_v46 = vpop.eup %3089  ;;  %2814 = vmatpush3.xpose.msk.msra.mxu1 %vm143_vm0, %v2528_v45  ;;  %2808 = vmatprep.mubr.msk.f32.mxu1 %vm3210_vm1, %v3209_v1 }
 0x20e   :  { %2815 = vmatprep.subr.mxu1 %v3209_v1  ;;  %v279_v47 = vmul.f32 %v3090_v46, %v3084_v32 }
 0x210   :  { %2809 = vmatmul.mubr.msk.f32.gmra.mxu1 %vm245_vm2, %v279_v47 }
 0x211   :  { %2816 = vmatpush3.xpose.msk.msra.mxu1 %vm143_vm0, %v2527_v48  ;;  %2817 = vmatprep.mubr.msk.f32.mxu1 %vm3210_vm1, %v3209_v1 }
 0x212   :  { %2841 = vmatprep.subr.mxu1 %v3209_v1 }
 0x214   :  { %2818 = vmatmul.mubr.msk.f32.vlgmr.msra.gmra.mxu1 %vm143_vm0, %v2524_v49 }
 0x215   :  { %2842 = vmatpush3.xpose.msk.msra.mxu1 %vm143_vm0, %v2548_v50  ;;  %2820 = vmatprep.mubr.msk.f32.mxu1 %vm3210_vm1, %v3209_v1 }
 0x216   :  { %2843 = vmatprep.subr.mxu1 %v3209_v1 }
 0x218   :  { %2821 = vmatmul.mubr.msk.f32.gmra.mxu1 %vm143_vm0, %v2525_v51 }
 0x219   :  { %2844 = vmatpush3.xpose.msk.msra.mxu1 %vm143_vm0, %v2547_v52  ;;  %2823 = vmatprep.mubr.msk.f32.mxu1 %vm3210_vm1, %v3209_v1 }
 0x21a   :  { %2845 = vmatprep.subr.mxu1 %v3209_v1 }
 0x21c   :  { %2824 = vmatmul.mubr.msk.f32.gmra.mxu1 %vm143_vm0, %v2526_v53 }
 0x21d   :  { %2846 = vmatpush3.xpose.msk.msra.mxu1 %vm143_vm0, %v2546_v54  ;;  %2847 = vmatprep.mubr.msk.f32.mxu1 %vm3210_vm1, %v3209_v1 }
 0x21e   :  { %2871 = vmatprep.subr.mxu1 %v3209_v1 }
 0x220   :  { %2848 = vmatmul.mubr.msk.f32.vlgmr.msra.gmra.mxu1 %vm143_vm0, %v2543_v55 }
 0x221   :  { %2872 = vmatpush3.xpose.msk.msra.mxu1 %vm143_vm0, %v2567_v56  ;;  %2850 = vmatprep.mubr.msk.f32.mxu1 %vm3210_vm1, %v3209_v1 }
 0x222   :  { %2873 = vmatprep.subr.mxu1 %v3209_v1 }
 0x224   :  { %2851 = vmatmul.mubr.msk.f32.gmra.mxu1 %vm143_vm0, %v2544_v57 }
 0x225   :  { %2874 = vmatpush3.xpose.msk.msra.mxu1 %vm143_vm0, %v2566_v58  ;;  %2853 = vmatprep.mubr.msk.f32.mxu1 %vm3210_vm1, %v3209_v1 }
 0x226   :  { %2875 = vmatprep.subr.mxu1 %v3209_v1 }
 0x228   :  { %2854 = vmatmul.mubr.msk.f32.gmra.mxu1 %vm143_vm0, %v2545_v59 }
 0x229   :  { %2876 = vmatpush3.xpose.msk.msra.mxu1 %vm143_vm0, %v2565_v60  ;;  %2877 = vmatprep.mubr.msk.f32.mxu1 %vm3210_vm1, %v3209_v1 }
 0x22a   :  { %2901 = vmatprep.subr.mxu1 %v3209_v1 }
 0x22c   :  { %2878 = vmatmul.mubr.msk.f32.vlgmr.msra.gmra.mxu1 %vm143_vm0, %v2562_v61 }
 0x22d   :  { %2902 = vmatpush3.xpose.msk.msra.mxu1 %vm143_vm0, %v2586_v62  ;;  %2880 = vmatprep.mubr.msk.f32.mxu1 %vm3210_vm1, %v3209_v1 }
 0x22e   :  { %2903 = vmatprep.subr.mxu1 %v3209_v1 }
 0x230   :  { %2881 = vmatmul.mubr.msk.f32.gmra.mxu1 %vm143_vm0, %v2563_v63 }
 0x231   :  { %2904 = vmatpush3.xpose.msk.msra.mxu1 %vm143_vm0, %v2585_v0  ;;  %2883 = vmatprep.mubr.msk.f32.mxu1 %vm3210_vm1, %v3209_v1 }
 0x232   :  { %2905 = vmatprep.subr.mxu1 %v3209_v1 }
 0x234   :  { %2884 = vmatmul.mubr.msk.f32.gmra.mxu1 %vm143_vm0, %v2564_v2 }
 0x235   :  { %2906 = vmatpush3.xpose.msk.msra.mxu1 %vm143_vm0, %v2584_v3  ;;  %2907 = vmatprep.mubr.msk.f32.mxu1 %vm3210_vm1, %v3209_v1 }
 0x236   :  { %2931 = vmatprep.subr.mxu1 %v3209_v1 }
 0x238   :  { %2908 = vmatmul.mubr.msk.f32.vlgmr.msra.gmra.mxu1 %vm143_vm0, %v2581_v4 }
 0x239   :  { %2932 = vmatpush3.xpose.msk.msra.mxu1 %vm143_vm0, %v2605_v5  ;;  %2910 = vmatprep.mubr.msk.f32.mxu1 %vm3210_vm1, %v3209_v1 }
 0x23a   :  { %2933 = vmatprep.subr.mxu1 %v3209_v1 }
 0x23c   :  { %2911 = vmatmul.mubr.msk.f32.gmra.mxu1 %vm143_vm0, %v2582_v6 }
 0x23d   :  { %2934 = vmatpush3.xpose.msk.msra.mxu1 %vm143_vm0, %v2604_v7  ;;  %2913 = vmatprep.mubr.msk.f32.mxu1 %vm3210_vm1, %v3209_v1 }
 0x23e   :  { %2935 = vmatprep.subr.mxu1 %v3209_v1 }
 0x240   :  { %2914 = vmatmul.mubr.msk.f32.gmra.mxu1 %vm143_vm0, %v2583_v8 }
 0x241   :  { %2936 = vmatpush3.xpose.msk.msra.mxu1 %vm143_vm0, %v2603_v9  ;;  %2937 = vmatprep.mubr.msk.f32.mxu1 %vm3210_vm1, %v3209_v1 }
 0x242   :  { %2961 = vmatprep.subr.mxu1 %v3209_v1 }
 0x244   :  { %2938 = vmatmul.mubr.msk.f32.vlgmr.msra.gmra.mxu1 %vm143_vm0, %v2600_v10 }
 0x245   :  { %2962 = vmatpush3.xpose.msk.msra.mxu1 %vm143_vm0, %v2624_v11  ;;  %2940 = vmatprep.mubr.msk.f32.mxu1 %vm3210_vm1, %v3209_v1 }
 0x246   :  { %2963 = vmatprep.subr.mxu1 %v3209_v1 }
 0x248   :  { %2941 = vmatmul.mubr.msk.f32.gmra.mxu1 %vm143_vm0, %v2601_v12 }
 0x249   :  { %2964 = vmatpush3.xpose.msk.msra.mxu1 %vm143_vm0, %v2623_v13  ;;  %2943 = vmatprep.mubr.msk.f32.mxu1 %vm3210_vm1, %v3209_v1 }
 0x24a   :  { %2965 = vmatprep.subr.mxu1 %v3209_v1 }
 0x24c   :  { %2944 = vmatmul.mubr.msk.f32.gmra.mxu1 %vm143_vm0, %v2602_v14 }
 0x24d   :  { %2966 = vmatpush3.xpose.msk.msra.mxu1 %vm143_vm0, %v2622_v15  ;;  %2967 = vmatprep.mubr.msk.f32.mxu1 %vm3210_vm1, %v3209_v1 }
 0x24e   :  { %2991 = vmatprep.subr.mxu1 %v3209_v1 }
 0x250   :  { %2968 = vmatmul.mubr.msk.f32.vlgmr.msra.gmra.mxu1 %vm143_vm0, %v2619_v16 }
 0x251   :  { %2992 = vmatpush3.xpose.msk.msra.mxu1 %vm143_vm0, %v2643_v17  ;;  %2970 = vmatprep.mubr.msk.f32.mxu1 %vm3210_vm1, %v3209_v1 }
 0x252   :  { %2993 = vmatprep.subr.mxu1 %v3209_v1 }
 0x254   :  { %2971 = vmatmul.mubr.msk.f32.gmra.mxu1 %vm143_vm0, %v2620_v18 }
 0x255   :  { %2994 = vmatpush3.xpose.msk.msra.mxu1 %vm143_vm0, %v2642_v19  ;;  %2973 = vmatprep.mubr.msk.f32.mxu1 %vm3210_vm1, %v3209_v1 }
 0x256   :  { %2995 = vmatprep.subr.mxu1 %v3209_v1 }
 0x258   :  { %2974 = vmatmul.mubr.msk.f32.gmra.mxu1 %vm143_vm0, %v2621_v20 }
 0x259   :  { %2996 = vmatpush3.xpose.msk.msra.mxu1 %vm143_vm0, %v2641_v21  ;;  %2997 = vmatprep.mubr.msk.f32.mxu1 %vm3210_vm1, %v3209_v1 }
 0x25a   :  { %3021 = vmatprep.subr.mxu1 %v3209_v1 }
 0x25c   :  { %2998 = vmatmul.mubr.msk.f32.vlgmr.msra.gmra.mxu1 %vm143_vm0, %v2638_v22 }
 0x25d   :  { %3000 = vmatprep.mubr.msk.f32.mxu1 %vm3210_vm1, %v3209_v1 }
 0x260   :  { %3001 = vmatmul.mubr.msk.f32.gmra.mxu1 %vm143_vm0, %v2639_v23 }
 0x261   :  { %3003 = vmatprep.mubr.msk.f32.mxu1 %vm3210_vm1, %v3209_v1 }
 0x264   :  { %3004 = vmatmul.mubr.msk.f32.gmra.mxu1 %vm143_vm0, %v2640_v24 }
 0x265   :  { %3029 = vmatprep.mubr.msk.f32.mxu1 %vm3210_vm1, %v3209_v1 }
 0x2c8   :  { %v359_v25 = vpop.f32.mrf.mxu1 }
 0x2c9   :  { %373 = vst.msk [vmem:[#allocation2] sm:$0xff] %vm143_vm0, %v359_v25 }
 0x2ca   :  { %v2804_v26 = vpop.f32.mrf.mxu1 }
 0x2cc   :  { %v364_v27 = vpop.f32.mrf.mxu1 }
 0x2cd   :  { %374 = vst.msk [vmem:[#allocation2 + $0x8] sm:$0xff] %vm143_vm0, %v364_v27  ;;  %vm1140_vm0 = vcmask 122976  }
 0x2ce   :  { %v2807_v28 = vpop.f32.mrf.mxu1 }
 0x2d0   :  { %v369_v29 = vpop.f32.mrf.mxu1 }
 0x2d1   :  { %376 = vst.msk [vmem:[#allocation2 + $0x10] sm:$0x1] %vm375_vm5, %v369_v29  ;;  %vm2160_vm5 = vcmask 254176  }
 0x2d2   :  { %v2810_v30 = vpop.f32.mrf.mxu1 }
 0x2d4   :  { %v473_v31 = vpop.f32.mrf.mxu1 }
 0x2d5   :  { %v3580_v32 = vmul.f32 0.25, %v473_v31 }
 0x2d6   :  { %v2819_v33 = vpop.f32.mrf.mxu1 }
 0x2d7   :  { %v490_v34 = vsel %vm245_vm2, %v3580_v32, -inf }
 0x2d8   :  { %491 = vmax.xlane.f32.xlu0 %v490_v34  ;;  %v478_v35 = vpop.f32.mrf.mxu1 }
 0x2d9   :  { %v3584_v36 = vmul.f32 0.25, %v478_v35 }
 0x2da   :  { %v2822_v37 = vpop.f32.mrf.mxu1 }
 0x2db   :  { %v493_v38 = vsel %vm245_vm2, %v3584_v36, -inf }
 0x2dc   :  { %494 = vmax.xlane.f32.xlu1 %v493_v38  ;;  %v483_v39 = vpop.f32.mrf.mxu1 }
 0x2dd   :  { %v3588_v40 = vmul.f32 0.25, %v483_v39 }
 0x2de   :  { %v2825_v41 = vpop.f32.mrf.mxu1 }
 0x2df   :  { %v496_v42 = vsel %vm252_vm3, %v3588_v40, -inf }
 0x2e0   :  { %497 = vmax.xlane.f32.xlu0 %v496_v42  ;;  %v728_v43 = vpop.f32.mrf.mxu1 }
 0x2e1   :  { %v3592_v44 = vmul.f32 0.25, %v728_v43 }
 0x2e2   :  { %v2849_v45 = vpop.f32.mrf.mxu1 }
 0x2e3   :  { %v745_v46 = vsel %vm245_vm2, %v3592_v44, -inf }
 0x2e4   :  { %746 = vmax.xlane.f32.xlu1 %v745_v46  ;;  %v733_v47 = vpop.f32.mrf.mxu1 }
 0x2e5   :  { %v3596_v48 = vmul.f32 0.25, %v733_v47 }
 0x2e6   :  { %v2852_v49 = vpop.f32.mrf.mxu1 }
 0x2e7   :  { %v748_v50 = vsel %vm245_vm2, %v3596_v48, -inf }
 0x2e8   :  { %749 = vmax.xlane.f32.xlu0 %v748_v50  ;;  %v738_v51 = vpop.f32.mrf.mxu1 }
 0x2e9   :  { %v3600_v52 = vmul.f32 0.25, %v738_v51 }
 0x2ea   :  { %v2855_v53 = vpop.f32.mrf.mxu1 }
 0x2eb   :  { %v751_v54 = vsel %vm252_vm3, %v3600_v52, -inf }
 0x2ec   :  { %752 = vmax.xlane.f32.xlu1 %v751_v54  ;;  %v983_v55 = vpop.f32.mrf.mxu1 }
 0x2ed   :  { %v3604_v56 = vmul.f32 0.25, %v983_v55 }
 0x2ee   :  { %v2879_v57 = vpop.f32.mrf.mxu1 }
 0x2ef   :  { %v1000_v58 = vsel %vm245_vm2, %v3604_v56, -inf }
 0x2f0   :  { %1001 = vmax.xlane.f32.xlu0 %v1000_v58  ;;  %v988_v59 = vpop.f32.mrf.mxu1 }
 0x2f1   :  { %v3608_v60 = vmul.f32 0.25, %v988_v59 }
 0x2f2   :  { %v2882_v61 = vpop.f32.mrf.mxu1 }
 0x2f3   :  { %v1003_v62 = vsel %vm245_vm2, %v3608_v60, -inf }
 0x2f4   :  { %1004 = vmax.xlane.f32.xlu1 %v1003_v62  ;;  %v993_v63 = vpop.f32.mrf.mxu1 }
 0x2f5   :  { %v3612_v0 = vmul.f32 0.25, %v993_v63 }
 0x2f6   :  { %v2885_v2 = vpop.f32.mrf.mxu1 }
 0x2f7   :  { %v1006_v3 = vsel %vm252_vm3, %v3612_v0, -inf }
 0x2f8   :  { %1007 = vmax.xlane.f32.xlu0 %v1006_v3  ;;  %v1238_v4 = vpop.f32.mrf.mxu1 }
 0x2f9   :  { %v3616_v5 = vmul.f32 0.25, %v1238_v4 }
 0x2fa   :  { %v2909_v6 = vpop.f32.mrf.mxu1 }
 0x2fb   :  { %v1255_v7 = vsel %vm245_vm2, %v3616_v5, -inf }
 0x2fc   :  { %1256 = vmax.xlane.f32.xlu1 %v1255_v7  ;;  %v1243_v8 = vpop.f32.mrf.mxu1 }
 0x2fd   :  { %v3620_v9 = vmul.f32 0.25, %v1243_v8 }
 0x2fe   :  { %v2912_v10 = vpop.f32.mrf.mxu1 }
 0x2ff   :  { %v1258_v11 = vsel %vm245_vm2, %v3620_v9, -inf }
 0x300   :  { %1259 = vmax.xlane.f32.xlu0 %v1258_v11  ;;  %v1248_v12 = vpop.f32.mrf.mxu1 }
 0x301   :  { %v3624_v13 = vmul.f32 0.25, %v1248_v12 }
 0x302   :  { %v2915_v14 = vpop.f32.mrf.mxu1 }
 0x303   :  { %v1261_v15 = vsel %vm252_vm3, %v3624_v13, -inf }
 0x304   :  { %1262 = vmax.xlane.f32.xlu1 %v1261_v15  ;;  %v1493_v16 = vpop.f32.mrf.mxu1 }
 0x305   :  { %v3628_v17 = vmul.f32 0.25, %v1493_v16 }
 0x306   :  { %v2939_v18 = vpop.f32.mrf.mxu1 }
 0x307   :  { %v1510_v19 = vsel %vm245_vm2, %v3628_v17, -inf }
 0x308   :  { %1511 = vmax.xlane.f32.xlu0 %v1510_v19  ;;  %v1498_v20 = vpop.f32.mrf.mxu1 }
 0x309   :  { %v3632_v21 = vmul.f32 0.25, %v1498_v20 }
 0x30a   :  { %v2942_v22 = vpop.f32.mrf.mxu1 }
 0x30b   :  { %v1513_v23 = vsel %vm245_vm2, %v3632_v21, -inf }
 0x30c   :  { %1514 = vmax.xlane.f32.xlu1 %v1513_v23  ;;  %v1503_v24 = vpop.f32.mrf.mxu1 }
 0x30d   :  { %v3636_v25 = vmul.f32 0.25, %v1503_v24 }
 0x30e   :  { %v2945_v26 = vpop.f32.mrf.mxu1 }
 0x30f   :  { %v1516_v27 = vsel %vm252_vm3, %v3636_v25, -inf }
 0x310   :  { %1517 = vmax.xlane.f32.xlu0 %v1516_v27  ;;  %v1748_v28 = vpop.f32.mrf.mxu1 }
 0x311   :  { %v3640_v29 = vmul.f32 0.25, %v1748_v28 }
 0x312   :  { %v2969_v30 = vpop.f32.mrf.mxu1 }
 0x313   :  { %v1765_v31 = vsel %vm245_vm2, %v3640_v29, -inf }
 0x314   :  { %1766 = vmax.xlane.f32.xlu1 %v1765_v31  ;;  %v1753_v33 = vpop.f32.mrf.mxu1 }
 0x315   :  { %v3644_v34 = vmul.f32 0.25, %v1753_v33 }
 0x316   :  { %v2972_v35 = vpop.f32.mrf.mxu1 }
 0x317   :  { %v1768_v37 = vsel %vm245_vm2, %v3644_v34, -inf }
 0x318   :  { %1769 = vmax.xlane.f32.xlu0 %v1768_v37  ;;  %v1758_v38 = vpop.f32.mrf.mxu1 }
 0x319   :  { %v3648_v39 = vmul.f32 0.25, %v1758_v38 }
 0x31a   :  { %v2975_v41 = vpop.f32.mrf.mxu1 }
 0x31b   :  { %v1771_v42 = vsel %vm252_vm3, %v3648_v39, -inf }
 0x31c   :  { %1772 = vmax.xlane.f32.xlu1 %v1771_v42  ;;  %v2003_v43 = vpop.f32.mrf.mxu1 }
 0x31d   :  { %v3652_v45 = vmul.f32 0.25, %v2003_v43 }
 0x31e   :  { %v2999_v46 = vpop.f32.mrf.mxu1 }
 0x31f   :  { %v2020_v47 = vsel %vm245_vm2, %v3652_v45, -inf }
 0x320   :  { %2021 = vmax.xlane.f32.xlu0 %v2020_v47  ;;  %v3656_v49 = vpop.f32.mrf.mxu1 }
 0x322   :  { %v3002_v50 = vpop.f32.mrf.mxu1 }
 0x324   :  { %v3658_v51 = vpop.f32.mrf.mxu1 }
 0x326   :  { %v3005_v53 = vpop.f32.mrf.mxu1 }
 0x361   :  { %v492_v54 = vpop.xlane.xlu0 %491 }
 0x362   :  { %v499_v55 = vsub.f32 %v3580_v32, %v492_v54 }
 0x364   :  { %v502_v57 = vmul.f32 1.442695, %v499_v55 }
 0x365   :  { %v495_v58 = vpop.xlane.xlu1 %494 }
 0x366   :  { %3091 = vpow2.f32 %v502_v57  ;;  %v500_v59 = vsub.f32 %v3584_v36, %v495_v58 }
 0x368   :  { %v504_v61 = vmul.f32 1.442695, %v500_v59 }
 0x369   :  { %v498_v62 = vpop.xlane.xlu0 %497 }
 0x36a   :  { %3093 = vpow2.f32 %v504_v61  ;;  %v501_v63 = vsub.f32 %v3588_v40, %v498_v62 }
 0x36c   :  { %v506_v2 = vmul.f32 1.442695, %v501_v63 }
 0x36d   :  { %v747_v3 = vpop.xlane.xlu1 %746 }
 0x36e   :  { %3095 = vpow2.f32 %v506_v2  ;;  %v754_v4 = vsub.f32 %v3592_v44, %v747_v3 }
 0x370   :  { %v757_v6 = vmul.f32 1.442695, %v754_v4 }
 0x371   :  { %v750_v7 = vpop.xlane.xlu0 %749 }
 0x372   :  { %3097 = vpow2.f32 %v757_v6  ;;  %v755_v32 = vsub.f32 %v3596_v48, %v750_v7 }
 0x373   :  { %v3665_v8 = vpop.eup %3091 }
 0x374   :  { %v759_v10 = vmul.f32 1.442695, %v755_v32  ;;  %v508_v36 = vsel %vm245_vm2, %v3665_v8, 0.0 }
 0x375   :  { %v753_v11 = vpop.xlane.xlu1 %752  ;;  %509 = vadd.xlane.f32.xlu1 %v508_v36 }
 0x376   :  { %3099 = vpow2.f32 %v759_v10  ;;  %v756_v40 = vsub.f32 %v3600_v52, %v753_v11 }
 0x377   :  { %v3670_v12 = vpop.eup %3093 }
 0x378   :  { %v761_v14 = vmul.f32 1.442695, %v756_v40  ;;  %v511_v44 = vsel %vm245_vm2, %v3670_v12, 0.0 }
 0x379   :  { %v1002_v15 = vpop.xlane.xlu0 %1001  ;;  %512 = vadd.xlane.f32.xlu0 %v511_v44 }
 0x37a   :  { %3101 = vpow2.f32 %v761_v14  ;;  %v1009_v48 = vsub.f32 %v3604_v56, %v1002_v15 }
 0x37b   :  { %v3675_v16 = vpop.eup %3095 }
 0x37c   :  { %v1012_v18 = vmul.f32 1.442695, %v1009_v48  ;;  %v514_v19 = vsel %vm252_vm3, %v3675_v16, 0.0 }
 0x37d   :  { %v1005_v20 = vpop.xlane.xlu1 %1004  ;;  %515 = vadd.xlane.f32.xlu1 %v514_v19 }
 0x37e   :  { %3103 = vpow2.f32 %v1012_v18  ;;  %v1010_v52 = vsub.f32 %v3608_v60, %v1005_v20 }
 0x37f   :  { %v3680_v22 = vpop.eup %3097 }
 0x380   :  { %v1014_v23 = vmul.f32 1.442695, %v1010_v52  ;;  %v763_v24 = vsel %vm245_vm2, %v3680_v22, 0.0 }
 0x381   :  { %v1008_v26 = vpop.xlane.xlu0 %1007  ;;  %764 = vadd.xlane.f32.xlu0 %v763_v24 }
 0x382   :  { %3105 = vpow2.f32 %v1014_v23  ;;  %v1011_v56 = vsub.f32 %v3612_v0, %v1008_v26  ;;  %v2532_v0 = vld [vmem:[%s4151_s3 + $0x28] sm:$0x1] }
 0x383   :  { %v3685_v27 = vpop.eup %3099  ;;  %2827 = vmatpush3.msk.msra.mxu0 %vm289_vm4, %v2532_v0  ;;  %v3770_v0 = vmul.f32 0.25, %v3658_v51 }
 0x384   :  { %v1016_v28 = vmul.f32 1.442695, %v1011_v56  ;;  %v766_v30 = vsel %vm245_vm2, %v3685_v27, 0.0  ;;  %2828 = vmatprep.subr.mxu0 %v3209_v1 }
 0x385   :  { %v1257_v31 = vpop.xlane.xlu1 %1256  ;;  %767 = vadd.xlane.f32.xlu1 %v766_v30 }
 0x386   :  { %3107 = vpow2.f32 %v1016_v28  ;;  %v1264_v60 = vsub.f32 %v3616_v5, %v1257_v31  ;;  %v2531_v5 = vld [vmem:[%s4151_s3 + $0x20] sm:$0xff] }
 0x387   :  { %v3690_v33 = vpop.eup %3101  ;;  %2829 = vmatpush3.msra.mxu0 %v2531_v5 }
 0x388   :  { %v1267_v35 = vmul.f32 1.442695, %v1264_v60  ;;  %v769_v37 = vsel %vm252_vm3, %v3690_v33, 0.0  ;;  %2830 = vmatprep.subr.mxu0 %v3209_v1 }
 0x389   :  { %v1260_v38 = vpop.xlane.xlu0 %1259  ;;  %770 = vadd.xlane.f32.xlu0 %v769_v37 }
 0x38a   :  { %3109 = vpow2.f32 %v1267_v35  ;;  %v1265_v41 = vsub.f32 %v3620_v9, %v1260_v38  ;;  %v2530_v9 = vld [vmem:[%s4151_s3 + $0x18] sm:$0xff] }
 0x38b   :  { %v3699_v42 = vpop.eup %3103  ;;  %2831 = vmatpush3.msra.mxu0 %v2530_v9 }
 0x38c   :  { %v1269_v43 = vmul.f32 1.442695, %v1265_v41  ;;  %v1018_v46 = vsel %vm245_vm2, %v3699_v42, 0.0  ;;  %2856 = vmatprep.subr.mxu0 %v3209_v1 }
 0x38d   :  { %v1263_v47 = vpop.xlane.xlu1 %1262  ;;  %1019 = vadd.xlane.f32.xlu1 %v1018_v46 }
 0x38e   :  { %3111 = vpow2.f32 %v1269_v43  ;;  %v1266_v50 = vsub.f32 %v3624_v13, %v1263_v47 }
 0x38f   :  { %v3712_v53 = vpop.eup %3105 }
 0x390   :  { %v1271_v54 = vmul.f32 1.442695, %v1266_v50  ;;  %v1021_v55 = vsel %vm245_vm2, %v3712_v53, 0.0 }
 0x391   :  { %v1512_v57 = vpop.xlane.xlu0 %1511  ;;  %1022 = vadd.xlane.f32.xlu0 %v1021_v55 }
 0x392   :  { %3113 = vpow2.f32 %v1271_v54  ;;  %v1519_v58 = vsub.f32 %v3628_v17, %v1512_v57  ;;  %v2551_v54 = vld [vmem:[%s4151_s3 + $0x40] sm:$0x1]  ;;  %v2550_v57 = vld [vmem:[%s4151_s3 + $0x38] sm:$0xff] }
 0x393   :  { %v3718_v59 = vpop.eup %3107 }
 0x394   :  { %v1522_v61 = vmul.f32 1.442695, %v1519_v58  ;;  %v1024_v13 = vsel %vm252_vm3, %v3718_v59, 0.0 }
 0x395   :  { %v1515_v62 = vpop.xlane.xlu1 %1514  ;;  %1025 = vadd.xlane.f32.xlu1 %v1024_v13 }
 0x396   :  { %3115 = vpow2.f32 %v1522_v61  ;;  %v1520_v63 = vsub.f32 %v3632_v21, %v1515_v62  ;;  %v2549_v61 = vld [vmem:[%s4151_s3 + $0x30] sm:$0xff] }
 0x397   :  { %v3723_v2 = vpop.eup %3109 }
 0x398   :  { %v1524_v3 = vmul.f32 1.442695, %v1520_v63  ;;  %v1273_v4 = vsel %vm245_vm2, %v3723_v2, 0.0 }
 0x399   :  { %v1518_v6 = vpop.xlane.xlu0 %1517  ;;  %1274 = vadd.xlane.f32.xlu0 %v1273_v4 }
 0x39a   :  { %3117 = vpow2.f32 %v1524_v3  ;;  %v1521_v17 = vsub.f32 %v3636_v25, %v1518_v6  ;;  %v2570_v6 = vld [vmem:[%s4151_s3 + $0x58] sm:$0x1] }
 0x39b   :  { %v3728_v7 = vpop.eup %3111 }
 0x39c   :  { %v1526_v32 = vmul.f32 1.442695, %v1521_v17  ;;  %v1276_v10 = vsel %vm245_vm2, %v3728_v7, 0.0 }
 0x39d   :  { %v1767_v36 = vpop.xlane.xlu1 %1766  ;;  %1277 = vadd.xlane.f32.xlu1 %v1276_v10  ;;  %v2568_v10 = vld [vmem:[%s4151_s3 + $0x48] sm:$0xff] }
 0x39e   :  { %3119 = vpow2.f32 %v1526_v32  ;;  %v1774_v21 = vsub.f32 %v3640_v29, %v1767_v36 }
 0x39f   :  { %v3733_v11 = vpop.eup %3113 }
 0x3a0   :  { %v1777_v40 = vmul.f32 1.442695, %v1774_v21  ;;  %v1279_v14 = vsel %vm252_vm3, %v3733_v11, 0.0 }
 0x3a1   :  { %v1770_v44 = vpop.xlane.xlu0 %1769  ;;  %1280 = vadd.xlane.f32.xlu0 %v1279_v14 }
 0x3a2   :  { %3121 = vpow2.f32 %v1777_v40  ;;  %v1775_v25 = vsub.f32 %v3644_v34, %v1770_v44 }
 0x3a3   :  { %v3738_v15 = vpop.eup %3115 }
 0x3a4   :  { %v1779_v48 = vmul.f32 1.442695, %v1775_v25  ;;  %v1528_v18 = vsel %vm245_vm2, %v3738_v15, 0.0  ;;  %v2589_v25 = vld [vmem:[%s4151_s3 + $0x70] sm:$0x1] }
 0x3a5   :  { %1529 = vadd.xlane.f32.xlu1 %v1528_v18  ;;  %v1773_v19 = vpop.xlane.xlu1 %1772 }
 0x3a6   :  { %3123 = vpow2.f32 %v1779_v48  ;;  %v1776_v29 = vsub.f32 %v3648_v39, %v1773_v19  ;;  %v2587_v19 = vld [vmem:[%s4151_s3 + $0x60] sm:$0xff] }
 0x3a7   :  { %v3743_v20 = vpop.eup %3117 }
 0x3a8   :  { %v1781_v52 = vmul.f32 1.442695, %v1776_v29  ;;  %v1531_v23 = vsel %vm245_vm2, %v3743_v20, 0.0 }
 0x3a9   :  { %1532 = vadd.xlane.f32.xlu0 %v1531_v23  ;;  %v2022_v24 = vpop.xlane.xlu0 %2021 }
 0x3aa   :  { %3125 = vpow2.f32 %v1781_v52  ;;  %v2029_v34 = vsub.f32 %v3652_v45, %v2022_v24  ;;  %v3761_v45 = vmul.f32 0.25, %v3656_v49  ;;  %v2026_v49 = vsel %vm252_vm3, %v3770_v0, -inf }
 0x3ab   :  { %v3748_v26 = vpop.eup %3119 }
 0x3ac   :  { %v2032_v56 = vmul.f32 1.442695, %v2029_v34  ;;  %v1534_v28 = vsel %vm252_vm3, %v3748_v26, 0.0  ;;  %v2023_v38 = vsel %vm245_vm2, %v3761_v45, -inf }
 0x3ad   :  { %1535 = vadd.xlane.f32.xlu1 %v1534_v28 }
 0x3ae   :  { %3127 = vpow2.f32 %v2032_v56  ;;  %v2608_v56 = vld [vmem:[%s4151_s3 + $0x88] sm:$0x1] }
 0x3af   :  { %v3752_v39 = vpop.eup %3121 }
 0x3b0   :  { %v1783_v30 = vsel %vm245_vm2, %v3752_v39, 0.0 }
 0x3b1   :  { %1784 = vadd.xlane.f32.xlu0 %v1783_v30 }
 0x3b3   :  { %v3756_v31 = vpop.eup %3123 }
 0x3b4   :  { %v1786_v60 = vsel %vm245_vm2, %v3756_v31, 0.0 }
 0x3b5   :  { %1787 = vadd.xlane.f32.xlu1 %v1786_v60  ;;  %v2606_v60 = vld [vmem:[%s4151_s3 + $0x78] sm:$0xff] }
 0x3b7   :  { %v3763_v35 = vpop.eup %3125 }
 0x3b8   :  { %v1789_v37 = vsel %vm252_vm3, %v3763_v35, 0.0 }
 0x3b9   :  { %1790 = vadd.xlane.f32.xlu0 %v1789_v37 }
 0x3bb   :  { %v3772_v41 = vpop.eup %3127 }
 0x3bc   :  { %v2038_v5 = vsel %vm245_vm2, %v3772_v41, 0.0 }
 0x3bd   :  { %2039 = vadd.xlane.f32.xlu1 %v2038_v5  ;;  %2024 = vmax.xlane.f32.xlu0 %v2023_v38 }
 0x3c1   :  { %2027 = vmax.xlane.f32.xlu1 %v2026_v49 }
 0x3fe   :  { %v510_v43 = vpop.xlane.xlu1 %509 }
 0x3ff   :  { %3129 = vrcp.f32 %v510_v43 }
 0x402   :  { %v513_v46 = vpop.xlane.xlu0 %512 }
 0x403   :  { %3131 = vrcp.f32 %v513_v46  ;;  %v2627_v46 = vld [vmem:[%s4151_s3 + $0xa0] sm:$0x1] }
 0x406   :  { %v516_v47 = vpop.xlane.xlu1 %515 }
 0x407   :  { %3133 = vrcp.f32 %v516_v47 }
 0x40a   :  { %v765_v9 = vpop.xlane.xlu0 %764 }
 0x40b   :  { %3135 = vrcp.f32 %v765_v9 }
 0x40c   :  { %v3130_v51 = vpop.eup %3129 }
 0x40d   :  { %v520_v50 = vmul.f32 %v3130_v51, %v3665_v8  ;;  %v2625_v51 = vld [vmem:[%s4151_s3 + $0x90] sm:$0xff] }
 0x40e   :  { %v768_v55 = vpop.xlane.xlu1 %767 }
 0x40f   :  { %3137 = vrcp.f32 %v768_v55  ;;  %2833 = vmatmul.mubr.msk.f32.vlgmr.msra.gmra.mxu0 %vm245_vm2, %v520_v50 }
 0x410   :  { %v3132_v58 = vpop.eup %3131  ;;  %2857 = vmatpush3.msk.msra.mxu0 %vm289_vm4, %v2551_v54  ;;  %2835 = vmatprep.mubr.msk.f32.mxu0 %vm3210_vm1, %v3209_v1 }
 0x411   :  { %2858 = vmatprep.subr.mxu0 %v3209_v1  ;;  %v521_v8 = vmul.f32 %v3132_v58, %v3670_v12 }
 0x412   :  { %v771_v13 = vpop.xlane.xlu0 %770  ;;  %2859 = vmatpush3.msra.mxu0 %v2550_v57 }
 0x413   :  { %3139 = vrcp.f32 %v771_v13  ;;  %2836 = vmatmul.mubr.msk.f32.gmra.mxu0 %vm245_vm2, %v521_v8  ;;  %2860 = vmatprep.subr.mxu0 %v3209_v1 }
 0x414   :  { %v3134_v62 = vpop.eup %3133  ;;  %2838 = vmatprep.mubr.msk.f32.mxu0 %vm3210_vm1, %v3209_v1  ;;  %2861 = vmatpush3.msra.mxu0 %v2549_v61 }
 0x415   :  { %v522_v63 = vmul.f32 %v3134_v62, %v3675_v16  ;;  %2886 = vmatprep.subr.mxu0 %v3209_v1  ;;  %v2569_v16 = vld [vmem:[%s4151_s3 + $0x50] sm:$0xff] }
 0x416   :  { %v1020_v12 = vpop.xlane.xlu1 %1019 }
 0x417   :  { %3141 = vrcp.f32 %v1020_v12  ;;  %2839 = vmatmul.mubr.msk.f32.gmra.mxu0 %vm245_vm2, %v522_v63 }
 0x418   :  { %v3136_v3 = vpop.eup %3135  ;;  %2862 = vmatprep.mubr.msk.f32.mxu0 %vm3210_vm1, %v3209_v1 }
 0x419   :  { %v775_v4 = vmul.f32 %v3136_v3, %v3680_v22 }
 0x41a   :  { %v1023_v17 = vpop.xlane.xlu0 %1022 }
 0x41b   :  { %3143 = vrcp.f32 %v1023_v17  ;;  %2863 = vmatmul.mubr.msk.f32.vlgmr.msra.gmra.mxu0 %vm245_vm2, %v775_v4 }
 0x41c   :  { %v3138_v32 = vpop.eup %3137  ;;  %2887 = vmatpush3.msk.msra.mxu0 %vm289_vm4, %v2570_v6  ;;  %2865 = vmatprep.mubr.msk.f32.mxu0 %vm3210_vm1, %v3209_v1 }
 0x41d   :  { %2888 = vmatprep.subr.mxu0 %v3209_v1  ;;  %v776_v22 = vmul.f32 %v3138_v32, %v3685_v27 }
 0x41e   :  { %v1026_v36 = vpop.xlane.xlu1 %1025  ;;  %2889 = vmatpush3.msra.mxu0 %v2569_v16 }
 0x41f   :  { %3145 = vrcp.f32 %v1026_v36  ;;  %2866 = vmatmul.mubr.msk.f32.gmra.mxu0 %vm245_vm2, %v776_v22  ;;  %2890 = vmatprep.subr.mxu0 %v3209_v1 }
 0x420   :  { %v3140_v21 = vpop.eup %3139  ;;  %2868 = vmatprep.mubr.msk.f32.mxu0 %vm3210_vm1, %v3209_v1  ;;  %2891 = vmatpush3.msra.mxu0 %v2568_v10 }
 0x421   :  { %v777_v40 = vmul.f32 %v3140_v21, %v3690_v33  ;;  %2916 = vmatprep.subr.mxu0 %v3209_v1  ;;  %v2588_v33 = vld [vmem:[%s4151_s3 + $0x68] sm:$0xff]  ;;  %v3212_v21 = vmov 0  }
 0x422   :  { %v1275_v27 = vpop.xlane.xlu0 %1274  ;;  %3077 = vset.pattern.permute.xlu1 %v3212_v21  ;;  %3078 = vset.pattern.permute.xlu0 %v3212_v21 }
 0x423   :  { %3147 = vrcp.f32 %v1275_v27  ;;  %2869 = vmatmul.mubr.msk.f32.gmra.mxu0 %vm245_vm2, %v777_v40 }
 0x424   :  { %v3142_v14 = vpop.eup %3141  ;;  %2892 = vmatprep.mubr.msk.f32.mxu0 %vm3210_vm1, %v3209_v1 }
 0x425   :  { %v1030_v44 = vmul.f32 %v3142_v14, %v3699_v42 }
 0x426   :  { %v1278_v48 = vpop.xlane.xlu1 %1277 }
 0x427   :  { %3149 = vrcp.f32 %v1278_v48  ;;  %2893 = vmatmul.mubr.msk.f32.vlgmr.msra.gmra.mxu0 %vm245_vm2, %v1030_v44 }
 0x428   :  { %v3144_v18 = vpop.eup %3143  ;;  %2917 = vmatpush3.msk.msra.mxu0 %vm289_vm4, %v2589_v25  ;;  %2895 = vmatprep.mubr.msk.f32.mxu0 %vm3210_vm1, %v3209_v1 }
 0x429   :  { %2918 = vmatprep.subr.mxu0 %v3209_v1  ;;  %v1031_v42 = vmul.f32 %v3144_v18, %v3712_v53 }
 0x42a   :  { %v1281_v29 = vpop.xlane.xlu0 %1280  ;;  %2919 = vmatpush3.msra.mxu0 %v2588_v33 }
 0x42b   :  { %3151 = vrcp.f32 %v1281_v29  ;;  %2896 = vmatmul.mubr.msk.f32.gmra.mxu0 %vm245_vm2, %v1031_v42  ;;  %2920 = vmatprep.subr.mxu0 %v3209_v1 }
 0x42c   :  { %v3146_v52 = vpop.eup %3145  ;;  %2898 = vmatprep.mubr.msk.f32.mxu0 %vm3210_vm1, %v3209_v1  ;;  %2921 = vmatpush3.msra.mxu0 %v2587_v19 }
 0x42d   :  { %v1032_v23 = vmul.f32 %v3146_v52, %v3718_v59  ;;  %2946 = vmatprep.subr.mxu0 %v3209_v1  ;;  %v2607_v59 = vld [vmem:[%s4151_s3 + $0x80] sm:$0xff] }
 0x42e   :  { %v1530_v53 = vpop.xlane.xlu1 %1529 }
 0x42f   :  { %3153 = vrcp.f32 %v1530_v53  ;;  %2899 = vmatmul.mubr.msk.f32.gmra.mxu0 %vm245_vm2, %v1032_v23 }
 0x430   :  { %v3148_v24 = vpop.eup %3147  ;;  %2922 = vmatprep.mubr.msk.f32.mxu0 %vm3210_vm1, %v3209_v1 }
 0x431   :  { %v1285_v34 = vmul.f32 %v3148_v24, %v3723_v2 }
 0x432   :  { %v1533_v28 = vpop.xlane.xlu0 %1532 }
 0x433   :  { %3155 = vrcp.f32 %v1533_v28  ;;  %2923 = vmatmul.mubr.msk.f32.vlgmr.msra.gmra.mxu0 %vm245_vm2, %v1285_v34 }
 0x434   :  { %v3150_v30 = vpop.eup %3149  ;;  %2947 = vmatpush3.msk.msra.mxu0 %vm289_vm4, %v2608_v56  ;;  %2925 = vmatprep.mubr.msk.f32.mxu0 %vm3210_vm1, %v3209_v1 }
 0x435   :  { %2948 = vmatprep.subr.mxu0 %v3209_v1  ;;  %v1286_v2 = vmul.f32 %v3150_v30, %v3728_v7 }
 0x436   :  { %v1536_v37 = vpop.xlane.xlu1 %1535  ;;  %2949 = vmatpush3.msra.mxu0 %v2607_v59 }
 0x437   :  { %3157 = vrcp.f32 %v1536_v37  ;;  %2926 = vmatmul.mubr.msk.f32.gmra.mxu0 %vm245_vm2, %v1286_v2  ;;  %2950 = vmatprep.subr.mxu0 %v3209_v1 }
 0x438   :  { %v3152_v38 = vpop.eup %3151  ;;  %2928 = vmatprep.mubr.msk.f32.mxu0 %vm3210_vm1, %v3209_v1  ;;  %2951 = vmatpush3.msra.mxu0 %v2606_v60 }
 0x439   :  { %v1287_v5 = vmul.f32 %v3152_v38, %v3733_v11  ;;  %2976 = vmatprep.subr.mxu0 %v3209_v1  ;;  %v2626_v11 = vld [vmem:[%s4151_s3 + $0x98] sm:$0xff] }
 0x43a   :  { %v1785_v7 = vpop.xlane.xlu0 %1784 }
 0x43b   :  { %3159 = vrcp.f32 %v1785_v7  ;;  %2929 = vmatmul.mubr.msk.f32.gmra.mxu0 %vm245_vm2, %v1287_v5 }
 0x43c   :  { %v3154_v49 = vpop.eup %3153  ;;  %2952 = vmatprep.mubr.msk.f32.mxu0 %vm3210_vm1, %v3209_v1 }
 0x43d   :  { %v1540_v43 = vmul.f32 %v3154_v49, %v3738_v15 }
 0x43e   :  { %v1788_v47 = vpop.xlane.xlu1 %1787 }
 0x43f   :  { %3161 = vrcp.f32 %v1788_v47  ;;  %2953 = vmatmul.mubr.msk.f32.vlgmr.msra.gmra.mxu0 %vm245_vm2, %v1540_v43  ;;  %v2167_v47 = vld [vmem:[%s4152_s4 + $0x10] sm:$0xff] }
 0x440   :  { %v3156_v9 = vpop.eup %3155  ;;  %2977 = vmatpush3.msk.msra.mxu0 %vm289_vm4, %v2627_v46  ;;  %2955 = vmatprep.mubr.msk.f32.mxu0 %vm3210_vm1, %v3209_v1  ;;  %v2168_v46 = vld [vmem:[%s4152_s4 + $0x18] sm:$0xff] }
 0x441   :  { %2978 = vmatprep.subr.mxu0 %v3209_v1  ;;  %v1541_v15 = vmul.f32 %v3156_v9, %v3743_v20  ;;  %3022 = vmatpush3.msra.mxu1 %v2168_v46 }
 0x442   :  { %v1791_v50 = vpop.xlane.xlu0 %1790  ;;  %2979 = vmatpush3.msra.mxu0 %v2626_v11  ;;  %3023 = vmatprep.subr.mxu1 %v3209_v1 }
 0x443   :  { %3163 = vrcp.f32 %v1791_v50  ;;  %2956 = vmatmul.mubr.msk.f32.gmra.mxu0 %vm245_vm2, %v1541_v15  ;;  %2980 = vmatprep.subr.mxu0 %v3209_v1 }
 0x444   :  { %v3158_v54 = vpop.eup %3157  ;;  %2958 = vmatprep.mubr.msk.f32.mxu0 %vm3210_vm1, %v3209_v1  ;;  %2981 = vmatpush3.msra.mxu0 %v2625_v51 }
 0x445   :  { %v1542_v55 = vmul.f32 %v3158_v54, %v3748_v26  ;;  %3006 = vmatprep.subr.mxu0 %v3209_v1  ;;  %v2646_v26 = vld [vmem:[%s4151_s3 + $0xb8] sm:$0x1]  ;;  %3024 = vmatpush3.msra.mxu1 %v2167_v47  ;;  %v4044_v47 = vld [vmem:[%s4153_s5] ss:$0 sm:$0xff] }
 0x446   :  { %v2040_v20 = vpop.xlane.xlu1 %2039  ;;  %v2025_v57 = vpop.xlane.xlu0 %2024  ;;  %3025 = vmatprep.subr.mxu1 %v3209_v1 }
 0x447   :  { %3165 = vrcp.f32 %v2040_v20  ;;  %v2030_v58 = vsub.f32 %v3761_v45, %v2025_v57  ;;  %2959 = vmatmul.mubr.msk.f32.gmra.mxu0 %vm245_vm2, %v1542_v55  ;;  %v2645_v45 = vld [vmem:[%s4151_s3 + $0xb0] sm:$0xff]  ;;  %v2166_v55 = vld [vmem:[%s4152_s4 + $0x8] sm:$0xff]  ;;  %v2165_v20 = vld [vmem:[%s4152_s4] sm:$0xff] }
 0x448   :  { %v3160_v8 = vpop.eup %3159  ;;  %2982 = vmatprep.mubr.msk.f32.mxu0 %vm3210_vm1, %v3209_v1  ;;  %3026 = vmatpush3.msra.mxu1 %v2166_v55 }
 0x449   :  { %v1795_v61 = vmul.f32 %v3160_v8, %v3752_v39  ;;  %v2034_v13 = vmul.f32 1.442695, %v2030_v58  ;;  %3027 = vmatprep.subr.mxu1 %v3209_v1 }
 0x44a   :  { %v2028_v62 = vpop.xlane.xlu1 %2027  ;;  %3028 = vmatpush3.msra.mxu1 %v2165_v20  ;;  %v4059_v20 = vld [vmem:[%s4148_s0 + $0x8] sm:$0xff] }
 0x44b   :  { %3167 = vpow2.f32 %v2034_v13  ;;  %v2031_v63 = vsub.f32 %v3770_v0, %v2028_v62  ;;  %2983 = vmatmul.mubr.msk.f32.vlgmr.msra.gmra.mxu0 %vm245_vm2, %v1795_v61  ;;  %v2644_v0 = vld [vmem:[%s4151_s3 + $0xa8] sm:$0xff]  ;;  %s3211_s3 = smov 4   ;;  %3055 = vmatprep.subr.mxu1 %v3209_v1 }
 0x44c   :  { %v3162_v12 = vpop.eup %3161  ;;  %3007 = vmatpush3.msk.msra.mxu0 %vm289_vm4, %v2646_v26  ;;  %2985 = vmatprep.mubr.msk.f32.mxu0 %vm3210_vm1, %v3209_v1  ;;  %vm1905_vm4 = vcmask 221376  }
 0x44d   :  { %v2036_v39 = vmul.f32 1.442695, %v2031_v63  ;;  %3008 = vmatprep.subr.mxu0 %v3209_v1  ;;  %v1796_v3 = vmul.f32 %v3162_v12, %v3756_v31  ;;  %v3980_v63 = vld [vmem:[%s4148_s0] sm:$0xff] }
 0x44e   :  { %3009 = vmatpush3.msra.mxu0 %v2645_v45  ;;  %v49_v45 = vsel %vm48_vm6, %v3980_v63, 0.0  ;;  %v62_v12 = vmul.f32 %v3980_v63, %v3980_v63 }
 0x44f   :  { %3169 = vpow2.f32 %v2036_v39  ;;  %2986 = vmatmul.mubr.msk.f32.gmra.mxu0 %vm245_vm2, %v1796_v3  ;;  %3010 = vmatprep.subr.mxu0 %v3209_v1 }
 0x450   :  { %v3164_v4 = vpop.eup %3163  ;;  %2988 = vmatprep.mubr.msk.f32.mxu0 %vm3210_vm1, %v3209_v1  ;;  %3011 = vmatpush3.msra.mxu0 %v2644_v0  ;;  %v65_v39 = vsel %vm48_vm6, %v62_v12, 0.0  ;;  %v46_v12 = vld [vmem:[%s4155_s7 + $0x8] sm:$0xff] }
 0x451   :  { %v1797_v6 = vmul.f32 %v3164_v4, %v3763_v35  ;;  %3038 = vmatprep.subr.mxu0 %v3209_v1  ;;  %v42_v4 = vld [vmem:[%s4154_s6] sm:$0xff] }
 0x453   :  { %2989 = vmatmul.mubr.msk.f32.gmra.mxu0 %vm245_vm2, %v1797_v6 }
 0x454   :  { %v3166_v31 = vpop.eup %3165  ;;  %3012 = vmatprep.mubr.msk.f32.mxu0 %vm3210_vm1, %v3209_v1 }
 0x455   :  { %v2050_v17 = vmul.f32 %v3166_v31, %v3772_v41 }
 0x457   :  { %3013 = vmatmul.mubr.msk.f32.vlgmr.msra.gmra.mxu0 %vm245_vm2, %v2050_v17 }
 0x458   :  { %v3168_v16 = vpop.eup %3167  ;;  %3015 = vmatprep.mubr.msk.f32.mxu0 %vm3210_vm1, %v3209_v1 }
 0x459   :  { %v2041_v32 = vsel %vm245_vm2, %v3168_v16, 0.0 }
 0x45a   :  { %2042 = vadd.xlane.f32.xlu0 %v2041_v32 }
 0x45c   :  { %v3170_v35 = vpop.eup %3169 }
 0x45d   :  { %v2044_v22 = vsel %vm252_vm3, %v3170_v35, 0.0  ;;  %vm1650_vm3 = vcmask 188576  }
 0x45e   :  { %2045 = vadd.xlane.f32.xlu1 %v2044_v22 }
 0x4cf   :  { %v601_v10 = vpop.f32.mrf.mxu0 }
 0x4d0   :  { %618 = vrot.lane.b32.xlu0 %v601_v10, %s3211_s3 }
 0x4d1   :  { %v2834_v36 = vpop.f32.mrf.mxu0 }
 0x4d2   :  { %v45_v36 = vld [vmem:[%s4155_s7] sm:$0xff] }
 0x4d3   :  { %v3937_v41 = vpop.f32.mrf.mxu0 }
 0x4d5   :  { %v2837_v40 = vpop.f32.mrf.mxu0 }
 0x4d7   :  { %v3939_v27 = vpop.f32.mrf.mxu0 }
 0x4d9   :  { %v2840_v14 = vpop.f32.mrf.mxu0 }
 0x4db   :  { %v856_v44 = vpop.f32.mrf.mxu0 }
 0x4dc   :  { %873 = vrot.lane.b32.xlu1 %v856_v44, %s3213_s1 }
 0x4dd   :  { %v2864_v25 = vpop.f32.mrf.mxu0 }
 0x4df   :  { %v3942_v48 = vpop.f32.mrf.mxu0 }
 0x4e1   :  { %v2867_v33 = vpop.f32.mrf.mxu0 }
 0x4e3   :  { %v2043_v18 = vpop.xlane.xlu0 %2042  ;;  %v3944_v42 = vpop.f32.mrf.mxu0 }
 0x4e4   :  { %3171 = vrcp.f32 %v2043_v18 }
 0x4e5   :  { %v2870_v19 = vpop.f32.mrf.mxu0 }
 0x4e7   :  { %v2046_v29 = vpop.xlane.xlu1 %2045  ;;  %v1111_v52 = vpop.f32.mrf.mxu0 }
 0x4e8   :  { %3173 = vrcp.f32 %v2046_v29  ;;  %1128 = vrot.lane.b32.xlu1 %v1111_v52, %s3214_s23 }
 0x4e9   :  { %v2894_v23 = vpop.f32.mrf.mxu0 }
 0x4eb   :  { %v3947_v53 = vpop.f32.mrf.mxu0 }
 0x4ed   :  { %v2897_v24 = vpop.f32.mrf.mxu0 }
 0x4ef   :  { %v3949_v34 = vpop.f32.mrf.mxu0 }
 0x4f1   :  { %v3172_v56 = vpop.eup %3171  ;;  %v2900_v28 = vpop.f32.mrf.mxu0 }
 0x4f2   :  { %v2051_v59 = vmul.f32 %v3172_v56, %v3168_v16 }
 0x4f3   :  { %v1366_v30 = vpop.f32.mrf.mxu0 }
 0x4f4   :  { %3016 = vmatmul.mubr.msk.f32.gmra.mxu0 %vm245_vm2, %v2051_v59  ;;  %1383 = vrot.lane.b32.xlu1 %v1366_v30, %s3215_s24 }
 0x4f5   :  { %v3174_v2 = vpop.eup %3173  ;;  %v2924_v60 = vpop.f32.mrf.mxu0  ;;  %3018 = vmatprep.mubr.msk.f32.mxu0 %vm3210_vm1, %v3209_v1 }
 0x4f6   :  { %v2052_v37 = vmul.f32 %v3174_v2, %v3170_v35 }
 0x4f7   :  { %v1371_v38 = vpop.f32.mrf.mxu0 }
 0x4f8   :  { %3019 = vmatmul.mubr.msk.f32.gmra.mxu0 %vm245_vm2, %v2052_v37  ;;  %vm1395_vm2 = vcmask 155776  }
 0x4f9   :  { %v2927_v5 = vpop.f32.mrf.mxu0  ;;  %3046 = vmatprep.mubr.msk.f32.mxu0 %vm3210_vm1, %v3209_v1 }
 0x4fb   :  { %v1376_v7 = vpop.f32.mrf.mxu0 }
 0x4fd   :  { %v2930_v49 = vpop.f32.mrf.mxu0 }
 0x4ff   :  { %v1621_v43 = vpop.f32.mrf.mxu0 }
 0x500   :  { %1638 = vrot.lane.b32.xlu0 %v1621_v43, %s3216_s29 }
 0x501   :  { %v2954_v11 = vpop.f32.mrf.mxu0 }
 0x503   :  { %v1626_v9 = vpop.f32.mrf.mxu0 }
 0x505   :  { %v2957_v15 = vpop.f32.mrf.mxu0 }
 0x507   :  { %v1631_v51 = vpop.f32.mrf.mxu0 }
 0x509   :  { %v2960_v50 = vpop.f32.mrf.mxu0 }
 0x50b   :  { %v1876_v54 = vpop.f32.mrf.mxu0 }
 0x50c   :  { %1893 = vrot.lane.b32.xlu1 %v1876_v54, %s3217_s15  ;;  %v4052_v54 = vld [vmem:[%s4148_s0 + $0x10] sm:$0x1] }
 0x50d   :  { %v2984_v57 = vpop.f32.mrf.mxu0 }
 0x50f   :  { %v1881_v58 = vpop.f32.mrf.mxu0 }
 0x511   :  { %v2987_v8 = vpop.f32.mrf.mxu0 }
 0x512   :  { %v64_v8 = vmul.f32 %v4052_v54, %v4052_v54 }
 0x513   :  { %v1886_v61 = vpop.f32.mrf.mxu0 }
 0x515   :  { %v2990_v13 = vpop.f32.mrf.mxu0 }
 0x516   :  { %v52_v13 = vsel %vm48_vm6, %v4059_v20, 0.0 }
 0x517   :  { %v2131_v26 = vpop.f32.mrf.mxu0 }
 0x518   :  { %2148 = vrot.lane.b32.xlu0 %v2131_v26, %s3218_s16  ;;  %v63_v26 = vmul.f32 %v4059_v20, %v4059_v20 }
 0x519   :  { %v3014_v62 = vpop.f32.mrf.mxu0 }
 0x530   :  { %50 = vadd.xlane.f32.xlu1 %v49_v45 }
 0x537   :  { %66 = vadd.xlane.f32.xlu0 %v65_v39  ;;  %v44_v39 = vld [vmem:[%s4154_s6 + $0x10] sm:$0x1] }
 0x541   :  { %875 = vrot.lane.b32.xlu1 %v3942_v48, %s3213_s1 }
 0x542   :  { %v619_v3 = vpop.permute.xlu0 %618 }
 0x543   :  { %628 = vst.msk [vmem:[#allocation2] sm:$0xff] %vm627_vm7, %v619_v3  ;;  %v47_v3 = vld [vmem:[%s4155_s7 + $0x10] sm:$0x1] }
 0x545   :  { %1130 = vrot.lane.b32.xlu1 %v3947_v53, %s3214_s23 }
 0x549   :  { %622 = vrot.lane.b32.xlu1 %v3939_v27, %s3211_s3 }
 0x54d   :  { %620 = vrot.lane.b32.xlu0 %v3937_v41, %s3211_s3  ;;  %877 = vrot.lane.b32.xlu1 %v3944_v42, %s3213_s1  ;;  %s3219_s1 = smov [#allocation3]  }
 0x54e   :  { %v874_v0 = vpop.permute.xlu1 %873 }
 0x54f   :  { %883 = vst.msk [vmem:[#allocation2] sm:$0xff] %vm882_vm8, %v874_v0  ;;  %v43_v0 = vld [vmem:[%s4154_s6 + $0x8] sm:$0xff] }
 0x551   :  { %1385 = vrot.lane.b32.xlu0 %v1371_v38, %s3215_s24  ;;  %1132 = vrot.lane.b32.xlu1 %v3949_v34, %s3214_s23  ;;  %s2506_s23 = sshll.u32 %s3219_s1, 4  ;;  %s2507_s23 = int_to_ptr.vmem [resolvable:$true] %s2506_s23 }
 0x552   :  { %p3192_p1 = scmp.lt.s32.totalorder %s2507_s23, %s2507_s23 }
 0x555   :  { %1640 = vrot.lane.b32.xlu0 %v1626_v9, %s3216_s29  ;;  %100 = vperm.xlu1 %3077, %v42_v4   ;;  %v2325_v4 = vld [vmem:[%s4156_s8 + $0x18] sm:$0xff] }
 0x556   :  { %3039 = vmatpush3.msra.mxu0 %v2325_v4  ;;  %v2424_v4 = vld [vmem:[%s4158_s10 + $0x18] sm:$0xff] }
 0x557   :  { %3040 = vmatprep.subr.mxu0 %v3209_v1 }
 0x559   :  { %1895 = vrot.lane.b32.xlu0 %v1881_v58, %s3217_s15  ;;  %1642 = vrot.lane.b32.xlu1 %v1631_v51, %s3216_s29 }
 0x55a   :  { %v1129_v6 = vpop.permute.xlu1 %1128 }
 0x55b   :  { %1138 = vst.msk [vmem:[#allocation2] sm:$0xff] %vm1137_vm9, %v1129_v6  ;;  %v2324_v6 = vld [vmem:[%s4156_s8 + $0x10] sm:$0xff] }
 0x55c   :  { %3041 = vmatpush3.msra.mxu0 %v2324_v6  ;;  %v2422_v6 = vld [vmem:[%s4158_s10 + $0x8] sm:$0xff] }
 0x55d   :  { %1387 = vrot.lane.b32.xlu0 %v1376_v7, %s3215_s24  ;;  %1897 = vrot.lane.b32.xlu1 %v1886_v61, %s3217_s15  ;;  %s3187_s24 = scalar_lea.vmem %s2507_s23, 16 }
 0x55e   :  { %3042 = vmatprep.subr.mxu0 %v3209_v1  ;;  %p3188_p0 = scmp.ne.s32.totalorder %s2507_s23, %s3187_s24 }
 0x566   :  { %v1384_v31 = vpop.permute.xlu1 %1383 }
 0x567   :  { %1393 = vst.msk [vmem:[#allocation2] sm:$0xff] %vm1392_vm10, %v1384_v31  ;;  %v2323_v31 = vld [vmem:[%s4156_s8 + $0x8] sm:$0xff] }
 0x568   :  { %3043 = vmatpush3.msra.mxu0 %v2323_v31  ;;  %v2421_v31 = vld [vmem:[%s4158_s10] sm:$0xff] }
 0x569   :  { %3044 = vmatprep.subr.mxu0 %v3209_v1 }
 0x572   :  { %v1639_v17 = vpop.permute.xlu0 %1638 }
 0x573   :  { %1648 = vst.msk [vmem:[#allocation2] sm:$0xff] %vm1647_vm11, %v1639_v17  ;;  %v2322_v17 = vld [vmem:[%s4156_s8] sm:$0xff] }
 0x574   :  { %3045 = vmatpush3.msra.mxu0 %v2322_v17 }
 0x57e   :  { %v1894_v16 = vpop.permute.xlu1 %1893 }
 0x57f   :  { %1903 = vst.msk [vmem:[#allocation2] sm:$0xff] %vm1902_vm12, %v1894_v16 }
 0x58a   :  { %v2149_v32 = vpop.permute.xlu0 %2148 }
 0x58b   :  { %2158 = vst.msk [vmem:[#allocation2] sm:$0xff] %vm2157_vm13, %v2149_v32 }
 0x592   :  { %v2162_v35 = vld [vmem:[#allocation2] sm:$0xff] }
 0x593   :  { %3030 = vmatmul.mubr.msk.f32.vlgmr.msra.gmra.mxu1 %vm48_vm6, %v2162_v35 }
 0x594   :  { %3032 = vmatprep.mubr.msk.f32.mxu1 %vm3210_vm1, %v3209_v1  ;;  %3056 = vmatpush3.msra.mxu1 %v2424_v4 }
 0x595   :  { %3057 = vmatprep.subr.mxu1 %v3209_v1 }
 0x5b4   :  { %v2136_v22 = vpop.f32.mrf.mxu0 }
 0x5b5   :  { %2150 = vrot.lane.b32.xlu0 %v2136_v22, %s3218_s16 }
 0x5b6   :  { %v3017_v10 = vpop.f32.mrf.mxu0 }
 0x5b8   :  { %v2141_v21 = vpop.f32.mrf.mxu0 }
 0x5b9   :  { %118 = vperm.xlu0 %3078, %v45_v36   ;;  %2152 = vrot.lane.b32.xlu1 %v2141_v21, %s3218_s16  ;;  %v51_v41 = vpop.xlane.xlu1 %50 }
 0x5ba   :  { %v3020_v40 = vpop.f32.mrf.mxu0  ;;  %v59_v27 = vmul.f32 0.03125, %v51_v41 }
 0x5bc   :  { %v77_v44 = vmul.f32 %v59_v27, %v59_v27  ;;  %v86_v59 = vsub.f32 %v3980_v63, %v59_v27  ;;  %v68_v63 = vsel %vm48_vm6, %v63_v26, 0.0 }
 0x5bd   :  { %v876_v14 = vpop.permute.xlu1 %875 }
 0x5c0   :  { %v67_v25 = vpop.xlane.xlu0 %66 }
 0x5c1   :  { %v74_v48 = vmul.f32 0.03125, %v67_v25  ;;  %v1131_v33 = vpop.permute.xlu1 %1130 }
 0x5c3   :  { %v80_v18 = vsub.f32 %v74_v48, %v77_v44 }
 0x5c4   :  { %v621_v42 = vpop.permute.xlu0 %620 }
 0x5c5   :  { %v83_v19 = vmax.f32 %v80_v18, 0.0  ;;  %629 = vst.msk [vmem:[#allocation2 + $0x8] sm:$0xff] %vm627_vm7, %v621_v42  ;;  %v623_v29 = vpop.permute.xlu1 %622  ;;  %vm55_vm7 = vcmask 253952  }
 0x5c6   :  { %884 = vst.msk [vmem:[#allocation2 + $0x8] sm:$0xff] %vm882_vm8, %v876_v14  ;;  %v71_v62 = vsel %vm55_vm7, %v64_v8, 0.0  ;;  %v56_v45 = vsel %vm55_vm7, %v4052_v54, 0.0 }
 0x5c7   :  { %631 = vst.msk [vmem:[#allocation2 + $0x10] sm:$0x1] %vm630_vm14, %v623_v29  ;;  %v89_v52 = vadd.f32 1e-05, %v83_v19 }
 0x5c8   :  { %1139 = vst.msk [vmem:[#allocation2 + $0x8] sm:$0xff] %vm1137_vm9, %v1131_v33  ;;  %v1386_v23 = vpop.permute.xlu0 %1385 }
 0x5c9   :  { %3175 = vrsqrt.f32 %v89_v52  ;;  %1394 = vst.msk [vmem:[#allocation2 + $0x8] sm:$0xff] %vm1392_vm10, %v1386_v23  ;;  %v878_v53 = vpop.permute.xlu1 %877 }
 0x5ca   :  { %886 = vst.msk [vmem:[#allocation2 + $0x10] sm:$0x1] %vm885_vm15, %v878_v53 }
 0x5cc   :  { %v1641_v24 = vpop.permute.xlu0 %1640 }
 0x5cd   :  { %1649 = vst.msk [vmem:[#allocation2 + $0x8] sm:$0xff] %vm1647_vm11, %v1641_v24  ;;  %v1133_v34 = vpop.permute.xlu1 %1132 }
 0x5ce   :  { %1141 = vst.msk [vmem:[#allocation2 + $0x10] sm:$0x1] %vm1140_vm0, %v1133_v34 }
 0x5d0   :  { %v1896_v56 = vpop.permute.xlu0 %1895 }
 0x5d1   :  { %1904 = vst.msk [vmem:[#allocation2 + $0x8] sm:$0xff] %vm1902_vm12, %v1896_v56  ;;  %v4029_v28 = vpop.permute.xlu1 %100 }
 0x5d4   :  { %v1388_v30 = vpop.permute.xlu0 %1387 }
 0x5d5   :  { %1396 = vst.msk [vmem:[#allocation2 + $0x10] sm:$0x1] %vm1395_vm2, %v1388_v30  ;;  %v1643_v2 = vpop.permute.xlu1 %1642 }
 0x5d6   :  { %v3176_v60 = vpop.eup %3175  ;;  %1651 = vst.msk [vmem:[#allocation2 + $0x10] sm:$0x1] %vm1650_vm3, %v1643_v2 }
 0x5d7   :  { %v95_v37 = vmul.f32 %v3176_v60, %v86_v59 }
 0x5d9   :  { %v1898_v38 = vpop.permute.xlu1 %1897  ;;  %v113_v11 = vmul.f32 %v4029_v28, %v95_v37 }
 0x5da   :  { %1906 = vst.msk [vmem:[#allocation2 + $0x10] sm:$0x1] %vm1905_vm4, %v1898_v38 }
 0x627   :  { %v2151_v5 = vpop.permute.xlu0 %2150 }
 0x628   :  { %2159 = vst.msk [vmem:[#allocation2 + $0x8] sm:$0xff] %vm2157_vm13, %v2151_v5 }
 0x62b   :  { %v2153_v7 = vpop.permute.xlu1 %2152 }
 0x62c   :  { %2161 = vst.msk [vmem:[#allocation2 + $0x10] sm:$0x1] %vm2160_vm5, %v2153_v7 }
 0x62f   :  { %v2163_v49 = vld [vmem:[#allocation2 + $0x8] sm:$0xff] }
 0x630   :  { %3033 = vmatmul.mubr.msk.f32.gmra.mxu1 %vm48_vm6, %v2163_v49 }
 0x631   :  { %3035 = vmatprep.mubr.msk.f32.mxu1 %vm3210_vm1, %v3209_v1 }
 0x633   :  { %v2164_v43 = vld [vmem:[#allocation2 + $0x10] sm:$0x1] }
 0x634   :  { %3036 = vmatmul.mubr.msk.f32.gmra.mxu1 %vm48_vm6, %v2164_v43  ;;  %v4039_v46 = vpop.permute.xlu0 %118 }
 0x635   :  { %3063 = vmatprep.mubr.msk.f32.mxu1 %vm3210_vm1, %v3209_v1  ;;  %v131_v15 = vadd.f32 %v4039_v46, %v113_v11 }
 0x653   :  { %v2251_v9 = vpop.f32.mrf.mxu1 }
 0x654   :  { %v2252_v51 = vadd.f32 %v4044_v47, %v2251_v9 }
 0x655   :  { %v3031_v50 = vpop.f32.mrf.mxu1 }
 0x656   :  { %v4054_v55 = vadd.f32 %v2252_v51, %v131_v15 }
 0x658   :  { %v2268_v57 = vsel %vm48_vm6, %v4054_v55, 0.0  ;;  %v2280_v58 = vmul.f32 %v4054_v55, %v4054_v55 }
 0x659   :  { %2269 = vadd.xlane.f32.xlu0 %v2268_v57 }
 0x65a   :  { %v2283_v61 = vsel %vm48_vm6, %v2280_v58, 0.0 }
 0x65b   :  { %2284 = vadd.xlane.f32.xlu1 %v2283_v61 }
 0x65d   :  { %53 = vadd.xlane.f32.xlu0 %v52_v13 }
 0x65f   :  { %72 = vadd.xlane.f32.xlu1 %v71_v62 }
 0x661   :  { %69 = vadd.xlane.f32.xlu0 %v68_v63 }
 0x665   :  { %57 = vadd.xlane.f32.xlu0 %v56_v45 }
 0x670   :  { %123 = vperm.xlu1 %3077, %v46_v12  }
 0x674   :  { %110 = vperm.xlu1 %3077, %v44_v39  }
 0x678   :  { %128 = vperm.xlu1 %3077, %v47_v3  }
 0x67b   :  { %105 = vperm.xlu0 %3078, %v43_v0  }
 0x6e2   :  { %v2270_v16 = vpop.xlane.xlu0 %2269 }
 0x6e3   :  { %v2277_v32 = vmul.f32 0.03125, %v2270_v16 }
 0x6e4   :  { %v2285_v35 = vpop.xlane.xlu1 %2284 }
 0x6e5   :  { %v2295_v22 = vmul.f32 %v2277_v32, %v2277_v32  ;;  %v2292_v10 = vmul.f32 0.03125, %v2285_v35  ;;  %v2304_v60 = vsub.f32 %v4054_v55, %v2277_v32 }
 0x6e6   :  { %v54_v36 = vpop.xlane.xlu0 %53 }
 0x6e7   :  { %v2298_v21 = vsub.f32 %v2292_v10, %v2295_v22  ;;  %v60_v41 = vmul.f32 0.03125, %v54_v36 }
 0x6e8   :  { %v73_v33 = vpop.xlane.xlu1 %72 }
 0x6e9   :  { %v2301_v40 = vmax.f32 %v2298_v21, 0.0  ;;  %v78_v27 = vmul.f32 %v60_v41, %v60_v41  ;;  %v76_v42 = vmul.f32 0.03125, %v73_v33  ;;  %v87_v49 = vsub.f32 %v4059_v20, %v60_v41 }
 0x6ea   :  { %v70_v14 = vpop.xlane.xlu0 %69 }
 0x6eb   :  { %v2307_v44 = vadd.f32 1e-05, %v2301_v40  ;;  %v75_v25 = vmul.f32 0.03125, %v70_v14 }
 0x6ec   :  { %v4105_v7 = vpop.permute.xlu1 %123 }
 0x6ed   :  { %3177 = vrsqrt.f32 %v2307_v44  ;;  %v81_v48 = vsub.f32 %v75_v25, %v78_v27 }
 0x6ee   :  { %v58_v18 = vpop.xlane.xlu0 %57 }
 0x6ef   :  { %v84_v19 = vmax.f32 %v81_v48, 0.0  ;;  %v61_v29 = vmul.f32 0.03125, %v58_v18 }
 0x6f0   :  { %v2256_v52 = vpop.f32.mrf.mxu1  ;;  %v111_v50 = vpop.permute.xlu1 %110 }
 0x6f1   :  { %v90_v23 = vadd.f32 1e-05, %v84_v19  ;;  %v79_v53 = vmul.f32 %v61_v29, %v61_v29  ;;  %v88_v57 = vsub.f32 %v4052_v54, %v61_v29 }
 0x6f2   :  { %v3034_v24 = vpop.f32.mrf.mxu1 }
 0x6f3   :  { %3179 = vrsqrt.f32 %v90_v23  ;;  %v82_v34 = vsub.f32 %v76_v42, %v79_v53 }
 0x6f4   :  { %v2261_v56 = vpop.f32.mrf.mxu1  ;;  %v129_v62 = vpop.permute.xlu1 %128 }
 0x6f5   :  { %v85_v59 = vmax.f32 %v82_v34, 0.0  ;;  %v2262_v63 = vadd.f32 %v4044_v47, %v2261_v56 }
 0x6f6   :  { %v3037_v30 = vpop.f32.mrf.mxu1  ;;  %v106_v15 = vpop.permute.xlu0 %105 }
 0x6f7   :  { %v91_v2 = vadd.f32 1e-05, %v85_v59  ;;  %v2661_v59 = vld [vmem:[%s4157_s9] ss:$0 sm:$0xff]  ;;  %s3191_s9 = scalar_lea.vmem %s2507_s23, 32 }
 0x6f8   :  { %p3193_p2 = scmp.lt.s32.totalorder %s3191_s9, %s3187_s24 }
 0x6f9   :  { %3181 = vrsqrt.f32 %v91_v2 }
 0x6fa   :  { %v3178_v37 = vpop.eup %3177  ;;  %p3194_p3 = por %p3193_p2, %p3192_p1 }
 0x6fb   :  { %v2313_v38 = vmul.f32 %v3178_v37, %v2304_v60 }
 0x6fc   :  { %p3195_p4 = pnand %p3194_p3, %p3188_p0 }
 0x6fd   :  { %v2316_v5 = vmul.f32 %v2313_v38, %v4029_v28  ;;  %v2257_v28 = vadd.f32 %v4044_v47, %v2256_v52  ;;  %v2423_v47 = vld [vmem:[%s4158_s10 + $0x10] sm:$0xff] }
 0x6fe   :  { %3058 = vmatpush3.msra.mxu1 %v2423_v47 }
 0x6ff   :  { %v2319_v43 = vadd.f32 %v2316_v5, %v4039_v46  ;;  %3059 = vmatprep.subr.mxu1 %v3209_v1 }
 0x700   :  { %v3180_v11 = vpop.eup %3179  ;;  %3060 = vmatpush3.msra.mxu1 %v2422_v6 }
 0x701   :  { %v96_v9 = vmul.f32 %v3180_v11, %v87_v49  ;;  %3047 = vmatmul.mubr.msk.f32.vlgmr.msra.gmra.mxu0 %vm48_vm6, %v2319_v43  ;;  %3061 = vmatprep.subr.mxu1 %v3209_v1 }
 0x702   :  { %3049 = vmatprep.mubr.msk.f32.mxu0 %vm3210_vm1, %v3209_v1  ;;  %3062 = vmatpush3.msra.mxu1 %v2421_v31 }
 0x703   :  { %v114_v51 = vmul.f32 %v106_v15, %v96_v9 }
 0x705   :  { %v132_v58 = vadd.f32 %v4105_v7, %v114_v51 }
 0x706   :  { %v3182_v8 = vpop.eup %3181 }
 0x707   :  { %v97_v20 = vmul.f32 %v3182_v8, %v88_v57  ;;  %v2266_v61 = vadd.f32 %v2257_v28, %v132_v58 }
 0x709   :  { %v115_v46 = vmul.f32 %v111_v50, %v97_v20  ;;  %v2271_v13 = vsel %vm48_vm6, %v2266_v61, 0.0  ;;  %v2281_v26 = vmul.f32 %v2266_v61, %v2266_v61 }
 0x70a   :  { %2272 = vadd.xlane.f32.xlu0 %v2271_v13 }
 0x70b   :  { %v133_v45 = vadd.f32 %v129_v62, %v115_v46  ;;  %v2286_v12 = vsel %vm48_vm6, %v2281_v26, 0.0 }
 0x70c   :  { %2287 = vadd.xlane.f32.xlu1 %v2286_v12 }
 0x70d   :  { %v2267_v54 = vadd.f32 %v2262_v63, %v133_v45 }
 0x70f   :  { %v2274_v39 = vsel %vm55_vm7, %v2267_v54, 0.0  ;;  %v2282_v3 = vmul.f32 %v2267_v54, %v2267_v54 }
 0x710   :  { %2275 = vadd.xlane.f32.xlu0 %v2274_v39 }
 0x711   :  { %v2289_v0 = vsel %vm55_vm7, %v2282_v3, 0.0 }
 0x714   :  { %2290 = vadd.xlane.f32.xlu0 %v2289_v0 }
 0x793   :  { %v2273_v17 = vpop.xlane.xlu0 %2272 }
 0x794   :  { %v2278_v16 = vmul.f32 0.03125, %v2273_v17 }
 0x795   :  { %v2288_v32 = vpop.xlane.xlu1 %2287 }
 0x796   :  { %v2296_v35 = vmul.f32 %v2278_v16, %v2278_v16  ;;  %v2293_v22 = vmul.f32 0.03125, %v2288_v32  ;;  %v2305_v18 = vsub.f32 %v2266_v61, %v2278_v16 }
 0x798   :  { %v2299_v10 = vsub.f32 %v2293_v22, %v2296_v35 }
 0x799   :  { %v2276_v36 = vpop.xlane.xlu0 %2275 }
 0x79a   :  { %v2302_v21 = vmax.f32 %v2299_v10, 0.0  ;;  %v2279_v41 = vmul.f32 0.03125, %v2276_v36 }
 0x79c   :  { %v2308_v40 = vadd.f32 1e-05, %v2302_v21  ;;  %v2297_v14 = vmul.f32 %v2279_v41, %v2279_v41  ;;  %v2306_v23 = vsub.f32 %v2267_v54, %v2279_v41 }
 0x79d   :  { %v2291_v27 = vpop.xlane.xlu0 %2290 }
 0x79e   :  { %3183 = vrsqrt.f32 %v2308_v40  ;;  %v2294_v44 = vmul.f32 0.03125, %v2291_v27 }
 0x7a0   :  { %v2300_v25 = vsub.f32 %v2294_v44, %v2297_v14 }
 0x7a2   :  { %v2303_v48 = vmax.f32 %v2300_v25, 0.0 }
 0x7a4   :  { %v2309_v33 = vadd.f32 1e-05, %v2303_v48 }
 0x7a6   :  { %3185 = vrsqrt.f32 %v2309_v33 }
 0x7ab   :  { %v3184_v42 = vpop.eup %3183 }
 0x7ac   :  { %v2314_v19 = vmul.f32 %v3184_v42, %v2305_v18 }
 0x7ae   :  { %v2317_v29 = vmul.f32 %v2314_v19, %v106_v15 }
 0x7b0   :  { %v2320_v52 = vadd.f32 %v2317_v29, %v4105_v7 }
 0x7b2   :  { %3050 = vmatmul.mubr.msk.f32.gmra.mxu0 %vm48_vm6, %v2320_v52 }
 0x7b3   :  { %v3186_v53 = vpop.eup %3185  ;;  %3052 = vmatprep.mubr.msk.f32.mxu0 %vm3210_vm1, %v3209_v1  ;;  %vm2498_vm1 = vcmask 73728  }
 0x7b4   :  { %v2315_v24 = vmul.f32 %v3186_v53, %v2306_v23 }
 0x7b6   :  { %v2318_v34 = vmul.f32 %v2315_v24, %v111_v50 }
 0x7b8   :  { %v2321_v56 = vadd.f32 %v2318_v34, %v129_v62 }
 0x7ba   :  { %3053 = vmatmul.mubr.msk.f32.gmra.mxu0 %vm48_vm6, %v2321_v56 }
 0x7c1   :  { %v2408_v30 = vpop.f32.mrf.mxu0 }
 0x7c2   :  { %v2409_v2 = vadd.f32 %v2661_v59, %v2408_v30 }
 0x7c3   :  { %v3048_v60 = vpop.f32.mrf.mxu0 }
 0x7c4   :  { %v2420_v37 = vadd.f32 %v2409_v2, %v4054_v55 }
 0x7c6   :  { %3064 = vmatmul.mubr.msk.f32.vlgmr.msra.gmra.mxu1 %vm48_vm6, %v2420_v37 }
 0x872   :  { %v2413_v38 = vpop.f32.mrf.mxu0 }
 0x874   :  { %v3051_v5 = vpop.f32.mrf.mxu0 }
 0x87a   :  { %v2417_v7 = vpop.f32.mrf.mxu0 }
 0x87c   :  { %v3054_v1 = vpop.f32.mrf.mxu0 }
 0x886   :  { %v2494_v49 = vpop.f32.mrf.mxu1 }
 0x887   :  { %2499 = vst.msk [vmem:[#allocation3] sm:$0x1] %vm2498_vm1, %v2494_v49 }
 0x888   :  { %v3065_v43 = vpop.f32.mrf.mxu1 }
 0x889   :  { %3198 = shalt.err (!%p3195_p4)
}
 0x88a   :  { %2509 = dma.vmem_to_hbm [thread:$0]  %s2507_s23, 16, %s4159_s11, [#allocation4]  }
 0x88b   :  { %3207 = dma.done.wait [#allocation4], 16  }
 0x88c   :  { %3208 = vsyncadd [#allocation4], 4294967280 }
 0x88d   :  { %2513 = vsyncpa [#allocation4], 1 }

</bundles_post_ra>
